<compile_context>
chip_gen: v5e
topology: v5e:2x2
jax: 0.10.0
libtpu: 0.0.40
codegen_flags: <defaults>
</compile_context>

<pallas_src>
from functools import partial

import jax
import jax.numpy as jnp
from jax.experimental import pallas as pl
from jax.experimental.pallas import tpu as pltpu

EPS = 1e-5


def _round_up(x, m):
    return (x + m - 1) // m * m


def _pick_images_per_block(n, hw, target_lanes=2048):
    """Largest divisor of n that keeps ~target_lanes lanes per grid step."""
    nb_img = max(1, min(n, target_lanes // max(hw, 1)))
    while n % nb_img:
        nb_img -= 1
    return nb_img


def _mod(a, m):
    """a % m for non-negative a; bitwise AND when m is a power of two."""
    if m & (m - 1) == 0:
        return jnp.bitwise_and(a, m - 1)
    return a % m


def _resblock_kernel(x_ref, w_ref, par_ref, out_ref, slab_ref, *,
                     dilations, Cp, H, W, NB):
    """One (NB images folded onto lanes) grid step of the ResBlock forward.

    x_ref    : VMEM (1, Cp, L)          f32   activations, L = NB*H*W
    w_ref    : VMEM (nb, 2, Cp, 9*Cp)   bf16  stacked conv weights [.., co, (tap,ci)]
    par_ref  : VMEM (Cp, 2*ns+1)        f32   [BN scale | BN shift | summed conv2 bias]
    out_ref  : VMEM (1, Cp, L)          f32
    slab_ref : VMEM (9*Cp, L)           f32   scratch: shifted+masked tap slab
    """
    HW = H * W
    L = NB * HW
    nb = len(dilations)
    ns = 2 * nb

    # Per-lane within-image flat position q and column index, generated
    # in-kernel (cheap VPU compares) instead of HBM-resident f32 masks.
    lane = jax.lax.broadcasted_iota(jnp.int32, (Cp, L), 1)
    q = _mod(lane, HW)          # flat position inside the image
    col = _mod(lane, W)         # column inside the image

    # Residual path + all (pre-summed) conv2 biases; accumulate into out_ref
    # (VMEM) so no large accumulator lives in vregs across the branches.
    out_ref[0] = x_ref[0] + par_ref[:, 2 * ns:2 * ns + 1]

    for bi, d in enumerate(dilations):
        h = x_ref[0]                                    # (Cp, L) f32
        for st in range(2):
            idx = 2 * bi + st
            sc = par_ref[:, idx:idx + 1]                # (Cp, 1) folded BN scale
            sh = par_ref[:, ns + idx:ns + idx + 1]      # (Cp, 1) folded BN shift
            h = jnp.maximum(h * sc + sh, 0.0)           # BN(eval) + ReLU, f32 VPU

            # Dilated 3x3 conv: write the 9 shifted+masked taps into one
            # (9*Cp, L) VMEM slab (tile-aligned stores, Cp % 8 == 0) ...
            for kh in range(3):
                for kw in range(3):
                    t = 3 * kh + kw
                    oh = (kh - 1) * d
                    ow = (kw - 1) * d
                    if oh == 0 and ow == 0:
                        tap = h                          # center tap
                    else:
                        shift_amt = (-(oh * W + ow)) % L            # static
                        rolled = pltpu.roll(h, shift=shift_amt, axis=1)
                        # Row condition expressed on q (avoids vector int div);
                        # also zeroes cross-image wrap from the batched roll.
                        conds = []
                        if oh > 0:
                            conds.append(q < (H - oh) * W)
                        elif oh < 0:
                            conds.append(q >= (-oh) * W)
                        if ow > 0:
                            conds.append(col < W - ow)
                        elif ow < 0:
                            conds.append(col >= -ow)
                        valid = conds[0]
                        for c in conds[1:]:
                            valid = valid & c
                        tap = jnp.where(valid, rolled, 0.0)
                    slab_ref[t * Cp:(t + 1) * Cp, :] = tap

            # ... then contract all taps in ONE bf16 MXU pass with f32 acc:
            # (Cp, 9*Cp) @ (9*Cp, L) -> (Cp, L).
            h = jnp.dot(w_ref[bi, st],
                        slab_ref[...].astype(jnp.bfloat16),
                        preferred_element_type=jnp.float32)

        out_ref[0] = out_ref[0] + h


def resblock_forward(x, params, dilations):
    N, C, H, W = x.shape
    HW = H * W
    nb = len(dilations)
    ns = 2 * nb
    Cp = _round_up(C, 8)                      # sublane-aligned channel count
    NB = _pick_images_per_block(N, HW)        # images folded onto lanes per step
    num_blocks = N // NB
    L = NB * HW

    scale = params["scale"].astype(jnp.float32)   # (nb, 2, C)
    shift = params["shift"].astype(jnp.float32)   # (nb, 2, C)
    w = params["w"].astype(jnp.float32)           # (nb, 2, C, C, 3, 3)
    b = params["b"].astype(jnp.float32)           # (nb, 2, C)

    # Fold conv1 bias into BN2's shift; sum all conv2 biases into one add.
    shift = shift.at[:, 1, :].add(scale[:, 1, :] * b[:, 0, :])
    btot = jnp.sum(b[:, 1, :], axis=0)            # (C,)

    # One lane-dense (Cp, 2*ns+1) parameter tile:
    #   cols [0, ns)    : BN scale   (col = 2*branch + stage)
    #   cols [ns, 2*ns) : BN shift   (conv1 bias folded into stage-1 columns)
    #   col  2*ns       : summed conv2 biases
    par = jnp.zeros((Cp, 2 * ns + 1), jnp.float32)
    par = par.at[:C, 0:ns].set(scale.reshape(ns, C).T)
    par = par.at[:C, ns:2 * ns].set(shift.reshape(ns, C).T)
    par = par.at[:C, 2 * ns].set(btot)

    # Conv weights: (nb,2,Cout,Cin,3,3) -> (nb,2,Cout,kh,kw,Cin), pad C->Cp,
    # reshape to (nb,2,Cp,9*Cp) bf16.  K order (tap, ci) matches the tap slab.
    wt = jnp.transpose(w, (0, 1, 2, 4, 5, 3))
    wt = jnp.pad(wt, ((0, 0), (0, 0), (0, Cp - C), (0, 0), (0, 0), (0, Cp - C)))
    w2 = wt.reshape(nb, 2, Cp, 9 * Cp).astype(jnp.bfloat16)

    # Activations: pad channels to Cp, fold NB images onto the lane axis.
    xp = jnp.pad(x.astype(jnp.float32), ((0, 0), (0, Cp - C), (0, 0), (0, 0)))
    x_in = (xp.reshape(num_blocks, NB, Cp, HW)
              .transpose(0, 2, 1, 3)
              .reshape(num_blocks, Cp, L))

    kernel = partial(_resblock_kernel, dilations=tuple(dilations),
                     Cp=Cp, H=H, W=W, NB=NB)

    flops = 2 * N * nb * 2 * (9 * Cp) * Cp * HW
    bytes_accessed = 4 * 2 * num_blocks * Cp * L + 2 * int(w2.size) + 4 * int(par.size)

    out = pl.pallas_call(
        kernel,
        out_shape=jax.ShapeDtypeStruct((num_blocks, Cp, L), jnp.float32),
        grid_spec=pltpu.PrefetchScalarGridSpec(
            num_scalar_prefetch=0,
            grid=(num_blocks,),
            in_specs=[
                pl.BlockSpec((1, Cp, L), lambda n: (n, 0, 0)),          # x
                pl.BlockSpec((nb, 2, Cp, 9 * Cp),
                             lambda n: (0, 0, 0, 0)),                   # conv W (bf16)
                pl.BlockSpec((Cp, 2 * ns + 1), lambda n: (0, 0)),       # BN / bias params
            ],
            out_specs=pl.BlockSpec((1, Cp, L), lambda n: (n, 0, 0)),
            scratch_shapes=[pltpu.VMEM((9 * Cp, L), jnp.float32)],      # tap slab
        ),
        compiler_params=pltpu.CompilerParams(
            dimension_semantics=("parallel",)),
        cost_estimate=pl.CostEstimate(
            flops=flops, transcendentals=0, bytes_accessed=bytes_accessed),
    )(x_in, w2, par)

    out = (out.reshape(num_blocks, Cp, NB, HW)
              .transpose(0, 2, 1, 3)
              .reshape(N, Cp, H, W))
    return out[:, :C]


def init_params(key, C, n_branch):
    """Deterministic synthetic parameters (BN folded to affine + conv W/b)."""
    k = jax.random.split(key, 6)
    gamma = 1.0 + 0.1 * jax.random.normal(k[0], (n_branch, 2, C), jnp.float32)
    beta = 0.1 * jax.random.normal(k[1], (n_branch, 2, C), jnp.float32)
    mean = 0.1 * jax.random.normal(k[2], (n_branch, 2, C), jnp.float32)
    var = 0.5 + jnp.abs(0.1 * jax.random.normal(k[3], (n_branch, 2, C), jnp.float32))
    w = jax.random.normal(k[4], (n_branch, 2, C, C, 3, 3), jnp.float32) * (1.0 / (9 * C)) ** 0.5
    b = 0.05 * jax.random.normal(k[5], (n_branch, 2, C), jnp.float32)
    scale = gamma / jnp.sqrt(var + EPS)
    shift = beta - mean * scale
    return dict(scale=scale, shift=shift, w=w, b=b)


def ref_forward(x, params, dilations):
    """Pure-JAX reference (same eval-mode BN semantics) for validation."""
    out = x
    for bi, d in enumerate(dilations):
        h = x
        for st in range(2):
            s = params["scale"][bi, st][None, :, None, None]
            t = params["shift"][bi, st][None, :, None, None]
            h = jnp.maximum(h * s + t, 0.0)
            h = jax.lax.conv_general_dilated(
                h, params["w"][bi, st],
                window_strides=(1, 1),
                padding=[(d, d), (d, d)],
                rhs_dilation=(d, d),
                dimension_numbers=("NCHW", "OIHW", "NCHW"),
                precision=jax.lax.Precision.HIGHEST)
            h = h + params["b"][bi, st][None, :, None, None]
        out = out + h
    return out


if __name__ == "__main__":
    key = jax.random.PRNGKey(0)
    kx, kp = jax.random.split(key)

    N, C, H, W = 2, 4, 16, 16           # NCHW, matches ResBlock(features=4)
    dilations = (1, 3, 15)

    x = jax.random.normal(kx, (N, C, H, W), dtype=jnp.float32)
    params = init_params(kp, C, len(dilations))

    out = resblock_forward(x, params, dilations)
    out = jax.block_until_ready(out)

    ref = ref_forward(x, params, dilations)
    assert out.shape == (N, C, H, W)
    # bf16 MXU (f32 accumulation) in the kernel vs f32-HIGHEST reference
    # -> relaxed tolerance; real tap/mask bugs produce O(1) errors.
    err = float(jnp.max(jnp.abs(out - ref)))
    if not bool(jnp.allclose(out, ref, atol=5e-2, rtol=5e-2)):
        raise AssertionError(f"mismatch vs reference, max abs err = {err}")

    print("KERNEL_OK")
</pallas_src>

<mosaic_0001>
module attributes {stable_mosaic.version = 11 : i64} {
  func.func @_resblock_kernel(%arg0: i32, %arg1: memref<1x8x512xf32, #tpu.memory_space<vmem>>, %arg2: memref<3x2x8x72xbf16, #tpu.memory_space<vmem>>, %arg3: memref<8x13xf32, #tpu.memory_space<vmem>>, %arg4: memref<1x8x512xf32, #tpu.memory_space<vmem>>, %arg5: memref<72x512xf32, #tpu.memory_space<vmem>>) attributes {dimension_semantics = [#tpu.dimension_semantics<parallel>], iteration_bounds = array<i64: 1>, scalar_prefetch = 0 : i64, scratch_operands = 1 : i64, tpu.core_type = #tpu.core_type<tc>, window_params = [{transform_indices = @transform_0, window_bounds = array<i64: 1, 8, 512>}, {pipeline_mode = #tpu.pipeline_mode<synchronous>, transform_indices = @transform_1, window_bounds = array<i64: 3, 2, 8, 72>}, {pipeline_mode = #tpu.pipeline_mode<synchronous>, transform_indices = @transform_2, window_bounds = array<i64: 8, 13>}, {transform_indices = @transform_3, window_bounds = array<i64: 1, 8, 512>}]} {
    %0 = tpu.iota {dimensions = array<i32: 1>} : vector<8x512xi32>
    %c255_i32 = arith.constant 255 : i32
    %1 = vector.broadcast %c255_i32 : i32 to vector<8x512xi32>
    %2 = arith.andi %0, %1 : vector<8x512xi32>
    %c15_i32 = arith.constant 15 : i32
    %3 = vector.broadcast %c15_i32 : i32 to vector<8x512xi32>
    %4 = arith.andi %0, %3 : vector<8x512xi32>
    %c0 = arith.constant 0 : index
    %c0_0 = arith.constant 0 : index
    %c0_1 = arith.constant 0 : index
    %5 = vector.load %arg1[%c0, %c0_0, %c0_1] : memref<1x8x512xf32, #tpu.memory_space<vmem>>, vector<1x8x512xf32>
    %6 = vector.shape_cast %5 : vector<1x8x512xf32> to vector<8x512xf32>
    %c0_2 = arith.constant 0 : index
    %c12 = arith.constant 12 : index
    %7 = vector.load %arg3[%c0_2, %c12] : memref<8x13xf32, #tpu.memory_space<vmem>>, vector<8x1xf32>
    %8 = vector.broadcast %7 : vector<8x1xf32> to vector<8x512xf32>
    %9 = arith.addf %6, %8 : vector<8x512xf32>
    %c0_3 = arith.constant 0 : index
    %c0_4 = arith.constant 0 : index
    %c0_5 = arith.constant 0 : index
    %10 = vector.load %arg4[%c0_3, %c0_4, %c0_5] : memref<1x8x512xf32, #tpu.memory_space<vmem>>, vector<1x8x512xf32>
    %11 = vector.shape_cast %10 : vector<1x8x512xf32> to vector<8x512xf32>
    %12 = vector.shape_cast %9 : vector<8x512xf32> to vector<1x8x512xf32>
    tpu.vector_store %arg4[%c0_3, %c0_4, %c0_5], %12 {strides = array<i32>} : memref<1x8x512xf32, #tpu.memory_space<vmem>>, vector<1x8x512xf32>,
    %c0_6 = arith.constant 0 : index
    %c0_7 = arith.constant 0 : index
    %c0_8 = arith.constant 0 : index
    %13 = vector.load %arg1[%c0_6, %c0_7, %c0_8] : memref<1x8x512xf32, #tpu.memory_space<vmem>>, vector<1x8x512xf32>
    %14 = vector.shape_cast %13 : vector<1x8x512xf32> to vector<8x512xf32>
    %c0_9 = arith.constant 0 : index
    %c0_10 = arith.constant 0 : index
    %15 = vector.load %arg3[%c0_9, %c0_10] : memref<8x13xf32, #tpu.memory_space<vmem>>, vector<8x1xf32>
    %c0_11 = arith.constant 0 : index
    %c6 = arith.constant 6 : index
    %16 = vector.load %arg3[%c0_11, %c6] : memref<8x13xf32, #tpu.memory_space<vmem>>, vector<8x1xf32>
    %17 = vector.broadcast %15 : vector<8x1xf32> to vector<8x512xf32>
    %18 = arith.mulf %14, %17 : vector<8x512xf32>
    %19 = vector.broadcast %16 : vector<8x1xf32> to vector<8x512xf32>
    %20 = arith.addf %18, %19 : vector<8x512xf32>
    %cst = arith.constant 0.000000e+00 : f32
    %21 = vector.broadcast %cst : f32 to vector<8x512xf32>
    %22 = arith.maximumf %20, %21 : vector<8x512xf32>
    %c17_i32 = arith.constant 17 : i32
    %23 = tpu.dynamic_rotate %22 by %c17_i32 dim 1 : vector<8x512xf32>, i32 -> vector<8x512xf32>
    %c16_i32 = arith.constant 16 : i32
    %24 = vector.broadcast %c16_i32 : i32 to vector<8x512xi32>
    %25 = arith.cmpi sge, %2, %24 : vector<8x512xi32>
    %c1_i32 = arith.constant 1 : i32
    %26 = vector.broadcast %c1_i32 : i32 to vector<8x512xi32>
    %27 = arith.cmpi sge, %4, %26 : vector<8x512xi32>
    %28 = arith.andi %25, %27 : vector<8x512xi1>
    %cst_12 = arith.constant 0.000000e+00 : f32
    %29 = vector.broadcast %cst_12 : f32 to vector<8x512xf32>
    %30 = arith.select %28, %23, %29 : vector<8x512xi1>, vector<8x512xf32>
    %c0_13 = arith.constant 0 : index
    %c0_14 = arith.constant 0 : index
    %31 = vector.load %arg5[%c0_13, %c0_14] : memref<72x512xf32, #tpu.memory_space<vmem>>, vector<8x512xf32>
    tpu.vector_store %arg5[%c0_13, %c0_14], %30 {strides = array<i32>} : memref<72x512xf32, #tpu.memory_space<vmem>>, vector<8x512xf32>,
    %c16_i32_15 = arith.constant 16 : i32
    %32 = tpu.dynamic_rotate %22 by %c16_i32_15 dim 1 : vector<8x512xf32>, i32 -> vector<8x512xf32>
    %c16_i32_16 = arith.constant 16 : i32
    %33 = vector.broadcast %c16_i32_16 : i32 to vector<8x512xi32>
    %34 = arith.cmpi sge, %2, %33 : vector<8x512xi32>
    %cst_17 = arith.constant 0.000000e+00 : f32
    %35 = vector.broadcast %cst_17 : f32 to vector<8x512xf32>
    %36 = arith.select %34, %32, %35 : vector<8x512xi1>, vector<8x512xf32>
    %c8 = arith.constant 8 : index
    %c0_18 = arith.constant 0 : index
    %37 = vector.load %arg5[%c8, %c0_18] : memref<72x512xf32, #tpu.memory_space<vmem>>, vector<8x512xf32>
    tpu.vector_store %arg5[%c8, %c0_18], %36 {strides = array<i32>} : memref<72x512xf32, #tpu.memory_space<vmem>>, vector<8x512xf32>,
    %c15_i32_19 = arith.constant 15 : i32
    %38 = tpu.dynamic_rotate %22 by %c15_i32_19 dim 1 : vector<8x512xf32>, i32 -> vector<8x512xf32>
    %c16_i32_20 = arith.constant 16 : i32
    %39 = vector.broadcast %c16_i32_20 : i32 to vector<8x512xi32>
    %40 = arith.cmpi sge, %2, %39 : vector<8x512xi32>
    %c15_i32_21 = arith.constant 15 : i32
    %41 = vector.broadcast %c15_i32_21 : i32 to vector<8x512xi32>
    %42 = arith.cmpi slt, %4, %41 : vector<8x512xi32>
    %43 = arith.andi %40, %42 : vector<8x512xi1>
    %cst_22 = arith.constant 0.000000e+00 : f32
    %44 = vector.broadcast %cst_22 : f32 to vector<8x512xf32>
    %45 = arith.select %43, %38, %44 : vector<8x512xi1>, vector<8x512xf32>
    %c16 = arith.constant 16 : index
    %c0_23 = arith.constant 0 : index
    %46 = vector.load %arg5[%c16, %c0_23] : memref<72x512xf32, #tpu.memory_space<vmem>>, vector<8x512xf32>
    tpu.vector_store %arg5[%c16, %c0_23], %45 {strides = array<i32>} : memref<72x512xf32, #tpu.memory_space<vmem>>, vector<8x512xf32>,
    %c1_i32_24 = arith.constant 1 : i32
    %47 = tpu.dynamic_rotate %22 by %c1_i32_24 dim 1 : vector<8x512xf32>, i32 -> vector<8x512xf32>
    %c1_i32_25 = arith.constant 1 : i32
    %48 = vector.broadcast %c1_i32_25 : i32 to vector<8x512xi32>
    %49 = arith.cmpi sge, %4, %48 : vector<8x512xi32>
    %cst_26 = arith.constant 0.000000e+00 : f32
    %50 = vector.broadcast %cst_26 : f32 to vector<8x512xf32>
    %51 = arith.select %49, %47, %50 : vector<8x512xi1>, vector<8x512xf32>
    %c24 = arith.constant 24 : index
    %c0_27 = arith.constant 0 : index
    %52 = vector.load %arg5[%c24, %c0_27] : memref<72x512xf32, #tpu.memory_space<vmem>>, vector<8x512xf32>
    tpu.vector_store %arg5[%c24, %c0_27], %51 {strides = array<i32>} : memref<72x512xf32, #tpu.memory_space<vmem>>, vector<8x512xf32>,
    %c32 = arith.constant 32 : index
    %c0_28 = arith.constant 0 : index
    %53 = vector.load %arg5[%c32, %c0_28] : memref<72x512xf32, #tpu.memory_space<vmem>>, vector<8x512xf32>
    tpu.vector_store %arg5[%c32, %c0_28], %22 {strides = array<i32>} : memref<72x512xf32, #tpu.memory_space<vmem>>, vector<8x512xf32>,
    %c511_i32 = arith.constant 511 : i32
    %54 = tpu.dynamic_rotate %22 by %c511_i32 dim 1 : vector<8x512xf32>, i32 -> vector<8x512xf32>
    %c15_i32_29 = arith.constant 15 : i32
    %55 = vector.broadcast %c15_i32_29 : i32 to vector<8x512xi32>
    %56 = arith.cmpi slt, %4, %55 : vector<8x512xi32>
    %cst_30 = arith.constant 0.000000e+00 : f32
    %57 = vector.broadcast %cst_30 : f32 to vector<8x512xf32>
    %58 = arith.select %56, %54, %57 : vector<8x512xi1>, vector<8x512xf32>
    %c40 = arith.constant 40 : index
    %c0_31 = arith.constant 0 : index
    %59 = vector.load %arg5[%c40, %c0_31] : memref<72x512xf32, #tpu.memory_space<vmem>>, vector<8x512xf32>
    tpu.vector_store %arg5[%c40, %c0_31], %58 {strides = array<i32>} : memref<72x512xf32, #tpu.memory_space<vmem>>, vector<8x512xf32>,
    %c497_i32 = arith.constant 497 : i32
    %60 = tpu.dynamic_rotate %22 by %c497_i32 dim 1 : vector<8x512xf32>, i32 -> vector<8x512xf32>
    %c240_i32 = arith.constant 240 : i32
    %61 = vector.broadcast %c240_i32 : i32 to vector<8x512xi32>
    %62 = arith.cmpi slt, %2, %61 : vector<8x512xi32>
    %c1_i32_32 = arith.constant 1 : i32
    %63 = vector.broadcast %c1_i32_32 : i32 to vector<8x512xi32>
    %64 = arith.cmpi sge, %4, %63 : vector<8x512xi32>
    %65 = arith.andi %62, %64 : vector<8x512xi1>
    %cst_33 = arith.constant 0.000000e+00 : f32
    %66 = vector.broadcast %cst_33 : f32 to vector<8x512xf32>
    %67 = arith.select %65, %60, %66 : vector<8x512xi1>, vector<8x512xf32>
    %c48 = arith.constant 48 : index
    %c0_34 = arith.constant 0 : index
    %68 = vector.load %arg5[%c48, %c0_34] : memref<72x512xf32, #tpu.memory_space<vmem>>, vector<8x512xf32>
    tpu.vector_store %arg5[%c48, %c0_34], %67 {strides = array<i32>} : memref<72x512xf32, #tpu.memory_space<vmem>>, vector<8x512xf32>,
    %c496_i32 = arith.constant 496 : i32
    %69 = tpu.dynamic_rotate %22 by %c496_i32 dim 1 : vector<8x512xf32>, i32 -> vector<8x512xf32>
    %c240_i32_35 = arith.constant 240 : i32
    %70 = vector.broadcast %c240_i32_35 : i32 to vector<8x512xi32>
    %71 = arith.cmpi slt, %2, %70 : vector<8x512xi32>
    %cst_36 = arith.constant 0.000000e+00 : f32
    %72 = vector.broadcast %cst_36 : f32 to vector<8x512xf32>
    %73 = arith.select %71, %69, %72 : vector<8x512xi1>, vector<8x512xf32>
    %c56 = arith.constant 56 : index
    %c0_37 = arith.constant 0 : index
    %74 = vector.load %arg5[%c56, %c0_37] : memref<72x512xf32, #tpu.memory_space<vmem>>, vector<8x512xf32>
    tpu.vector_store %arg5[%c56, %c0_37], %73 {strides = array<i32>} : memref<72x512xf32, #tpu.memory_space<vmem>>, vector<8x512xf32>,
    %c495_i32 = arith.constant 495 : i32
    %75 = tpu.dynamic_rotate %22 by %c495_i32 dim 1 : vector<8x512xf32>, i32 -> vector<8x512xf32>
    %c240_i32_38 = arith.constant 240 : i32
    %76 = vector.broadcast %c240_i32_38 : i32 to vector<8x512xi32>
    %77 = arith.cmpi slt, %2, %76 : vector<8x512xi32>
    %c15_i32_39 = arith.constant 15 : i32
    %78 = vector.broadcast %c15_i32_39 : i32 to vector<8x512xi32>
    %79 = arith.cmpi slt, %4, %78 : vector<8x512xi32>
    %80 = arith.andi %77, %79 : vector<8x512xi1>
    %cst_40 = arith.constant 0.000000e+00 : f32
    %81 = vector.broadcast %cst_40 : f32 to vector<8x512xf32>
    %82 = arith.select %80, %75, %81 : vector<8x512xi1>, vector<8x512xf32>
    %c64 = arith.constant 64 : index
    %c0_41 = arith.constant 0 : index
    %83 = vector.load %arg5[%c64, %c0_41] : memref<72x512xf32, #tpu.memory_space<vmem>>, vector<8x512xf32>
    tpu.vector_store %arg5[%c64, %c0_41], %82 {strides = array<i32>} : memref<72x512xf32, #tpu.memory_space<vmem>>, vector<8x512xf32>,
    %c0_42 = arith.constant 0 : index
    %c0_43 = arith.constant 0 : index
    %c0_44 = arith.constant 0 : index
    %c0_45 = arith.constant 0 : index
    %84 = vector.load %arg2[%c0_42, %c0_43, %c0_44, %c0_45] : memref<3x2x8x72xbf16, #tpu.memory_space<vmem>>, vector<1x1x8x72xbf16>
    %85 = vector.shape_cast %84 : vector<1x1x8x72xbf16> to vector<8x72xbf16>
    %c0_46 = arith.constant 0 : index
    %c0_47 = arith.constant 0 : index
    %86 = vector.load %arg5[%c0_46, %c0_47] : memref<72x512xf32, #tpu.memory_space<vmem>>, vector<72x512xf32>
    %87 = arith.truncf %86 : vector<72x512xf32> to vector<72x512xbf16>
    %cst_48 = arith.constant dense<0.000000e+00> : vector<8x512xf32>
    %88 = tpu.matmul %85, %87, %cst_48 {dimension_numbers = #tpu.dot_dimension_numbers<[1], [0], [0], [1], [0, 0, 1, 1], [], []>} : vector<8x72xbf16>, vector<72x512xbf16>, vector<8x512xf32> -> vector<8x512xf32>
    %c0_49 = arith.constant 0 : index
    %c1 = arith.constant 1 : index
    %89 = vector.load %arg3[%c0_49, %c1] : memref<8x13xf32, #tpu.memory_space<vmem>>, vector<8x1xf32>
    %c0_50 = arith.constant 0 : index
    %c7 = arith.constant 7 : index
    %90 = vector.load %arg3[%c0_50, %c7] : memref<8x13xf32, #tpu.memory_space<vmem>>, vector<8x1xf32>
    %91 = vector.broadcast %89 : vector<8x1xf32> to vector<8x512xf32>
    %92 = arith.mulf %88, %91 : vector<8x512xf32>
    %93 = vector.broadcast %90 : vector<8x1xf32> to vector<8x512xf32>
    %94 = arith.addf %92, %93 : vector<8x512xf32>
    %cst_51 = arith.constant 0.000000e+00 : f32
    %95 = vector.broadcast %cst_51 : f32 to vector<8x512xf32>
    %96 = arith.maximumf %94, %95 : vector<8x512xf32>
    %c17_i32_52 = arith.constant 17 : i32
    %97 = tpu.dynamic_rotate %96 by %c17_i32_52 dim 1 : vector<8x512xf32>, i32 -> vector<8x512xf32>
    %c16_i32_53 = arith.constant 16 : i32
    %98 = vector.broadcast %c16_i32_53 : i32 to vector<8x512xi32>
    %99 = arith.cmpi sge, %2, %98 : vector<8x512xi32>
    %c1_i32_54 = arith.constant 1 : i32
    %100 = vector.broadcast %c1_i32_54 : i32 to vector<8x512xi32>
    %101 = arith.cmpi sge, %4, %100 : vector<8x512xi32>
    %102 = arith.andi %99, %101 : vector<8x512xi1>
    %cst_55 = arith.constant 0.000000e+00 : f32
    %103 = vector.broadcast %cst_55 : f32 to vector<8x512xf32>
    %104 = arith.select %102, %97, %103 : vector<8x512xi1>, vector<8x512xf32>
    %c0_56 = arith.constant 0 : index
    %c0_57 = arith.constant 0 : index
    %105 = vector.load %arg5[%c0_56, %c0_57] : memref<72x512xf32, #tpu.memory_space<vmem>>, vector<8x512xf32>
    tpu.vector_store %arg5[%c0_56, %c0_57], %104 {strides = array<i32>} : memref<72x512xf32, #tpu.memory_space<vmem>>, vector<8x512xf32>,
    %c16_i32_58 = arith.constant 16 : i32
    %106 = tpu.dynamic_rotate %96 by %c16_i32_58 dim 1 : vector<8x512xf32>, i32 -> vector<8x512xf32>
    %c16_i32_59 = arith.constant 16 : i32
    %107 = vector.broadcast %c16_i32_59 : i32 to vector<8x512xi32>
    %108 = arith.cmpi sge, %2, %107 : vector<8x512xi32>
    %cst_60 = arith.constant 0.000000e+00 : f32
    %109 = vector.broadcast %cst_60 : f32 to vector<8x512xf32>
    %110 = arith.select %108, %106, %109 : vector<8x512xi1>, vector<8x512xf32>
    %c8_61 = arith.constant 8 : index
    %c0_62 = arith.constant 0 : index
    %111 = vector.load %arg5[%c8_61, %c0_62] : memref<72x512xf32, #tpu.memory_space<vmem>>, vector<8x512xf32>
    tpu.vector_store %arg5[%c8_61, %c0_62], %110 {strides = array<i32>} : memref<72x512xf32, #tpu.memory_space<vmem>>, vector<8x512xf32>,
    %c15_i32_63 = arith.constant 15 : i32
    %112 = tpu.dynamic_rotate %96 by %c15_i32_63 dim 1 : vector<8x512xf32>, i32 -> vector<8x512xf32>
    %c16_i32_64 = arith.constant 16 : i32
    %113 = vector.broadcast %c16_i32_64 : i32 to vector<8x512xi32>
    %114 = arith.cmpi sge, %2, %113 : vector<8x512xi32>
    %c15_i32_65 = arith.constant 15 : i32
    %115 = vector.broadcast %c15_i32_65 : i32 to vector<8x512xi32>
    %116 = arith.cmpi slt, %4, %115 : vector<8x512xi32>
    %117 = arith.andi %114, %116 : vector<8x512xi1>
    %cst_66 = arith.constant 0.000000e+00 : f32
    %118 = vector.broadcast %cst_66 : f32 to vector<8x512xf32>
    %119 = arith.select %117, %112, %118 : vector<8x512xi1>, vector<8x512xf32>
    %c16_67 = arith.constant 16 : index
    %c0_68 = arith.constant 0 : index
    %120 = vector.load %arg5[%c16_67, %c0_68] : memref<72x512xf32, #tpu.memory_space<vmem>>, vector<8x512xf32>
    tpu.vector_store %arg5[%c16_67, %c0_68], %119 {strides = array<i32>} : memref<72x512xf32, #tpu.memory_space<vmem>>, vector<8x512xf32>,
    %c1_i32_69 = arith.constant 1 : i32
    %121 = tpu.dynamic_rotate %96 by %c1_i32_69 dim 1 : vector<8x512xf32>, i32 -> vector<8x512xf32>
    %c1_i32_70 = arith.constant 1 : i32
    %122 = vector.broadcast %c1_i32_70 : i32 to vector<8x512xi32>
    %123 = arith.cmpi sge, %4, %122 : vector<8x512xi32>
    %cst_71 = arith.constant 0.000000e+00 : f32
    %124 = vector.broadcast %cst_71 : f32 to vector<8x512xf32>
    %125 = arith.select %123, %121, %124 : vector<8x512xi1>, vector<8x512xf32>
    %c24_72 = arith.constant 24 : index
    %c0_73 = arith.constant 0 : index
    %126 = vector.load %arg5[%c24_72, %c0_73] : memref<72x512xf32, #tpu.memory_space<vmem>>, vector<8x512xf32>
    tpu.vector_store %arg5[%c24_72, %c0_73], %125 {strides = array<i32>} : memref<72x512xf32, #tpu.memory_space<vmem>>, vector<8x512xf32>,
    %c32_74 = arith.constant 32 : index
    %c0_75 = arith.constant 0 : index
    %127 = vector.load %arg5[%c32_74, %c0_75] : memref<72x512xf32, #tpu.memory_space<vmem>>, vector<8x512xf32>
    tpu.vector_store %arg5[%c32_74, %c0_75], %96 {strides = array<i32>} : memref<72x512xf32, #tpu.memory_space<vmem>>, vector<8x512xf32>,
    %c511_i32_76 = arith.constant 511 : i32
    %128 = tpu.dynamic_rotate %96 by %c511_i32_76 dim 1 : vector<8x512xf32>, i32 -> vector<8x512xf32>
    %c15_i32_77 = arith.constant 15 : i32
    %129 = vector.broadcast %c15_i32_77 : i32 to vector<8x512xi32>
    %130 = arith.cmpi slt, %4, %129 : vector<8x512xi32>
    %cst_78 = arith.constant 0.000000e+00 : f32
    %131 = vector.broadcast %cst_78 : f32 to vector<8x512xf32>
    %132 = arith.select %130, %128, %131 : vector<8x512xi1>, vector<8x512xf32>
    %c40_79 = arith.constant 40 : index
    %c0_80 = arith.constant 0 : index
    %133 = vector.load %arg5[%c40_79, %c0_80] : memref<72x512xf32, #tpu.memory_space<vmem>>, vector<8x512xf32>
    tpu.vector_store %arg5[%c40_79, %c0_80], %132 {strides = array<i32>} : memref<72x512xf32, #tpu.memory_space<vmem>>, vector<8x512xf32>,
    %c497_i32_81 = arith.constant 497 : i32
    %134 = tpu.dynamic_rotate %96 by %c497_i32_81 dim 1 : vector<8x512xf32>, i32 -> vector<8x512xf32>
    %c240_i32_82 = arith.constant 240 : i32
    %135 = vector.broadcast %c240_i32_82 : i32 to vector<8x512xi32>
    %136 = arith.cmpi slt, %2, %135 : vector<8x512xi32>
    %c1_i32_83 = arith.constant 1 : i32
    %137 = vector.broadcast %c1_i32_83 : i32 to vector<8x512xi32>
    %138 = arith.cmpi sge, %4, %137 : vector<8x512xi32>
    %139 = arith.andi %136, %138 : vector<8x512xi1>
    %cst_84 = arith.constant 0.000000e+00 : f32
    %140 = vector.broadcast %cst_84 : f32 to vector<8x512xf32>
    %141 = arith.select %139, %134, %140 : vector<8x512xi1>, vector<8x512xf32>
    %c48_85 = arith.constant 48 : index
    %c0_86 = arith.constant 0 : index
    %142 = vector.load %arg5[%c48_85, %c0_86] : memref<72x512xf32, #tpu.memory_space<vmem>>, vector<8x512xf32>
    tpu.vector_store %arg5[%c48_85, %c0_86], %141 {strides = array<i32>} : memref<72x512xf32, #tpu.memory_space<vmem>>, vector<8x512xf32>,
    %c496_i32_87 = arith.constant 496 : i32
    %143 = tpu.dynamic_rotate %96 by %c496_i32_87 dim 1 : vector<8x512xf32>, i32 -> vector<8x512xf32>
    %c240_i32_88 = arith.constant 240 : i32
    %144 = vector.broadcast %c240_i32_88 : i32 to vector<8x512xi32>
    %145 = arith.cmpi slt, %2, %144 : vector<8x512xi32>
    %cst_89 = arith.constant 0.000000e+00 : f32
    %146 = vector.broadcast %cst_89 : f32 to vector<8x512xf32>
    %147 = arith.select %145, %143, %146 : vector<8x512xi1>, vector<8x512xf32>
    %c56_90 = arith.constant 56 : index
    %c0_91 = arith.constant 0 : index
    %148 = vector.load %arg5[%c56_90, %c0_91] : memref<72x512xf32, #tpu.memory_space<vmem>>, vector<8x512xf32>
    tpu.vector_store %arg5[%c56_90, %c0_91], %147 {strides = array<i32>} : memref<72x512xf32, #tpu.memory_space<vmem>>, vector<8x512xf32>,
    %c495_i32_92 = arith.constant 495 : i32
    %149 = tpu.dynamic_rotate %96 by %c495_i32_92 dim 1 : vector<8x512xf32>, i32 -> vector<8x512xf32>
    %c240_i32_93 = arith.constant 240 : i32
    %150 = vector.broadcast %c240_i32_93 : i32 to vector<8x512xi32>
    %151 = arith.cmpi slt, %2, %150 : vector<8x512xi32>
    %c15_i32_94 = arith.constant 15 : i32
    %152 = vector.broadcast %c15_i32_94 : i32 to vector<8x512xi32>
    %153 = arith.cmpi slt, %4, %152 : vector<8x512xi32>
    %154 = arith.andi %151, %153 : vector<8x512xi1>
    %cst_95 = arith.constant 0.000000e+00 : f32
    %155 = vector.broadcast %cst_95 : f32 to vector<8x512xf32>
    %156 = arith.select %154, %149, %155 : vector<8x512xi1>, vector<8x512xf32>
    %c64_96 = arith.constant 64 : index
    %c0_97 = arith.constant 0 : index
    %157 = vector.load %arg5[%c64_96, %c0_97] : memref<72x512xf32, #tpu.memory_space<vmem>>, vector<8x512xf32>
    tpu.vector_store %arg5[%c64_96, %c0_97], %156 {strides = array<i32>} : memref<72x512xf32, #tpu.memory_space<vmem>>, vector<8x512xf32>,
    %c0_98 = arith.constant 0 : index
    %c1_99 = arith.constant 1 : index
    %c0_100 = arith.constant 0 : index
    %c0_101 = arith.constant 0 : index
    %158 = vector.load %arg2[%c0_98, %c1_99, %c0_100, %c0_101] : memref<3x2x8x72xbf16, #tpu.memory_space<vmem>>, vector<1x1x8x72xbf16>
    %159 = vector.shape_cast %158 : vector<1x1x8x72xbf16> to vector<8x72xbf16>
    %c0_102 = arith.constant 0 : index
    %c0_103 = arith.constant 0 : index
    %160 = vector.load %arg5[%c0_102, %c0_103] : memref<72x512xf32, #tpu.memory_space<vmem>>, vector<72x512xf32>
    %161 = arith.truncf %160 : vector<72x512xf32> to vector<72x512xbf16>
    %cst_104 = arith.constant dense<0.000000e+00> : vector<8x512xf32>
    %162 = tpu.matmul %159, %161, %cst_104 {dimension_numbers = #tpu.dot_dimension_numbers<[1], [0], [0], [1], [0, 0, 1, 1], [], []>} : vector<8x72xbf16>, vector<72x512xbf16>, vector<8x512xf32> -> vector<8x512xf32>
    %c0_105 = arith.constant 0 : index
    %c0_106 = arith.constant 0 : index
    %c0_107 = arith.constant 0 : index
    %163 = vector.load %arg4[%c0_105, %c0_106, %c0_107] : memref<1x8x512xf32, #tpu.memory_space<vmem>>, vector<1x8x512xf32>
    %164 = vector.shape_cast %163 : vector<1x8x512xf32> to vector<8x512xf32>
    %165 = arith.addf %164, %162 : vector<8x512xf32>
    %c0_108 = arith.constant 0 : index
    %c0_109 = arith.constant 0 : index
    %c0_110 = arith.constant 0 : index
    %166 = vector.load %arg4[%c0_108, %c0_109, %c0_110] : memref<1x8x512xf32, #tpu.memory_space<vmem>>, vector<1x8x512xf32>
    %167 = vector.shape_cast %166 : vector<1x8x512xf32> to vector<8x512xf32>
    %168 = vector.shape_cast %165 : vector<8x512xf32> to vector<1x8x512xf32>
    tpu.vector_store %arg4[%c0_108, %c0_109, %c0_110], %168 {strides = array<i32>} : memref<1x8x512xf32, #tpu.memory_space<vmem>>, vector<1x8x512xf32>,
    %c0_111 = arith.constant 0 : index
    %c0_112 = arith.constant 0 : index
    %c0_113 = arith.constant 0 : index
    %169 = vector.load %arg1[%c0_111, %c0_112, %c0_113] : memref<1x8x512xf32, #tpu.memory_space<vmem>>, vector<1x8x512xf32>
    %170 = vector.shape_cast %169 : vector<1x8x512xf32> to vector<8x512xf32>
    %c0_114 = arith.constant 0 : index
    %c2 = arith.constant 2 : index
    %171 = vector.load %arg3[%c0_114, %c2] : memref<8x13xf32, #tpu.memory_space<vmem>>, vector<8x1xf32>
    %c0_115 = arith.constant 0 : index
    %c8_116 = arith.constant 8 : index
    %172 = vector.load %arg3[%c0_115, %c8_116] : memref<8x13xf32, #tpu.memory_space<vmem>>, vector<8x1xf32>
    %173 = vector.broadcast %171 : vector<8x1xf32> to vector<8x512xf32>
    %174 = arith.mulf %170, %173 : vector<8x512xf32>
    %175 = vector.broadcast %172 : vector<8x1xf32> to vector<8x512xf32>
    %176 = arith.addf %174, %175 : vector<8x512xf32>
    %cst_117 = arith.constant 0.000000e+00 : f32
    %177 = vector.broadcast %cst_117 : f32 to vector<8x512xf32>
    %178 = arith.maximumf %176, %177 : vector<8x512xf32>
    %c51_i32 = arith.constant 51 : i32
    %179 = tpu.dynamic_rotate %178 by %c51_i32 dim 1 : vector<8x512xf32>, i32 -> vector<8x512xf32>
    %c48_i32 = arith.constant 48 : i32
    %180 = vector.broadcast %c48_i32 : i32 to vector<8x512xi32>
    %181 = arith.cmpi sge, %2, %180 : vector<8x512xi32>
    %c3_i32 = arith.constant 3 : i32
    %182 = vector.broadcast %c3_i32 : i32 to vector<8x512xi32>
    %183 = arith.cmpi sge, %4, %182 : vector<8x512xi32>
    %184 = arith.andi %181, %183 : vector<8x512xi1>
    %cst_118 = arith.constant 0.000000e+00 : f32
    %185 = vector.broadcast %cst_118 : f32 to vector<8x512xf32>
    %186 = arith.select %184, %179, %185 : vector<8x512xi1>, vector<8x512xf32>
    %c0_119 = arith.constant 0 : index
    %c0_120 = arith.constant 0 : index
    %187 = vector.load %arg5[%c0_119, %c0_120] : memref<72x512xf32, #tpu.memory_space<vmem>>, vector<8x512xf32>
    tpu.vector_store %arg5[%c0_119, %c0_120], %186 {strides = array<i32>} : memref<72x512xf32, #tpu.memory_space<vmem>>, vector<8x512xf32>,
    %c48_i32_121 = arith.constant 48 : i32
    %188 = tpu.dynamic_rotate %178 by %c48_i32_121 dim 1 : vector<8x512xf32>, i32 -> vector<8x512xf32>
    %c48_i32_122 = arith.constant 48 : i32
    %189 = vector.broadcast %c48_i32_122 : i32 to vector<8x512xi32>
    %190 = arith.cmpi sge, %2, %189 : vector<8x512xi32>
    %cst_123 = arith.constant 0.000000e+00 : f32
    %191 = vector.broadcast %cst_123 : f32 to vector<8x512xf32>
    %192 = arith.select %190, %188, %191 : vector<8x512xi1>, vector<8x512xf32>
    %c8_124 = arith.constant 8 : index
    %c0_125 = arith.constant 0 : index
    %193 = vector.load %arg5[%c8_124, %c0_125] : memref<72x512xf32, #tpu.memory_space<vmem>>, vector<8x512xf32>
    tpu.vector_store %arg5[%c8_124, %c0_125], %192 {strides = array<i32>} : memref<72x512xf32, #tpu.memory_space<vmem>>, vector<8x512xf32>,
    %c45_i32 = arith.constant 45 : i32
    %194 = tpu.dynamic_rotate %178 by %c45_i32 dim 1 : vector<8x512xf32>, i32 -> vector<8x512xf32>
    %c48_i32_126 = arith.constant 48 : i32
    %195 = vector.broadcast %c48_i32_126 : i32 to vector<8x512xi32>
    %196 = arith.cmpi sge, %2, %195 : vector<8x512xi32>
    %c13_i32 = arith.constant 13 : i32
    %197 = vector.broadcast %c13_i32 : i32 to vector<8x512xi32>
    %198 = arith.cmpi slt, %4, %197 : vector<8x512xi32>
    %199 = arith.andi %196, %198 : vector<8x512xi1>
    %cst_127 = arith.constant 0.000000e+00 : f32
    %200 = vector.broadcast %cst_127 : f32 to vector<8x512xf32>
    %201 = arith.select %199, %194, %200 : vector<8x512xi1>, vector<8x512xf32>
    %c16_128 = arith.constant 16 : index
    %c0_129 = arith.constant 0 : index
    %202 = vector.load %arg5[%c16_128, %c0_129] : memref<72x512xf32, #tpu.memory_space<vmem>>, vector<8x512xf32>
    tpu.vector_store %arg5[%c16_128, %c0_129], %201 {strides = array<i32>} : memref<72x512xf32, #tpu.memory_space<vmem>>, vector<8x512xf32>,
    %c3_i32_130 = arith.constant 3 : i32
    %203 = tpu.dynamic_rotate %178 by %c3_i32_130 dim 1 : vector<8x512xf32>, i32 -> vector<8x512xf32>
    %c3_i32_131 = arith.constant 3 : i32
    %204 = vector.broadcast %c3_i32_131 : i32 to vector<8x512xi32>
    %205 = arith.cmpi sge, %4, %204 : vector<8x512xi32>
    %cst_132 = arith.constant 0.000000e+00 : f32
    %206 = vector.broadcast %cst_132 : f32 to vector<8x512xf32>
    %207 = arith.select %205, %203, %206 : vector<8x512xi1>, vector<8x512xf32>
    %c24_133 = arith.constant 24 : index
    %c0_134 = arith.constant 0 : index
    %208 = vector.load %arg5[%c24_133, %c0_134] : memref<72x512xf32, #tpu.memory_space<vmem>>, vector<8x512xf32>
    tpu.vector_store %arg5[%c24_133, %c0_134], %207 {strides = array<i32>} : memref<72x512xf32, #tpu.memory_space<vmem>>, vector<8x512xf32>,
    %c32_135 = arith.constant 32 : index
    %c0_136 = arith.constant 0 : index
    %209 = vector.load %arg5[%c32_135, %c0_136] : memref<72x512xf32, #tpu.memory_space<vmem>>, vector<8x512xf32>
    tpu.vector_store %arg5[%c32_135, %c0_136], %178 {strides = array<i32>} : memref<72x512xf32, #tpu.memory_space<vmem>>, vector<8x512xf32>,
    %c509_i32 = arith.constant 509 : i32
    %210 = tpu.dynamic_rotate %178 by %c509_i32 dim 1 : vector<8x512xf32>, i32 -> vector<8x512xf32>
    %c13_i32_137 = arith.constant 13 : i32
    %211 = vector.broadcast %c13_i32_137 : i32 to vector<8x512xi32>
    %212 = arith.cmpi slt, %4, %211 : vector<8x512xi32>
    %cst_138 = arith.constant 0.000000e+00 : f32
    %213 = vector.broadcast %cst_138 : f32 to vector<8x512xf32>
    %214 = arith.select %212, %210, %213 : vector<8x512xi1>, vector<8x512xf32>
    %c40_139 = arith.constant 40 : index
    %c0_140 = arith.constant 0 : index
    %215 = vector.load %arg5[%c40_139, %c0_140] : memref<72x512xf32, #tpu.memory_space<vmem>>, vector<8x512xf32>
    tpu.vector_store %arg5[%c40_139, %c0_140], %214 {strides = array<i32>} : memref<72x512xf32, #tpu.memory_space<vmem>>, vector<8x512xf32>,
    %c467_i32 = arith.constant 467 : i32
    %216 = tpu.dynamic_rotate %178 by %c467_i32 dim 1 : vector<8x512xf32>, i32 -> vector<8x512xf32>
    %c208_i32 = arith.constant 208 : i32
    %217 = vector.broadcast %c208_i32 : i32 to vector<8x512xi32>
    %218 = arith.cmpi slt, %2, %217 : vector<8x512xi32>
    %c3_i32_141 = arith.constant 3 : i32
    %219 = vector.broadcast %c3_i32_141 : i32 to vector<8x512xi32>
    %220 = arith.cmpi sge, %4, %219 : vector<8x512xi32>
    %221 = arith.andi %218, %220 : vector<8x512xi1>
    %cst_142 = arith.constant 0.000000e+00 : f32
    %222 = vector.broadcast %cst_142 : f32 to vector<8x512xf32>
    %223 = arith.select %221, %216, %222 : vector<8x512xi1>, vector<8x512xf32>
    %c48_143 = arith.constant 48 : index
    %c0_144 = arith.constant 0 : index
    %224 = vector.load %arg5[%c48_143, %c0_144] : memref<72x512xf32, #tpu.memory_space<vmem>>, vector<8x512xf32>
    tpu.vector_store %arg5[%c48_143, %c0_144], %223 {strides = array<i32>} : memref<72x512xf32, #tpu.memory_space<vmem>>, vector<8x512xf32>,
    %c464_i32 = arith.constant 464 : i32
    %225 = tpu.dynamic_rotate %178 by %c464_i32 dim 1 : vector<8x512xf32>, i32 -> vector<8x512xf32>
    %c208_i32_145 = arith.constant 208 : i32
    %226 = vector.broadcast %c208_i32_145 : i32 to vector<8x512xi32>
    %227 = arith.cmpi slt, %2, %226 : vector<8x512xi32>
    %cst_146 = arith.constant 0.000000e+00 : f32
    %228 = vector.broadcast %cst_146 : f32 to vector<8x512xf32>
    %229 = arith.select %227, %225, %228 : vector<8x512xi1>, vector<8x512xf32>
    %c56_147 = arith.constant 56 : index
    %c0_148 = arith.constant 0 : index
    %230 = vector.load %arg5[%c56_147, %c0_148] : memref<72x512xf32, #tpu.memory_space<vmem>>, vector<8x512xf32>
    tpu.vector_store %arg5[%c56_147, %c0_148], %229 {strides = array<i32>} : memref<72x512xf32, #tpu.memory_space<vmem>>, vector<8x512xf32>,
    %c461_i32 = arith.constant 461 : i32
    %231 = tpu.dynamic_rotate %178 by %c461_i32 dim 1 : vector<8x512xf32>, i32 -> vector<8x512xf32>
    %c208_i32_149 = arith.constant 208 : i32
    %232 = vector.broadcast %c208_i32_149 : i32 to vector<8x512xi32>
    %233 = arith.cmpi slt, %2, %232 : vector<8x512xi32>
    %c13_i32_150 = arith.constant 13 : i32
    %234 = vector.broadcast %c13_i32_150 : i32 to vector<8x512xi32>
    %235 = arith.cmpi slt, %4, %234 : vector<8x512xi32>
    %236 = arith.andi %233, %235 : vector<8x512xi1>
    %cst_151 = arith.constant 0.000000e+00 : f32
    %237 = vector.broadcast %cst_151 : f32 to vector<8x512xf32>
    %238 = arith.select %236, %231, %237 : vector<8x512xi1>, vector<8x512xf32>
    %c64_152 = arith.constant 64 : index
    %c0_153 = arith.constant 0 : index
    %239 = vector.load %arg5[%c64_152, %c0_153] : memref<72x512xf32, #tpu.memory_space<vmem>>, vector<8x512xf32>
    tpu.vector_store %arg5[%c64_152, %c0_153], %238 {strides = array<i32>} : memref<72x512xf32, #tpu.memory_space<vmem>>, vector<8x512xf32>,
    %c1_154 = arith.constant 1 : index
    %c0_155 = arith.constant 0 : index
    %c0_156 = arith.constant 0 : index
    %c0_157 = arith.constant 0 : index
    %240 = vector.load %arg2[%c1_154, %c0_155, %c0_156, %c0_157] : memref<3x2x8x72xbf16, #tpu.memory_space<vmem>>, vector<1x1x8x72xbf16>
    %241 = vector.shape_cast %240 : vector<1x1x8x72xbf16> to vector<8x72xbf16>
    %c0_158 = arith.constant 0 : index
    %c0_159 = arith.constant 0 : index
    %242 = vector.load %arg5[%c0_158, %c0_159] : memref<72x512xf32, #tpu.memory_space<vmem>>, vector<72x512xf32>
    %243 = arith.truncf %242 : vector<72x512xf32> to vector<72x512xbf16>
    %cst_160 = arith.constant dense<0.000000e+00> : vector<8x512xf32>
    %244 = tpu.matmul %241, %243, %cst_160 {dimension_numbers = #tpu.dot_dimension_numbers<[1], [0], [0], [1], [0, 0, 1, 1], [], []>} : vector<8x72xbf16>, vector<72x512xbf16>, vector<8x512xf32> -> vector<8x512xf32>
    %c0_161 = arith.constant 0 : index
    %c3 = arith.constant 3 : index
    %245 = vector.load %arg3[%c0_161, %c3] : memref<8x13xf32, #tpu.memory_space<vmem>>, vector<8x1xf32>
    %c0_162 = arith.constant 0 : index
    %c9 = arith.constant 9 : index
    %246 = vector.load %arg3[%c0_162, %c9] : memref<8x13xf32, #tpu.memory_space<vmem>>, vector<8x1xf32>
    %247 = vector.broadcast %245 : vector<8x1xf32> to vector<8x512xf32>
    %248 = arith.mulf %244, %247 : vector<8x512xf32>
    %249 = vector.broadcast %246 : vector<8x1xf32> to vector<8x512xf32>
    %250 = arith.addf %248, %249 : vector<8x512xf32>
    %cst_163 = arith.constant 0.000000e+00 : f32
    %251 = vector.broadcast %cst_163 : f32 to vector<8x512xf32>
    %252 = arith.maximumf %250, %251 : vector<8x512xf32>
    %c51_i32_164 = arith.constant 51 : i32
    %253 = tpu.dynamic_rotate %252 by %c51_i32_164 dim 1 : vector<8x512xf32>, i32 -> vector<8x512xf32>
    %c48_i32_165 = arith.constant 48 : i32
    %254 = vector.broadcast %c48_i32_165 : i32 to vector<8x512xi32>
    %255 = arith.cmpi sge, %2, %254 : vector<8x512xi32>
    %c3_i32_166 = arith.constant 3 : i32
    %256 = vector.broadcast %c3_i32_166 : i32 to vector<8x512xi32>
    %257 = arith.cmpi sge, %4, %256 : vector<8x512xi32>
    %258 = arith.andi %255, %257 : vector<8x512xi1>
    %cst_167 = arith.constant 0.000000e+00 : f32
    %259 = vector.broadcast %cst_167 : f32 to vector<8x512xf32>
    %260 = arith.select %258, %253, %259 : vector<8x512xi1>, vector<8x512xf32>
    %c0_168 = arith.constant 0 : index
    %c0_169 = arith.constant 0 : index
    %261 = vector.load %arg5[%c0_168, %c0_169] : memref<72x512xf32, #tpu.memory_space<vmem>>, vector<8x512xf32>
    tpu.vector_store %arg5[%c0_168, %c0_169], %260 {strides = array<i32>} : memref<72x512xf32, #tpu.memory_space<vmem>>, vector<8x512xf32>,
    %c48_i32_170 = arith.constant 48 : i32
    %262 = tpu.dynamic_rotate %252 by %c48_i32_170 dim 1 : vector<8x512xf32>, i32 -> vector<8x512xf32>
    %c48_i32_171 = arith.constant 48 : i32
    %263 = vector.broadcast %c48_i32_171 : i32 to vector<8x512xi32>
    %264 = arith.cmpi sge, %2, %263 : vector<8x512xi32>
    %cst_172 = arith.constant 0.000000e+00 : f32
    %265 = vector.broadcast %cst_172 : f32 to vector<8x512xf32>
    %266 = arith.select %264, %262, %265 : vector<8x512xi1>, vector<8x512xf32>
    %c8_173 = arith.constant 8 : index
    %c0_174 = arith.constant 0 : index
    %267 = vector.load %arg5[%c8_173, %c0_174] : memref<72x512xf32, #tpu.memory_space<vmem>>, vector<8x512xf32>
    tpu.vector_store %arg5[%c8_173, %c0_174], %266 {strides = array<i32>} : memref<72x512xf32, #tpu.memory_space<vmem>>, vector<8x512xf32>,
    %c45_i32_175 = arith.constant 45 : i32
    %268 = tpu.dynamic_rotate %252 by %c45_i32_175 dim 1 : vector<8x512xf32>, i32 -> vector<8x512xf32>
    %c48_i32_176 = arith.constant 48 : i32
    %269 = vector.broadcast %c48_i32_176 : i32 to vector<8x512xi32>
    %270 = arith.cmpi sge, %2, %269 : vector<8x512xi32>
    %c13_i32_177 = arith.constant 13 : i32
    %271 = vector.broadcast %c13_i32_177 : i32 to vector<8x512xi32>
    %272 = arith.cmpi slt, %4, %271 : vector<8x512xi32>
    %273 = arith.andi %270, %272 : vector<8x512xi1>
    %cst_178 = arith.constant 0.000000e+00 : f32
    %274 = vector.broadcast %cst_178 : f32 to vector<8x512xf32>
    %275 = arith.select %273, %268, %274 : vector<8x512xi1>, vector<8x512xf32>
    %c16_179 = arith.constant 16 : index
    %c0_180 = arith.constant 0 : index
    %276 = vector.load %arg5[%c16_179, %c0_180] : memref<72x512xf32, #tpu.memory_space<vmem>>, vector<8x512xf32>
    tpu.vector_store %arg5[%c16_179, %c0_180], %275 {strides = array<i32>} : memref<72x512xf32, #tpu.memory_space<vmem>>, vector<8x512xf32>,
    %c3_i32_181 = arith.constant 3 : i32
    %277 = tpu.dynamic_rotate %252 by %c3_i32_181 dim 1 : vector<8x512xf32>, i32 -> vector<8x512xf32>
    %c3_i32_182 = arith.constant 3 : i32
    %278 = vector.broadcast %c3_i32_182 : i32 to vector<8x512xi32>
    %279 = arith.cmpi sge, %4, %278 : vector<8x512xi32>
    %cst_183 = arith.constant 0.000000e+00 : f32
    %280 = vector.broadcast %cst_183 : f32 to vector<8x512xf32>
    %281 = arith.select %279, %277, %280 : vector<8x512xi1>, vector<8x512xf32>
    %c24_184 = arith.constant 24 : index
    %c0_185 = arith.constant 0 : index
    %282 = vector.load %arg5[%c24_184, %c0_185] : memref<72x512xf32, #tpu.memory_space<vmem>>, vector<8x512xf32>
    tpu.vector_store %arg5[%c24_184, %c0_185], %281 {strides = array<i32>} : memref<72x512xf32, #tpu.memory_space<vmem>>, vector<8x512xf32>,
    %c32_186 = arith.constant 32 : index
    %c0_187 = arith.constant 0 : index
    %283 = vector.load %arg5[%c32_186, %c0_187] : memref<72x512xf32, #tpu.memory_space<vmem>>, vector<8x512xf32>
    tpu.vector_store %arg5[%c32_186, %c0_187], %252 {strides = array<i32>} : memref<72x512xf32, #tpu.memory_space<vmem>>, vector<8x512xf32>,
    %c509_i32_188 = arith.constant 509 : i32
    %284 = tpu.dynamic_rotate %252 by %c509_i32_188 dim 1 : vector<8x512xf32>, i32 -> vector<8x512xf32>
    %c13_i32_189 = arith.constant 13 : i32
    %285 = vector.broadcast %c13_i32_189 : i32 to vector<8x512xi32>
    %286 = arith.cmpi slt, %4, %285 : vector<8x512xi32>
    %cst_190 = arith.constant 0.000000e+00 : f32
    %287 = vector.broadcast %cst_190 : f32 to vector<8x512xf32>
    %288 = arith.select %286, %284, %287 : vector<8x512xi1>, vector<8x512xf32>
    %c40_191 = arith.constant 40 : index
    %c0_192 = arith.constant 0 : index
    %289 = vector.load %arg5[%c40_191, %c0_192] : memref<72x512xf32, #tpu.memory_space<vmem>>, vector<8x512xf32>
    tpu.vector_store %arg5[%c40_191, %c0_192], %288 {strides = array<i32>} : memref<72x512xf32, #tpu.memory_space<vmem>>, vector<8x512xf32>,
    %c467_i32_193 = arith.constant 467 : i32
    %290 = tpu.dynamic_rotate %252 by %c467_i32_193 dim 1 : vector<8x512xf32>, i32 -> vector<8x512xf32>
    %c208_i32_194 = arith.constant 208 : i32
    %291 = vector.broadcast %c208_i32_194 : i32 to vector<8x512xi32>
    %292 = arith.cmpi slt, %2, %291 : vector<8x512xi32>
    %c3_i32_195 = arith.constant 3 : i32
    %293 = vector.broadcast %c3_i32_195 : i32 to vector<8x512xi32>
    %294 = arith.cmpi sge, %4, %293 : vector<8x512xi32>
    %295 = arith.andi %292, %294 : vector<8x512xi1>
    %cst_196 = arith.constant 0.000000e+00 : f32
    %296 = vector.broadcast %cst_196 : f32 to vector<8x512xf32>
    %297 = arith.select %295, %290, %296 : vector<8x512xi1>, vector<8x512xf32>
    %c48_197 = arith.constant 48 : index
    %c0_198 = arith.constant 0 : index
    %298 = vector.load %arg5[%c48_197, %c0_198] : memref<72x512xf32, #tpu.memory_space<vmem>>, vector<8x512xf32>
    tpu.vector_store %arg5[%c48_197, %c0_198], %297 {strides = array<i32>} : memref<72x512xf32, #tpu.memory_space<vmem>>, vector<8x512xf32>,
    %c464_i32_199 = arith.constant 464 : i32
    %299 = tpu.dynamic_rotate %252 by %c464_i32_199 dim 1 : vector<8x512xf32>, i32 -> vector<8x512xf32>
    %c208_i32_200 = arith.constant 208 : i32
    %300 = vector.broadcast %c208_i32_200 : i32 to vector<8x512xi32>
    %301 = arith.cmpi slt, %2, %300 : vector<8x512xi32>
    %cst_201 = arith.constant 0.000000e+00 : f32
    %302 = vector.broadcast %cst_201 : f32 to vector<8x512xf32>
    %303 = arith.select %301, %299, %302 : vector<8x512xi1>, vector<8x512xf32>
    %c56_202 = arith.constant 56 : index
    %c0_203 = arith.constant 0 : index
    %304 = vector.load %arg5[%c56_202, %c0_203] : memref<72x512xf32, #tpu.memory_space<vmem>>, vector<8x512xf32>
    tpu.vector_store %arg5[%c56_202, %c0_203], %303 {strides = array<i32>} : memref<72x512xf32, #tpu.memory_space<vmem>>, vector<8x512xf32>,
    %c461_i32_204 = arith.constant 461 : i32
    %305 = tpu.dynamic_rotate %252 by %c461_i32_204 dim 1 : vector<8x512xf32>, i32 -> vector<8x512xf32>
    %c208_i32_205 = arith.constant 208 : i32
    %306 = vector.broadcast %c208_i32_205 : i32 to vector<8x512xi32>
    %307 = arith.cmpi slt, %2, %306 : vector<8x512xi32>
    %c13_i32_206 = arith.constant 13 : i32
    %308 = vector.broadcast %c13_i32_206 : i32 to vector<8x512xi32>
    %309 = arith.cmpi slt, %4, %308 : vector<8x512xi32>
    %310 = arith.andi %307, %309 : vector<8x512xi1>
    %cst_207 = arith.constant 0.000000e+00 : f32
    %311 = vector.broadcast %cst_207 : f32 to vector<8x512xf32>
    %312 = arith.select %310, %305, %311 : vector<8x512xi1>, vector<8x512xf32>
    %c64_208 = arith.constant 64 : index
    %c0_209 = arith.constant 0 : index
    %313 = vector.load %arg5[%c64_208, %c0_209] : memref<72x512xf32, #tpu.memory_space<vmem>>, vector<8x512xf32>
    tpu.vector_store %arg5[%c64_208, %c0_209], %312 {strides = array<i32>} : memref<72x512xf32, #tpu.memory_space<vmem>>, vector<8x512xf32>,
    %c1_210 = arith.constant 1 : index
    %c1_211 = arith.constant 1 : index
    %c0_212 = arith.constant 0 : index
    %c0_213 = arith.constant 0 : index
    %314 = vector.load %arg2[%c1_210, %c1_211, %c0_212, %c0_213] : memref<3x2x8x72xbf16, #tpu.memory_space<vmem>>, vector<1x1x8x72xbf16>
    %315 = vector.shape_cast %314 : vector<1x1x8x72xbf16> to vector<8x72xbf16>
    %c0_214 = arith.constant 0 : index
    %c0_215 = arith.constant 0 : index
    %316 = vector.load %arg5[%c0_214, %c0_215] : memref<72x512xf32, #tpu.memory_space<vmem>>, vector<72x512xf32>
    %317 = arith.truncf %316 : vector<72x512xf32> to vector<72x512xbf16>
    %cst_216 = arith.constant dense<0.000000e+00> : vector<8x512xf32>
    %318 = tpu.matmul %315, %317, %cst_216 {dimension_numbers = #tpu.dot_dimension_numbers<[1], [0], [0], [1], [0, 0, 1, 1], [], []>} : vector<8x72xbf16>, vector<72x512xbf16>, vector<8x512xf32> -> vector<8x512xf32>
    %c0_217 = arith.constant 0 : index
    %c0_218 = arith.constant 0 : index
    %c0_219 = arith.constant 0 : index
    %319 = vector.load %arg4[%c0_217, %c0_218, %c0_219] : memref<1x8x512xf32, #tpu.memory_space<vmem>>, vector<1x8x512xf32>
    %320 = vector.shape_cast %319 : vector<1x8x512xf32> to vector<8x512xf32>
    %321 = arith.addf %320, %318 : vector<8x512xf32>
    %c0_220 = arith.constant 0 : index
    %c0_221 = arith.constant 0 : index
    %c0_222 = arith.constant 0 : index
    %322 = vector.load %arg4[%c0_220, %c0_221, %c0_222] : memref<1x8x512xf32, #tpu.memory_space<vmem>>, vector<1x8x512xf32>
    %323 = vector.shape_cast %322 : vector<1x8x512xf32> to vector<8x512xf32>
    %324 = vector.shape_cast %321 : vector<8x512xf32> to vector<1x8x512xf32>
    tpu.vector_store %arg4[%c0_220, %c0_221, %c0_222], %324 {strides = array<i32>} : memref<1x8x512xf32, #tpu.memory_space<vmem>>, vector<1x8x512xf32>,
    %c0_223 = arith.constant 0 : index
    %c0_224 = arith.constant 0 : index
    %c0_225 = arith.constant 0 : index
    %325 = vector.load %arg1[%c0_223, %c0_224, %c0_225] : memref<1x8x512xf32, #tpu.memory_space<vmem>>, vector<1x8x512xf32>
    %326 = vector.shape_cast %325 : vector<1x8x512xf32> to vector<8x512xf32>
    %c0_226 = arith.constant 0 : index
    %c4 = arith.constant 4 : index
    %327 = vector.load %arg3[%c0_226, %c4] : memref<8x13xf32, #tpu.memory_space<vmem>>, vector<8x1xf32>
    %c0_227 = arith.constant 0 : index
    %c10 = arith.constant 10 : index
    %328 = vector.load %arg3[%c0_227, %c10] : memref<8x13xf32, #tpu.memory_space<vmem>>, vector<8x1xf32>
    %329 = vector.broadcast %327 : vector<8x1xf32> to vector<8x512xf32>
    %330 = arith.mulf %326, %329 : vector<8x512xf32>
    %331 = vector.broadcast %328 : vector<8x1xf32> to vector<8x512xf32>
    %332 = arith.addf %330, %331 : vector<8x512xf32>
    %cst_228 = arith.constant 0.000000e+00 : f32
    %333 = vector.broadcast %cst_228 : f32 to vector<8x512xf32>
    %334 = arith.maximumf %332, %333 : vector<8x512xf32>
    %c255_i32_229 = arith.constant 255 : i32
    %335 = tpu.dynamic_rotate %334 by %c255_i32_229 dim 1 : vector<8x512xf32>, i32 -> vector<8x512xf32>
    %c240_i32_230 = arith.constant 240 : i32
    %336 = vector.broadcast %c240_i32_230 : i32 to vector<8x512xi32>
    %337 = arith.cmpi sge, %2, %336 : vector<8x512xi32>
    %c15_i32_231 = arith.constant 15 : i32
    %338 = vector.broadcast %c15_i32_231 : i32 to vector<8x512xi32>
    %339 = arith.cmpi sge, %4, %338 : vector<8x512xi32>
    %340 = arith.andi %337, %339 : vector<8x512xi1>
    %cst_232 = arith.constant 0.000000e+00 : f32
    %341 = vector.broadcast %cst_232 : f32 to vector<8x512xf32>
    %342 = arith.select %340, %335, %341 : vector<8x512xi1>, vector<8x512xf32>
    %c0_233 = arith.constant 0 : index
    %c0_234 = arith.constant 0 : index
    %343 = vector.load %arg5[%c0_233, %c0_234] : memref<72x512xf32, #tpu.memory_space<vmem>>, vector<8x512xf32>
    tpu.vector_store %arg5[%c0_233, %c0_234], %342 {strides = array<i32>} : memref<72x512xf32, #tpu.memory_space<vmem>>, vector<8x512xf32>,
    %c240_i32_235 = arith.constant 240 : i32
    %344 = tpu.dynamic_rotate %334 by %c240_i32_235 dim 1 : vector<8x512xf32>, i32 -> vector<8x512xf32>
    %c240_i32_236 = arith.constant 240 : i32
    %345 = vector.broadcast %c240_i32_236 : i32 to vector<8x512xi32>
    %346 = arith.cmpi sge, %2, %345 : vector<8x512xi32>
    %cst_237 = arith.constant 0.000000e+00 : f32
    %347 = vector.broadcast %cst_237 : f32 to vector<8x512xf32>
    %348 = arith.select %346, %344, %347 : vector<8x512xi1>, vector<8x512xf32>
    %c8_238 = arith.constant 8 : index
    %c0_239 = arith.constant 0 : index
    %349 = vector.load %arg5[%c8_238, %c0_239] : memref<72x512xf32, #tpu.memory_space<vmem>>, vector<8x512xf32>
    tpu.vector_store %arg5[%c8_238, %c0_239], %348 {strides = array<i32>} : memref<72x512xf32, #tpu.memory_space<vmem>>, vector<8x512xf32>,
    %c225_i32 = arith.constant 225 : i32
    %350 = tpu.dynamic_rotate %334 by %c225_i32 dim 1 : vector<8x512xf32>, i32 -> vector<8x512xf32>
    %c240_i32_240 = arith.constant 240 : i32
    %351 = vector.broadcast %c240_i32_240 : i32 to vector<8x512xi32>
    %352 = arith.cmpi sge, %2, %351 : vector<8x512xi32>
    %c1_i32_241 = arith.constant 1 : i32
    %353 = vector.broadcast %c1_i32_241 : i32 to vector<8x512xi32>
    %354 = arith.cmpi slt, %4, %353 : vector<8x512xi32>
    %355 = arith.andi %352, %354 : vector<8x512xi1>
    %cst_242 = arith.constant 0.000000e+00 : f32
    %356 = vector.broadcast %cst_242 : f32 to vector<8x512xf32>
    %357 = arith.select %355, %350, %356 : vector<8x512xi1>, vector<8x512xf32>
    %c16_243 = arith.constant 16 : index
    %c0_244 = arith.constant 0 : index
    %358 = vector.load %arg5[%c16_243, %c0_244] : memref<72x512xf32, #tpu.memory_space<vmem>>, vector<8x512xf32>
    tpu.vector_store %arg5[%c16_243, %c0_244], %357 {strides = array<i32>} : memref<72x512xf32, #tpu.memory_space<vmem>>, vector<8x512xf32>,
    %c15_i32_245 = arith.constant 15 : i32
    %359 = tpu.dynamic_rotate %334 by %c15_i32_245 dim 1 : vector<8x512xf32>, i32 -> vector<8x512xf32>
    %c15_i32_246 = arith.constant 15 : i32
    %360 = vector.broadcast %c15_i32_246 : i32 to vector<8x512xi32>
    %361 = arith.cmpi sge, %4, %360 : vector<8x512xi32>
    %cst_247 = arith.constant 0.000000e+00 : f32
    %362 = vector.broadcast %cst_247 : f32 to vector<8x512xf32>
    %363 = arith.select %361, %359, %362 : vector<8x512xi1>, vector<8x512xf32>
    %c24_248 = arith.constant 24 : index
    %c0_249 = arith.constant 0 : index
    %364 = vector.load %arg5[%c24_248, %c0_249] : memref<72x512xf32, #tpu.memory_space<vmem>>, vector<8x512xf32>
    tpu.vector_store %arg5[%c24_248, %c0_249], %363 {strides = array<i32>} : memref<72x512xf32, #tpu.memory_space<vmem>>, vector<8x512xf32>,
    %c32_250 = arith.constant 32 : index
    %c0_251 = arith.constant 0 : index
    %365 = vector.load %arg5[%c32_250, %c0_251] : memref<72x512xf32, #tpu.memory_space<vmem>>, vector<8x512xf32>
    tpu.vector_store %arg5[%c32_250, %c0_251], %334 {strides = array<i32>} : memref<72x512xf32, #tpu.memory_space<vmem>>, vector<8x512xf32>,
    %c497_i32_252 = arith.constant 497 : i32
    %366 = tpu.dynamic_rotate %334 by %c497_i32_252 dim 1 : vector<8x512xf32>, i32 -> vector<8x512xf32>
    %c1_i32_253 = arith.constant 1 : i32
    %367 = vector.broadcast %c1_i32_253 : i32 to vector<8x512xi32>
    %368 = arith.cmpi slt, %4, %367 : vector<8x512xi32>
    %cst_254 = arith.constant 0.000000e+00 : f32
    %369 = vector.broadcast %cst_254 : f32 to vector<8x512xf32>
    %370 = arith.select %368, %366, %369 : vector<8x512xi1>, vector<8x512xf32>
    %c40_255 = arith.constant 40 : index
    %c0_256 = arith.constant 0 : index
    %371 = vector.load %arg5[%c40_255, %c0_256] : memref<72x512xf32, #tpu.memory_space<vmem>>, vector<8x512xf32>
    tpu.vector_store %arg5[%c40_255, %c0_256], %370 {strides = array<i32>} : memref<72x512xf32, #tpu.memory_space<vmem>>, vector<8x512xf32>,
    %c287_i32 = arith.constant 287 : i32
    %372 = tpu.dynamic_rotate %334 by %c287_i32 dim 1 : vector<8x512xf32>, i32 -> vector<8x512xf32>
    %c16_i32_257 = arith.constant 16 : i32
    %373 = vector.broadcast %c16_i32_257 : i32 to vector<8x512xi32>
    %374 = arith.cmpi slt, %2, %373 : vector<8x512xi32>
    %c15_i32_258 = arith.constant 15 : i32
    %375 = vector.broadcast %c15_i32_258 : i32 to vector<8x512xi32>
    %376 = arith.cmpi sge, %4, %375 : vector<8x512xi32>
    %377 = arith.andi %374, %376 : vector<8x512xi1>
    %cst_259 = arith.constant 0.000000e+00 : f32
    %378 = vector.broadcast %cst_259 : f32 to vector<8x512xf32>
    %379 = arith.select %377, %372, %378 : vector<8x512xi1>, vector<8x512xf32>
    %c48_260 = arith.constant 48 : index
    %c0_261 = arith.constant 0 : index
    %380 = vector.load %arg5[%c48_260, %c0_261] : memref<72x512xf32, #tpu.memory_space<vmem>>, vector<8x512xf32>
    tpu.vector_store %arg5[%c48_260, %c0_261], %379 {strides = array<i32>} : memref<72x512xf32, #tpu.memory_space<vmem>>, vector<8x512xf32>,
    %c272_i32 = arith.constant 272 : i32
    %381 = tpu.dynamic_rotate %334 by %c272_i32 dim 1 : vector<8x512xf32>, i32 -> vector<8x512xf32>
    %c16_i32_262 = arith.constant 16 : i32
    %382 = vector.broadcast %c16_i32_262 : i32 to vector<8x512xi32>
    %383 = arith.cmpi slt, %2, %382 : vector<8x512xi32>
    %cst_263 = arith.constant 0.000000e+00 : f32
    %384 = vector.broadcast %cst_263 : f32 to vector<8x512xf32>
    %385 = arith.select %383, %381, %384 : vector<8x512xi1>, vector<8x512xf32>
    %c56_264 = arith.constant 56 : index
    %c0_265 = arith.constant 0 : index
    %386 = vector.load %arg5[%c56_264, %c0_265] : memref<72x512xf32, #tpu.memory_space<vmem>>, vector<8x512xf32>
    tpu.vector_store %arg5[%c56_264, %c0_265], %385 {strides = array<i32>} : memref<72x512xf32, #tpu.memory_space<vmem>>, vector<8x512xf32>,
    %c257_i32 = arith.constant 257 : i32
    %387 = tpu.dynamic_rotate %334 by %c257_i32 dim 1 : vector<8x512xf32>, i32 -> vector<8x512xf32>
    %c16_i32_266 = arith.constant 16 : i32
    %388 = vector.broadcast %c16_i32_266 : i32 to vector<8x512xi32>
    %389 = arith.cmpi slt, %2, %388 : vector<8x512xi32>
    %c1_i32_267 = arith.constant 1 : i32
    %390 = vector.broadcast %c1_i32_267 : i32 to vector<8x512xi32>
    %391 = arith.cmpi slt, %4, %390 : vector<8x512xi32>
    %392 = arith.andi %389, %391 : vector<8x512xi1>
    %cst_268 = arith.constant 0.000000e+00 : f32
    %393 = vector.broadcast %cst_268 : f32 to vector<8x512xf32>
    %394 = arith.select %392, %387, %393 : vector<8x512xi1>, vector<8x512xf32>
    %c64_269 = arith.constant 64 : index
    %c0_270 = arith.constant 0 : index
    %395 = vector.load %arg5[%c64_269, %c0_270] : memref<72x512xf32, #tpu.memory_space<vmem>>, vector<8x512xf32>
    tpu.vector_store %arg5[%c64_269, %c0_270], %394 {strides = array<i32>} : memref<72x512xf32, #tpu.memory_space<vmem>>, vector<8x512xf32>,
    %c2_271 = arith.constant 2 : index
    %c0_272 = arith.constant 0 : index
    %c0_273 = arith.constant 0 : index
    %c0_274 = arith.constant 0 : index
    %396 = vector.load %arg2[%c2_271, %c0_272, %c0_273, %c0_274] : memref<3x2x8x72xbf16, #tpu.memory_space<vmem>>, vector<1x1x8x72xbf16>
    %397 = vector.shape_cast %396 : vector<1x1x8x72xbf16> to vector<8x72xbf16>
    %c0_275 = arith.constant 0 : index
    %c0_276 = arith.constant 0 : index
    %398 = vector.load %arg5[%c0_275, %c0_276] : memref<72x512xf32, #tpu.memory_space<vmem>>, vector<72x512xf32>
    %399 = arith.truncf %398 : vector<72x512xf32> to vector<72x512xbf16>
    %cst_277 = arith.constant dense<0.000000e+00> : vector<8x512xf32>
    %400 = tpu.matmul %397, %399, %cst_277 {dimension_numbers = #tpu.dot_dimension_numbers<[1], [0], [0], [1], [0, 0, 1, 1], [], []>} : vector<8x72xbf16>, vector<72x512xbf16>, vector<8x512xf32> -> vector<8x512xf32>
    %c0_278 = arith.constant 0 : index
    %c5 = arith.constant 5 : index
    %401 = vector.load %arg3[%c0_278, %c5] : memref<8x13xf32, #tpu.memory_space<vmem>>, vector<8x1xf32>
    %c0_279 = arith.constant 0 : index
    %c11 = arith.constant 11 : index
    %402 = vector.load %arg3[%c0_279, %c11] : memref<8x13xf32, #tpu.memory_space<vmem>>, vector<8x1xf32>
    %403 = vector.broadcast %401 : vector<8x1xf32> to vector<8x512xf32>
    %404 = arith.mulf %400, %403 : vector<8x512xf32>
    %405 = vector.broadcast %402 : vector<8x1xf32> to vector<8x512xf32>
    %406 = arith.addf %404, %405 : vector<8x512xf32>
    %cst_280 = arith.constant 0.000000e+00 : f32
    %407 = vector.broadcast %cst_280 : f32 to vector<8x512xf32>
    %408 = arith.maximumf %406, %407 : vector<8x512xf32>
    %c255_i32_281 = arith.constant 255 : i32
    %409 = tpu.dynamic_rotate %408 by %c255_i32_281 dim 1 : vector<8x512xf32>, i32 -> vector<8x512xf32>
    %c240_i32_282 = arith.constant 240 : i32
    %410 = vector.broadcast %c240_i32_282 : i32 to vector<8x512xi32>
    %411 = arith.cmpi sge, %2, %410 : vector<8x512xi32>
    %c15_i32_283 = arith.constant 15 : i32
    %412 = vector.broadcast %c15_i32_283 : i32 to vector<8x512xi32>
    %413 = arith.cmpi sge, %4, %412 : vector<8x512xi32>
    %414 = arith.andi %411, %413 : vector<8x512xi1>
    %cst_284 = arith.constant 0.000000e+00 : f32
    %415 = vector.broadcast %cst_284 : f32 to vector<8x512xf32>
    %416 = arith.select %414, %409, %415 : vector<8x512xi1>, vector<8x512xf32>
    %c0_285 = arith.constant 0 : index
    %c0_286 = arith.constant 0 : index
    %417 = vector.load %arg5[%c0_285, %c0_286] : memref<72x512xf32, #tpu.memory_space<vmem>>, vector<8x512xf32>
    tpu.vector_store %arg5[%c0_285, %c0_286], %416 {strides = array<i32>} : memref<72x512xf32, #tpu.memory_space<vmem>>, vector<8x512xf32>,
    %c240_i32_287 = arith.constant 240 : i32
    %418 = tpu.dynamic_rotate %408 by %c240_i32_287 dim 1 : vector<8x512xf32>, i32 -> vector<8x512xf32>
    %c240_i32_288 = arith.constant 240 : i32
    %419 = vector.broadcast %c240_i32_288 : i32 to vector<8x512xi32>
    %420 = arith.cmpi sge, %2, %419 : vector<8x512xi32>
    %cst_289 = arith.constant 0.000000e+00 : f32
    %421 = vector.broadcast %cst_289 : f32 to vector<8x512xf32>
    %422 = arith.select %420, %418, %421 : vector<8x512xi1>, vector<8x512xf32>
    %c8_290 = arith.constant 8 : index
    %c0_291 = arith.constant 0 : index
    %423 = vector.load %arg5[%c8_290, %c0_291] : memref<72x512xf32, #tpu.memory_space<vmem>>, vector<8x512xf32>
    tpu.vector_store %arg5[%c8_290, %c0_291], %422 {strides = array<i32>} : memref<72x512xf32, #tpu.memory_space<vmem>>, vector<8x512xf32>,
    %c225_i32_292 = arith.constant 225 : i32
    %424 = tpu.dynamic_rotate %408 by %c225_i32_292 dim 1 : vector<8x512xf32>, i32 -> vector<8x512xf32>
    %c240_i32_293 = arith.constant 240 : i32
    %425 = vector.broadcast %c240_i32_293 : i32 to vector<8x512xi32>
    %426 = arith.cmpi sge, %2, %425 : vector<8x512xi32>
    %c1_i32_294 = arith.constant 1 : i32
    %427 = vector.broadcast %c1_i32_294 : i32 to vector<8x512xi32>
    %428 = arith.cmpi slt, %4, %427 : vector<8x512xi32>
    %429 = arith.andi %426, %428 : vector<8x512xi1>
    %cst_295 = arith.constant 0.000000e+00 : f32
    %430 = vector.broadcast %cst_295 : f32 to vector<8x512xf32>
    %431 = arith.select %429, %424, %430 : vector<8x512xi1>, vector<8x512xf32>
    %c16_296 = arith.constant 16 : index
    %c0_297 = arith.constant 0 : index
    %432 = vector.load %arg5[%c16_296, %c0_297] : memref<72x512xf32, #tpu.memory_space<vmem>>, vector<8x512xf32>
    tpu.vector_store %arg5[%c16_296, %c0_297], %431 {strides = array<i32>} : memref<72x512xf32, #tpu.memory_space<vmem>>, vector<8x512xf32>,
    %c15_i32_298 = arith.constant 15 : i32
    %433 = tpu.dynamic_rotate %408 by %c15_i32_298 dim 1 : vector<8x512xf32>, i32 -> vector<8x512xf32>
    %c15_i32_299 = arith.constant 15 : i32
    %434 = vector.broadcast %c15_i32_299 : i32 to vector<8x512xi32>
    %435 = arith.cmpi sge, %4, %434 : vector<8x512xi32>
    %cst_300 = arith.constant 0.000000e+00 : f32
    %436 = vector.broadcast %cst_300 : f32 to vector<8x512xf32>
    %437 = arith.select %435, %433, %436 : vector<8x512xi1>, vector<8x512xf32>
    %c24_301 = arith.constant 24 : index
    %c0_302 = arith.constant 0 : index
    %438 = vector.load %arg5[%c24_301, %c0_302] : memref<72x512xf32, #tpu.memory_space<vmem>>, vector<8x512xf32>
    tpu.vector_store %arg5[%c24_301, %c0_302], %437 {strides = array<i32>} : memref<72x512xf32, #tpu.memory_space<vmem>>, vector<8x512xf32>,
    %c32_303 = arith.constant 32 : index
    %c0_304 = arith.constant 0 : index
    %439 = vector.load %arg5[%c32_303, %c0_304] : memref<72x512xf32, #tpu.memory_space<vmem>>, vector<8x512xf32>
    tpu.vector_store %arg5[%c32_303, %c0_304], %408 {strides = array<i32>} : memref<72x512xf32, #tpu.memory_space<vmem>>, vector<8x512xf32>,
    %c497_i32_305 = arith.constant 497 : i32
    %440 = tpu.dynamic_rotate %408 by %c497_i32_305 dim 1 : vector<8x512xf32>, i32 -> vector<8x512xf32>
    %c1_i32_306 = arith.constant 1 : i32
    %441 = vector.broadcast %c1_i32_306 : i32 to vector<8x512xi32>
    %442 = arith.cmpi slt, %4, %441 : vector<8x512xi32>
    %cst_307 = arith.constant 0.000000e+00 : f32
    %443 = vector.broadcast %cst_307 : f32 to vector<8x512xf32>
    %444 = arith.select %442, %440, %443 : vector<8x512xi1>, vector<8x512xf32>
    %c40_308 = arith.constant 40 : index
    %c0_309 = arith.constant 0 : index
    %445 = vector.load %arg5[%c40_308, %c0_309] : memref<72x512xf32, #tpu.memory_space<vmem>>, vector<8x512xf32>
    tpu.vector_store %arg5[%c40_308, %c0_309], %444 {strides = array<i32>} : memref<72x512xf32, #tpu.memory_space<vmem>>, vector<8x512xf32>,
    %c287_i32_310 = arith.constant 287 : i32
    %446 = tpu.dynamic_rotate %408 by %c287_i32_310 dim 1 : vector<8x512xf32>, i32 -> vector<8x512xf32>
    %c16_i32_311 = arith.constant 16 : i32
    %447 = vector.broadcast %c16_i32_311 : i32 to vector<8x512xi32>
    %448 = arith.cmpi slt, %2, %447 : vector<8x512xi32>
    %c15_i32_312 = arith.constant 15 : i32
    %449 = vector.broadcast %c15_i32_312 : i32 to vector<8x512xi32>
    %450 = arith.cmpi sge, %4, %449 : vector<8x512xi32>
    %451 = arith.andi %448, %450 : vector<8x512xi1>
    %cst_313 = arith.constant 0.000000e+00 : f32
    %452 = vector.broadcast %cst_313 : f32 to vector<8x512xf32>
    %453 = arith.select %451, %446, %452 : vector<8x512xi1>, vector<8x512xf32>
    %c48_314 = arith.constant 48 : index
    %c0_315 = arith.constant 0 : index
    %454 = vector.load %arg5[%c48_314, %c0_315] : memref<72x512xf32, #tpu.memory_space<vmem>>, vector<8x512xf32>
    tpu.vector_store %arg5[%c48_314, %c0_315], %453 {strides = array<i32>} : memref<72x512xf32, #tpu.memory_space<vmem>>, vector<8x512xf32>,
    %c272_i32_316 = arith.constant 272 : i32
    %455 = tpu.dynamic_rotate %408 by %c272_i32_316 dim 1 : vector<8x512xf32>, i32 -> vector<8x512xf32>
    %c16_i32_317 = arith.constant 16 : i32
    %456 = vector.broadcast %c16_i32_317 : i32 to vector<8x512xi32>
    %457 = arith.cmpi slt, %2, %456 : vector<8x512xi32>
    %cst_318 = arith.constant 0.000000e+00 : f32
    %458 = vector.broadcast %cst_318 : f32 to vector<8x512xf32>
    %459 = arith.select %457, %455, %458 : vector<8x512xi1>, vector<8x512xf32>
    %c56_319 = arith.constant 56 : index
    %c0_320 = arith.constant 0 : index
    %460 = vector.load %arg5[%c56_319, %c0_320] : memref<72x512xf32, #tpu.memory_space<vmem>>, vector<8x512xf32>
    tpu.vector_store %arg5[%c56_319, %c0_320], %459 {strides = array<i32>} : memref<72x512xf32, #tpu.memory_space<vmem>>, vector<8x512xf32>,
    %c257_i32_321 = arith.constant 257 : i32
    %461 = tpu.dynamic_rotate %408 by %c257_i32_321 dim 1 : vector<8x512xf32>, i32 -> vector<8x512xf32>
    %c16_i32_322 = arith.constant 16 : i32
    %462 = vector.broadcast %c16_i32_322 : i32 to vector<8x512xi32>
    %463 = arith.cmpi slt, %2, %462 : vector<8x512xi32>
    %c1_i32_323 = arith.constant 1 : i32
    %464 = vector.broadcast %c1_i32_323 : i32 to vector<8x512xi32>
    %465 = arith.cmpi slt, %4, %464 : vector<8x512xi32>
    %466 = arith.andi %463, %465 : vector<8x512xi1>
    %cst_324 = arith.constant 0.000000e+00 : f32
    %467 = vector.broadcast %cst_324 : f32 to vector<8x512xf32>
    %468 = arith.select %466, %461, %467 : vector<8x512xi1>, vector<8x512xf32>
    %c64_325 = arith.constant 64 : index
    %c0_326 = arith.constant 0 : index
    %469 = vector.load %arg5[%c64_325, %c0_326] : memref<72x512xf32, #tpu.memory_space<vmem>>, vector<8x512xf32>
    tpu.vector_store %arg5[%c64_325, %c0_326], %468 {strides = array<i32>} : memref<72x512xf32, #tpu.memory_space<vmem>>, vector<8x512xf32>,
    %c2_327 = arith.constant 2 : index
    %c1_328 = arith.constant 1 : index
    %c0_329 = arith.constant 0 : index
    %c0_330 = arith.constant 0 : index
    %470 = vector.load %arg2[%c2_327, %c1_328, %c0_329, %c0_330] : memref<3x2x8x72xbf16, #tpu.memory_space<vmem>>, vector<1x1x8x72xbf16>
    %471 = vector.shape_cast %470 : vector<1x1x8x72xbf16> to vector<8x72xbf16>
    %c0_331 = arith.constant 0 : index
    %c0_332 = arith.constant 0 : index
    %472 = vector.load %arg5[%c0_331, %c0_332] : memref<72x512xf32, #tpu.memory_space<vmem>>, vector<72x512xf32>
    %473 = arith.truncf %472 : vector<72x512xf32> to vector<72x512xbf16>
    %cst_333 = arith.constant dense<0.000000e+00> : vector<8x512xf32>
    %474 = tpu.matmul %471, %473, %cst_333 {dimension_numbers = #tpu.dot_dimension_numbers<[1], [0], [0], [1], [0, 0, 1, 1], [], []>} : vector<8x72xbf16>, vector<72x512xbf16>, vector<8x512xf32> -> vector<8x512xf32>
    %c0_334 = arith.constant 0 : index
    %c0_335 = arith.constant 0 : index
    %c0_336 = arith.constant 0 : index
    %475 = vector.load %arg4[%c0_334, %c0_335, %c0_336] : memref<1x8x512xf32, #tpu.memory_space<vmem>>, vector<1x8x512xf32>
    %476 = vector.shape_cast %475 : vector<1x8x512xf32> to vector<8x512xf32>
    %477 = arith.addf %476, %474 : vector<8x512xf32>
    %c0_337 = arith.constant 0 : index
    %c0_338 = arith.constant 0 : index
    %c0_339 = arith.constant 0 : index
    %478 = vector.load %arg4[%c0_337, %c0_338, %c0_339] : memref<1x8x512xf32, #tpu.memory_space<vmem>>, vector<1x8x512xf32>
    %479 = vector.shape_cast %478 : vector<1x8x512xf32> to vector<8x512xf32>
    %480 = vector.shape_cast %477 : vector<8x512xf32> to vector<1x8x512xf32>
    tpu.vector_store %arg4[%c0_337, %c0_338, %c0_339], %480 {strides = array<i32>} : memref<1x8x512xf32, #tpu.memory_space<vmem>>, vector<1x8x512xf32>,
    return
  }
  func.func @transform_0(%arg0: i32) -> (i32, i32, i32) {
    %c0_i32 = arith.constant 0 : i32
    %c0_i32_0 = arith.constant 0 : i32
    %c0_i32_1 = arith.constant 0 : i32
    return %arg0, %c0_i32, %c0_i32_0 : i32, i32, i32
  }
  func.func @transform_1(%arg0: i32) -> (i32, i32, i32, i32) {
    %c0_i32 = arith.constant 0 : i32
    %c0_i32_0 = arith.constant 0 : i32
    %c0_i32_1 = arith.constant 0 : i32
    %c0_i32_2 = arith.constant 0 : i32
    %c0_i32_3 = arith.constant 0 : i32
    return %c0_i32, %c0_i32_0, %c0_i32_1, %c0_i32_2 : i32, i32, i32, i32
  }
  func.func @transform_2(%arg0: i32) -> (i32, i32) {
    %c0_i32 = arith.constant 0 : i32
    %c0_i32_0 = arith.constant 0 : i32
    %c0_i32_1 = arith.constant 0 : i32
    return %c0_i32, %c0_i32_0 : i32, i32
  }
  func.func @transform_3(%arg0: i32) -> (i32, i32, i32) {
    %c0_i32 = arith.constant 0 : i32
    %c0_i32_0 = arith.constant 0 : i32
    %c0_i32_1 = arith.constant 0 : i32
    return %arg0, %c0_i32, %c0_i32_0 : i32, i32, i32
  }
}

</mosaic_0001>

<bundles_post_ra>
// kernel: tpu_custom_call.1
= control target key start
LH: loop header
LB: loop body
LE: loop exit
PB: predicated region body
PF: predicated region fallthrough
CT: control target
= control target key end

     0   :  { %8 = vsyncpa [#allocation4], 0  ;;  %s4785_s0 = inlined_call_operand.hbm [shape: f32[1,8,512], index: 0, kind: input, shape index: {}]   ;;  %s4786_s1 = inlined_call_operand.hbm [shape: bf16[3,2,8,72], index: 1, kind: input, shape index: {}]   ;;  %s4787_s2 = inlined_call_operand.hbm [shape: f32[8,13], index: 2, kind: input, shape index: {}]   ;;  %s4788_s3 = inlined_call_operand.hbm [shape: f32[1,8,512], index: 3, kind: output, shape index: {}]  }
   0x1   :  { %9 = vsyncpa [#allocation7], 0  ;;  %s26_s14 = sshll.u32 %s4786_s1, 4  ;;  %s27_s14 = int_to_ptr.hbm [resolvable:$true] %s26_s14 }
   0x2   :  { %10 = vsyncpa [#allocation5], 0  ;;  %s3032_s15 = smov [#allocation6]   ;;  %s16_s19 = sshll.u32 %s4785_s0, 4  ;;  %s17_s19 = int_to_ptr.hbm [resolvable:$true] %s16_s19 }
   0x3   :  { %s28_s16 = sshll.u32 %s3032_s15, 4  ;;  %s3033_s20 = smov 64   ;;  %s29_s16 = int_to_ptr.vmem [resolvable:$true] %s28_s16 }
   0x4   :  { %s3034_s21 = smov 4   ;;  %s3035_s22 = smov [#allocation3]  }
   0x5   :  { %34 = dma.hbm_to_vmem [thread:$0]  %s27_s14, 384, %s29_s16, [#allocation7], %s3033_s20, %s3033_s20, %s3034_s21  }
   0x6   :  { %s18_s23 = sshll.u32 %s3035_s22, 4  ;;  %s40_s26 = sshll.u32 %s4787_s2, 4  ;;  %s19_s23 = int_to_ptr.vmem [resolvable:$true] %s18_s23  ;;  %s41_s26 = int_to_ptr.hbm [resolvable:$true] %s40_s26 }
   0x7   :  { %21 = dma.hbm_to_vmem [thread:$0]  %s17_s19, 512, %s19_s23, [#allocation4]  }
   0x8   :  { %s3036_s1 = smov [#allocation8]  }
   0x9   :  { %s42_s27 = sshll.u32 %s3036_s1, 4  ;;  %s43_s27 = int_to_ptr.vmem [resolvable:$true] %s42_s27 }
   0xa   :  { %45 = dma.hbm_to_vmem [thread:$0]  %s41_s26, 128, %s43_s27, [#allocation7]  }
   0xb   :  { %3026 = dma.done.wait [#allocation4], 512  }
   0xc   :  { %3027 = vsyncadd [#allocation4], 4294966784 }
   0xd   :  { %3028 = dma.done.wait [#allocation7], 512  }
   0xe   :  { %3029 = vsyncadd [#allocation7], 4294966784  ;;  %v3037_v0 = vmov 0   ;;  %v3101_v1 = vld [vmem:[#allocation8] sm:$0xff]  ;;  %v3038_v2 = vmov 6   ;;  %v3105_v4 = vld [vmem:[#allocation3] sm:$0xff]  ;;  %v59_v30 = vlaneseq }
   0xf   :  { %2465 = vset.pattern.permute.xlu0 %v3037_v0  ;;  %v3107_v5 = vld [vmem:[#allocation3 + $0x10] sm:$0xff]  ;;  %v3111_v8 = vld [vmem:[#allocation3 + $0x8] sm:$0xff]  ;;  %v3113_v9 = vld [vmem:[#allocation3 + $0x18] sm:$0xff]  ;;  %s3039_s0 = smov 127   ;;  %s3040_s2 = smov 113   ;;  %v3045_v25 = vmov 1  }
  0x10   :  { %97 = vperm.xlu0 %2465, %v3101_v1   ;;  %s3041_s28 = smov 111   ;;  %s3042_s29 = smov 15   ;;  %2532 = vset.pattern.permute.xlu1 %v3045_v25  ;;  %v3047_v26 = vmov 2   ;;  %v3049_v27 = vmov 8   ;;  %v3165_v31 = vand.u32 127, %v59_v30  ;;  %vm4790_vm9 = vcmask 1043456  }
  0x11   :  { %s3043_s30 = smov 17   ;;  %s3044_s4 = smov 112  }
  0x12   :  { %s3046_s5 = smov 16   ;;  %s3048_s6 = smov 1   ;;  %v61_v32 = vadd.s32 128, %v3165_v31  ;;  %v63_v33 = vadd.s32 384, %v3165_v31  ;;  %v3172_v36 = vadd.s32 256, %v3165_v31  ;;  %v3183_v41 = vand.u32 15, %v3165_v31 }
  0x13   :  { %vm4789_vm5 = vcmp.lt.s32.totalorder %v3165_v31, 111  ;;  %vm4795_vm12 = vcmp.lt.s32.totalorder %v3165_v31, 113  ;;  %vm4794_vm15 = vcmp.lt.s32.totalorder %v3165_v31, 112  ;;  %s3052_s7 = smov 77   ;;  %s3053_s8 = smov 80  }
  0x14   :  { %v3174_v37 = vand.u32 255, %v61_v32  ;;  %v3176_v38 = vand.u32 15, %v61_v32  ;;  %v3178_v39 = vand.u32 255, %v63_v33  ;;  %v3180_v40 = vand.u32 15, %v63_v33  ;;  %s3054_s9 = smov 83   ;;  %s3055_s10 = smov 125  }
  0x15   :  { %v3186_v42 = vand.u32 15, %v3172_v36  ;;  %vm4796_vm4 = vcmp.lt.s32.totalorder %v3183_v41, 15  ;;  %vm4793_vm10 = vcmp.ge.s32.totalorder %v3183_v41, 1  ;;  %s3056_s11 = smov 45   ;;  %s3058_s12 = smov 3  }
  0x16   :  { %vm4797_vm0 = vcmp.lt.s32.totalorder %v3176_v38, 15  ;;  %vm259_vm1 = vcmp.lt.s32.totalorder %v3174_v37, 240  ;;  %vm4792_vm2 = vcmp.lt.s32.totalorder %v3180_v40, 15  ;;  %vm261_vm3 = vcmp.lt.s32.totalorder %v3178_v39, 240  ;;  %s3059_s13 = smov 48   ;;  %s3060_s14 = smov 51  }
  0x17   :  { %vm3200_vm6 = vmand %vm259_vm1, %vm4797_vm0  ;;  %vm4804_vm7 = vcmp.lt.s32.totalorder %v3186_v42, 15  ;;  %vm4791_vm11 = vcmp.ge.s32.totalorder %v3176_v38, 1  ;;  %vm4798_vm13 = vcmp.ge.s32.totalorder %v3180_v40, 1  ;;  %s3064_s15 = smov 31   ;;  %s3065_s16 = smov 97  }
  0x18   :  { %2466 = vset.pattern.permute.xlu0 %v3038_v2  ;;  %vm3209_vm8 = vmand %vm261_vm3, %vm4792_vm2  ;;  %s3071_s17 = smov [#allocation9]   ;;  %s2126_s21 = sshll.u32 %s4788_s3, 4  ;;  %s2127_s21 = int_to_ptr.hbm [resolvable:$true] %s2126_s21 }
  0x19   :  { %105 = vperm.xlu0 %2466, %v3101_v1   ;;  %vm3245_vm14 = vmand %vm259_vm1, %vm4791_vm11  ;;  %vm4802_vm11 = vcmp.ge.s32.totalorder %v3186_v42, 1  ;;  %s2124_s18 = sshll.u32 %s3071_s17, 4  ;;  %s2125_s18 = int_to_ptr.vmem [resolvable:$true] %s2124_s18 }
  0x1a   :  { %vm3266_vm2 = vmand %vm261_vm3, %vm4798_vm13 }
  0x21   :  { %2534 = vset.pattern.permute.xlu0 %v3047_v26 }
  0x82   :  { %v98_v3 = vpop.permute.xlu0 %97 }
  0x83   :  { %v100_v6 = vmul.f32 %v98_v3, %v3105_v4  ;;  %v102_v7 = vmul.f32 %v98_v3, %v3107_v5  ;;  %v101_v13 = vmul.f32 %v98_v3, %v3111_v8  ;;  %v103_v14 = vmul.f32 %v98_v3, %v3113_v9 }
  0x8b   :  { %v106_v10 = vpop.permute.xlu0 %105 }
  0x8c   :  { %v108_v11 = vadd.f32 %v106_v10, %v100_v6  ;;  %v110_v12 = vadd.f32 %v106_v10, %v102_v7  ;;  %v109_v17 = vadd.f32 %v106_v10, %v101_v13  ;;  %v111_v18 = vadd.f32 %v106_v10, %v103_v14 }
  0x8e   :  { %v3117_v15 = vmax.f32 %v108_v11, 0.0  ;;  %v3119_v16 = vmax.f32 %v110_v12, 0.0  ;;  %v3126_v20 = vmax.f32 %v109_v17, 0.0  ;;  %v3128_v21 = vmax.f32 %v111_v18, 0.0 }
  0x90   :  { %v2497_v19 = vpack.i.bf16 %v3119_v16, %v3117_v15  ;;  %v2512_v22 = vpack.i.bf16 %v3117_v15, %v3128_v21  ;;  %v2482_v23 = vpack.i.bf16 %v3126_v20, %v3128_v21  ;;  %v2522_v24 = vpack.i.bf16 %v3119_v16, %v3126_v20 }
  0x92   :  { %2498 = vrot.lane.b32.xlu0 %v2497_v19, %s3039_s0  ;;  %2478 = vrot.lane.b32.xlu2 %v2497_v19, %s3040_s2 }
  0x93   :  { %2468 = vrot.lane.b32.xlu1 %v2497_v19, %s3041_s28 }
  0x9a   :  { %2513 = vrot.lane.b32.xlu0 %v2512_v22, %s3042_s29  ;;  %2483 = vrot.lane.b32.xlu2 %v2482_v23, %s3040_s2 }
  0x9b   :  { %2473 = vrot.lane.b32.xlu1 %v2482_v23, %s3041_s28 }
  0xa2   :  { %2523 = vrot.lane.b32.xlu0 %v2522_v24, %s3043_s30  ;;  %2493 = vrot.lane.b32.xlu2 %v2482_v23, %s3044_s4 }
  0xa3   :  { %2488 = vrot.lane.b32.xlu1 %v2497_v19, %s3044_s4 }
  0xaa   :  { %155 = vrot.lane.b32.xlu0 %v3128_v21, %s3046_s5  ;;  %2508 = vrot.lane.b32.xlu2 %v2522_v24, %s3042_s29 }
  0xab   :  { %2503 = vrot.lane.b32.xlu1 %v2482_v23, %s3039_s0 }
  0xb2   :  { %149 = vrot.lane.b32.xlu0 %v3117_v15, %s3046_s5  ;;  %205 = vrot.lane.b32.xlu2 %v3128_v21, %s3048_s6 }
  0xb3   :  { %2518 = vrot.lane.b32.xlu1 %v2522_v24, %s3048_s6 }
  0xba   :  { %2528 = vrot.lane.b32.xlu2 %v2522_v24, %s3046_s5  ;;  %776 = vperm.xlu0 %2534, %v3101_v1  }
  0xbb   :  { %122 = vrot.lane.b32.xlu1 %v3128_v21, %s3043_s30 }
  0xc2   :  { %116 = vrot.lane.b32.xlu2 %v3117_v15, %s3043_s30 }
  0xc3   :  { %199 = vrot.lane.b32.xlu1 %v3117_v15, %s3048_s6 }
  0xcb   :  { %449 = vperm.xlu1 %2532, %v3101_v1  }
  0xd3   :  { %2535 = vset.pattern.permute.xlu1 %v3049_v27 }
  0xd4   :  { %784 = vperm.xlu1 %2535, %v3101_v1  }
  0xec   :  { %v3161_v28 = vpop.permute.xlu2 %2478 }
  0xed   :  { %v2481_v12 = vunpack.i.h.bf16 %v3161_v28  ;;  %v2480_v13 = vunpack.i.l.bf16 %v3161_v28 }
  0xf4   :  { %v3163_v29 = vpop.permute.xlu2 %2483 }
  0xf5   :  { %v2486_v0 = vunpack.i.h.bf16 %v3163_v29  ;;  %v2485_v2 = vunpack.i.l.bf16 %v3163_v29 }
  0xf7   :  { %v256_v26 = vsel %vm4795_vm12, %v2480_v13, %v2486_v0  ;;  %v255_v27 = vsel %vm4795_vm12, %v2486_v0, %v2481_v12  ;;  %v254_v29 = vsel %vm4795_vm12, %v2481_v12, %v2485_v2  ;;  %v257_v30 = vsel %vm4795_vm12, %v2485_v2, %v2480_v13 }
  0xfc   :  { %v3169_v34 = vpop.permute.xlu2 %2493 }
  0xfd   :  { %v2496_v18 = vunpack.i.h.bf16 %v3169_v34  ;;  %v2495_v19 = vunpack.i.l.bf16 %v3169_v34 }
 0x104   :  { %v3192_v43 = vpop.permute.xlu0 %2498  ;;  %v3213_v51 = vpop.permute.xlu2 %2508 }
 0x105   :  { %v2469_v35 = vpop.permute.xlu1 %2468 }
 0x106   :  { %v2471_v46 = vunpack.i.h.bf16 %v2469_v35  ;;  %v2470_v47 = vunpack.i.l.bf16 %v2469_v35 }
 0x10c   :  { %v3270_v25 = vpop.permute.xlu0 %2513 }
 0x10d   :  { %v2474_v44 = vpop.permute.xlu1 %2473 }
 0x10e   :  { %v2476_v48 = vunpack.i.h.bf16 %v2474_v44  ;;  %v2475_v49 = vunpack.i.l.bf16 %v2474_v44 }
 0x110   :  { %v306_v52 = vsel %vm4789_vm5, %v2470_v47, %v2476_v48  ;;  %v305_v53 = vsel %vm4789_vm5, %v2476_v48, %v2471_v46  ;;  %v304_v54 = vsel %vm4789_vm5, %v2471_v46, %v2475_v49  ;;  %v307_v55 = vsel %vm4789_vm5, %v2475_v49, %v2470_v47  ;;  %v3303_v46 = vpop.permute.xlu2 %205 }
 0x111   :  { %v312_v56 = vsel %vm4796_vm4, %v306_v52, 0.0  ;;  %v313_v57 = vsel %vm3200_vm6, %v305_v53, 0.0  ;;  %v314_v58 = vsel %vm4804_vm7, %v304_v54, 0.0  ;;  %v315_v59 = vsel %vm3209_vm8, %v307_v55, 0.0 }
 0x112   :  { %v373_v60 = vpack.c.bf16 %v312_v56, %v312_v56  ;;  %v374_v61 = vpack.c.bf16 %v313_v57, %v313_v57  ;;  %v375_v62 = vpack.c.bf16 %v314_v58, %v314_v58  ;;  %v376_v63 = vpack.c.bf16 %v315_v59, %v315_v59 }
 0x113   :  { %vm4800_vm5 = vmmov 1   ;;  %v3318_v54 = vand.u32 255, %v3172_v36  ;;  %v2501_v56 = vunpack.i.h.bf16 %v3192_v43  ;;  %v2500_v57 = vunpack.i.l.bf16 %v3192_v43 }
 0x114   :  { %v383_v3 = vsel %vm4790_vm9, %v373_v60, 0  ;;  %v386_v6 = vsel %vm4790_vm9, %v374_v61, 0  ;;  %v389_v7 = vsel %vm4790_vm9, %v375_v62, 0  ;;  %v392_v10 = vsel %vm4790_vm9, %v376_v63, 0  ;;  %vm3255_vm9 = vmpackc.low %vm4800_vm5, %vm4793_vm10  ;;  %v3357_v2 = vpop.permute.xlu0 %2523 }
 0x115   :  { %v2489_v14 = vpop.permute.xlu1 %2488  ;;  %397 = vmatpush.bf16.msra.mxu0 %v383_v3  ;;  %410 = vmatpush.bf16.msra.mxu1 %v386_v6  ;;  %vm3280_vm10 = vmpackc.low %vm259_vm1, %vm3245_vm14  ;;  %v4873_v36 = vmov 0  ;;  %v4875_v60 = vmov 0  ;;  %vm4805_vm12 = vcmp.ge.s32.totalorder %v3318_v54, 16  ;;  %v4877_v63 = vmov 0 }
 0x116   :  { %v2491_v22 = vunpack.i.h.bf16 %v2489_v14  ;;  %v2490_v23 = vunpack.i.l.bf16 %v2489_v14  ;;  %423 = vmatpush.bf16.msra.mxu2 %v389_v7  ;;  %436 = vmatpush.bf16.msra.mxu3 %v392_v10  ;;  %vm3297_vm1 = vmpackc.low %vm4800_vm5, %vm4802_vm11  ;;  %v4880_v10 = vmov 0  ;;  %v2525_v13 = vunpack.i.l.bf16 %v3357_v2 }
 0x117   :  { %vm3309_vm14 = vmpackc.low %vm261_vm3, %vm3266_vm2  ;;  %vm4799_vm2 = vcmp.lt.s32.totalorder %v3165_v31, 127  ;;  %vm4885_vm11 = vcmp.lt.s32.totalorder %v3180_v40, 15 }
 0x118   :  { %v285_v32 = vsel %vm4794_vm15, %v2490_v23, %v2496_v18  ;;  %v284_v33 = vsel %vm4794_vm15, %v2496_v18, %v2491_v22  ;;  %v283_v34 = vsel %vm4794_vm15, %v2491_v22, %v2495_v19  ;;  %v286_v44 = vsel %vm4794_vm15, %v2495_v19, %v2490_v23  ;;  %vm3330_vm3 = vmpackc.low %vm4796_vm4, %vm4800_vm5  ;;  %v3370_v12 = vpop.permute.xlu2 %2528 }
 0x119   :  { %v2162_v47 = vpack.c.bf16 %v285_v32, %v256_v26  ;;  %v2174_v48 = vpack.c.bf16 %v284_v33, %v255_v27  ;;  %v2186_v49 = vpack.c.bf16 %v283_v34, %v254_v29  ;;  %v2198_v53 = vpack.c.bf16 %v286_v44, %v257_v30  ;;  %vm3337_vm15 = vmpackc.low %vm4797_vm0, %vm4800_vm5 }
 0x11a   :  { %v4874_v36 = vsel %vm3330_vm3, 4294967295, %v4873_v36  ;;  %v4876_v60 = vsel %vm3337_vm15, 4294967295, %v4875_v60  ;;  %vm3351_vm4 = vmpackc.low %vm4804_vm7, %vm4800_vm5  ;;  %vm4879_vm0 = vcmp.lt.s32.totalorder %v3180_v40, 15  ;;  %v2530_v18 = vunpack.i.l.bf16 %v3370_v12 }
 0x11b   :  { %2163 = vmatpush.bf16.msk.msra.mxu0 %vm3255_vm9, %v2162_v47  ;;  %2175 = vmatpush.bf16.msk.msra.mxu1 %vm3280_vm10, %v2174_v48  ;;  %v4878_v63 = vsel %vm3351_vm4, 4294967295, %v4877_v63  ;;  %vm3365_vm13 = vmpackc.low %vm4879_vm0, %vm4800_vm5  ;;  %vm4809_vm5 = vcmp.lt.s32.totalorder %v3165_v31, 1  ;;  %v4883_v23 = vmov 0  ;;  %v4887_v30 = vmov 0 }
 0x11c   :  { %2187 = vmatpush.bf16.msk.msra.mxu2 %vm3297_vm1, %v2186_v49  ;;  %2199 = vmatpush.bf16.msk.msra.mxu3 %vm3309_vm14, %v2198_v53  ;;  %v4881_v10 = vsel %vm3365_vm13, 4294967295, %v4880_v10  ;;  %vm189_vm0 = vmand %vm4805_vm12, %vm4804_vm7  ;;  %vm4882_vm7 = vcmp.ge.s32.totalorder %v3186_v42, 1  ;;  %v156_v47 = vpop.permute.xlu0 %155  ;;  %v3431_v48 = vand.u32 255, %v3165_v31  ;;  %v4894_v49 = vmov 0 }
 0x11d   :  { %v2504_v55 = vpop.permute.xlu1 %2503  ;;  %vm3397_vm12 = vmpackc.low %vm4882_vm7, %vm189_vm0  ;;  %vm4886_vm7 = vcmp.ge.s32.totalorder %v3180_v40, 1 }
 0x11e   :  { %v2506_v58 = vunpack.i.h.bf16 %v2504_v55  ;;  %v2505_v59 = vunpack.i.l.bf16 %v2504_v55  ;;  %v4884_v23 = vsel %vm3397_vm12, 4294967295, %v4883_v23  ;;  %vm3414_vm0 = vmpackc.low %vm4886_vm7, %vm4885_vm11 }
 0x11f   :  { %v4888_v30 = vsel %vm3414_vm0, 4294967295, %v4887_v30 }
 0x120   :  { %v235_v43 = vsel %vm4799_vm2, %v2500_v57, %v2506_v58  ;;  %v234_v61 = vsel %vm4799_vm2, %v2506_v58, %v2501_v56  ;;  %v233_v62 = vsel %vm4799_vm2, %v2501_v56, %v2505_v59  ;;  %v236_v0 = vsel %vm4799_vm2, %v2505_v59, %v2500_v57 }
 0x121   :  { %v2165_v3 = vpack.c.bf16 %v235_v43, %v3117_v15  ;;  %v2177_v6 = vpack.c.bf16 %v234_v61, %v3126_v20  ;;  %v2189_v7 = vpack.c.bf16 %v233_v62, %v3119_v16  ;;  %v2201_v11 = vpack.c.bf16 %v236_v0, %v3128_v21  ;;  %v320_v43 = vld [vmem:[#allocation6] sm:$0xf] }
 0x122   :  { %v2511_v15 = vunpack.i.h.bf16 %v3213_v51  ;;  %v2510_v16 = vunpack.i.l.bf16 %v3213_v51  ;;  %v2515_v20 = vunpack.i.l.bf16 %v3270_v25  ;;  %v2526_v21 = vunpack.i.h.bf16 %v3357_v2 }
 0x123   :  { %2166 = vmatpush.bf16.msk.msra.mxu0 %vm3330_vm3, %v2165_v3  ;;  %2178 = vmatpush.bf16.msk.msra.mxu1 %vm3337_vm15, %v2177_v6  ;;  %vm4808_vm2 = vcmp.lt.s32.totalorder %v3165_v31, 15  ;;  %v2531_v51 = vunpack.i.h.bf16 %v3370_v12  ;;  %v4900_v58 = vmov 0  ;;  %v2516_v61 = vunpack.i.h.bf16 %v3270_v25 }
 0x124   :  { %2190 = vmatpush.bf16.msk.msra.mxu2 %vm3351_vm4, %v2189_v7  ;;  %2202 = vmatpush.bf16.msk.msra.mxu3 %vm3365_vm13, %v2201_v11  ;;  %v180_v24 = vsel %vm4808_vm2, %v2510_v16, %v2511_v15  ;;  %v179_v27 = vsel %vm4808_vm2, %v2511_v15, %v2515_v20  ;;  %vm4889_vm13 = vcmp.ge.s32.totalorder %v3186_v42, 1  ;;  %vm4890_vm4 = vcmp.ge.s32.totalorder %v3318_v54, 16  ;;  %v150_v0 = vpop.permute.xlu0 %149  ;;  %v117_v15 = vpop.permute.xlu2 %116 }
 0x125   :  { %v2519_v14 = vpop.permute.xlu1 %2518  ;;  %vm139_vm15 = vmand %vm4890_vm4, %vm4889_vm13  ;;  %vm4891_vm2 = vcmp.lt.s32.totalorder %v3165_v31, 17  ;;  %vm4898_vm13 = vcmp.ge.s32.totalorder %v3180_v40, 1  ;;  %v3051_v12 = vmov 7  }
 0x126   :  { %v2521_v19 = vunpack.i.h.bf16 %v2519_v14  ;;  %v2520_v22 = vunpack.i.l.bf16 %v2519_v14  ;;  %v126_v34 = vsel %vm4891_vm2, %v2525_v13, %v2526_v21  ;;  %vm4893_vm11 = vmmov %vm4890_vm4  ;;  %2533 = vset.pattern.permute.xlu2 %v3051_v12 }
 0x127   :  { %vm3435_vm7 = vmpackc.low %vm4893_vm11, %vm139_vm15  ;;  %vm4815_vm15 = vcmask 588800   ;;  %vm4816_vm11 = vcmp.ge.s32.totalorder %v3431_v48, 16  ;;  %457 = vperm.xlu2 %2533, %v3101_v1  }
 0x128   :  { %v209_v26 = vsel %vm4809_vm5, %v2520_v22, %v2521_v19  ;;  %v208_v29 = vsel %vm4809_vm5, %v2521_v19, %v3303_v46  ;;  %vm4892_vm5 = vcmp.lt.s32.totalorder %v3165_v31, 16  ;;  %v4895_v49 = vsel %vm3435_vm7, 4294967295, %v4894_v49 }
 0x129   :  { %v2192_v32 = vpack.c.bf16 %v209_v26, %v180_v24  ;;  %v2204_v33 = vpack.c.bf16 %v208_v29, %v179_v27  ;;  %v159_v44 = vsel %vm4892_vm5, %v2530_v18, %v2531_v51  ;;  %vm4896_vm4 = vmmov %vm4892_vm5  ;;  %v4924_v19 = vmov 0 }
 0x12a   :  { %v2195_v55 = vpack.c.bf16 %v159_v44, %v126_v34  ;;  %v158_v56 = vsel %vm4896_vm4, %v2531_v51, %v156_v47  ;;  %vm4897_vm5 = vmmov %vm4891_vm2  ;;  %vm4899_vm2 = vmmov 1   ;;  %vm4902_vm4 = vcmp.lt.s32.totalorder %v3183_v41, 15 }
 0x12b   :  { %2193 = vmatpush.bf16.msk.msra.mxu2 %vm3397_vm12, %v2192_v32  ;;  %2205 = vmatpush.bf16.msk.msra.mxu3 %vm3414_vm0, %v2204_v33  ;;  %vm3446_vm0 = vmpackc.low %vm4899_vm2, %vm4898_vm13  ;;  %vm4903_vm13 = vcmp.lt.s32.totalorder %v3176_v38, 15 }
 0x12c   :  { %v4901_v58 = vsel %vm3446_vm0, 4294967295, %v4900_v58 }
 0x12d   :  { %v123_v53 = vpop.permute.xlu1 %122 }
 0x12e   :  { %v125_v57 = vsel %vm4897_vm5, %v2526_v21, %v123_v53  ;;  %vm187_vm5 = vmand %vm4816_vm11, %vm4902_vm4  ;;  %vm4910_vm4 = vcmp.lt.s32.totalorder %v3165_v31, 15  ;;  %vm4912_vm11 = vcmp.lt.s32.totalorder %v3165_v31, 1 }
 0x12f   :  { %v2207_v59 = vpack.c.bf16 %v158_v56, %v125_v57  ;;  %2196 = vmatpush.bf16.msk.msra.mxu2 %vm3435_vm7, %v2195_v55  ;;  %vm4904_vm7 = vcmp.ge.s32.totalorder %v3176_v38, 1  ;;  %v181_v3 = vsel %vm4910_vm4, %v2516_v61, %v2510_v16 }
 0x130   :  { %vm3466_vm12 = vmpackc.low %vm4904_vm7, %vm4903_vm13 }
 0x131   :  { %2208 = vmatpush.bf16.msk.msra.mxu3 %vm3446_vm0, %v2207_v59  ;;  %vm4907_vm0 = vcmp.ge.s32.totalorder %v3183_v41, 1  ;;  %vm4913_vm7 = vmmov %vm4912_vm11 }
 0x132   :  { %2139 = vmatmul.msk.bf16.vlgmr.msra.gmra.mxu2 %vm4815_vm15, %v320_v43  ;;  %vm3472_vm3 = vmpackc.low %vm4907_vm0, %vm187_vm5 }
 0x133   :  { %vm4914_vm13 = vmmov %vm4907_vm0  ;;  %vm4915_vm0 = vcmp.ge.s32.totalorder %v3431_v48, 16 }
 0x134   :  { %2140 = vmatmul.msk.bf16.vlgmr.msra.gmra.mxu3 %vm4815_vm15, %v320_v43  ;;  %vm4911_vm15 = vmmov %vm4910_vm4 }
 0x135   :  { %v200_v2 = vpop.permute.xlu1 %199  ;;  %v182_v6 = vsel %vm4911_vm15, %v2515_v20, %v2516_v61  ;;  %vm137_vm5 = vmand %vm4915_vm0, %vm4914_vm13  ;;  %vm4916_vm15 = vcmp.lt.s32.totalorder %v3165_v31, 16 }
 0x136   :  { %v210_v7 = vsel %vm4912_vm11, %v200_v2, %v2520_v22  ;;  %v211_v11 = vsel %vm4913_vm7, %v3303_v46, %v200_v2  ;;  %v160_v20 = vsel %vm4916_vm15, %v150_v0, %v2530_v18  ;;  %vm4917_vm11 = vcmp.lt.s32.totalorder %v3165_v31, 17  ;;  %vm4918_vm4 = vmmov %vm4915_vm0 }
 0x137   :  { %v2168_v21 = vpack.c.bf16 %v211_v11, %v182_v6  ;;  %v2180_v16 = vpack.c.bf16 %v210_v7, %v181_v3  ;;  %v128_v14 = vsel %vm4917_vm11, %v123_v53, %v117_v15  ;;  %vm3500_vm7 = vmpackc.low %vm4918_vm4, %vm137_vm5  ;;  %vm4926_vm5 = vcmask 588800  }
 0x138   :  { %vm4921_vm13 = vmmov %vm4917_vm11 }
 0x139   :  { %2169 = vmatpush.bf16.msk.msra.mxu0 %vm3472_vm3, %v2168_v21  ;;  %2181 = vmatpush.bf16.msk.msra.mxu1 %vm3466_vm12, %v2180_v16  ;;  %v127_v51 = vsel %vm4921_vm13, %v117_v15, %v2525_v13  ;;  %vm4922_vm0 = vmmov %vm4916_vm15  ;;  %vm4923_vm15 = vcmp.ge.s32.totalorder %v3176_v38, 1  ;;  %v777_v13 = vpop.permute.xlu0 %776  ;;  %vm4931_vm13 = vcmp.lt.s32.totalorder %v3165_v31, 111 }
 0x13a   :  { %v161_v18 = vsel %vm4922_vm0, %v156_v47, %v150_v0  ;;  %vm3511_vm11 = vmpackc.low %vm4899_vm2, %vm4923_vm15  ;;  %v2183_v22 = vpack.c.bf16 %v160_v20, %v127_v51  ;;  %v779_v27 = vmul.f32 %v777_v13, %v3105_v4  ;;  %v780_v29 = vmul.f32 %v777_v13, %v3111_v8 }
 0x13b   :  { %v4925_v19 = vsel %vm3511_vm11, 4294967295, %v4924_v19  ;;  %v2171_v24 = vpack.c.bf16 %v161_v18, %v128_v14  ;;  %vm4927_vm4 = vmmov %vm4926_vm5  ;;  %v781_v32 = vmul.f32 %v777_v13, %v3107_v5  ;;  %v782_v33 = vmul.f32 %v777_v13, %v3113_v9 }
 0x13c   :  { %vm4932_vm0 = vmmov %vm4931_vm13 }
 0x13d   :  { %2172 = vmatpush.bf16.msk.msra.mxu0 %vm3500_vm7, %v2171_v24  ;;  %2184 = vmatpush.bf16.msk.msra.mxu1 %vm3511_vm11, %v2183_v22  ;;  %v450_v26 = vpop.permute.xlu1 %449  ;;  %vm4933_vm15 = vmmov %vm4932_vm0  ;;  %vm4936_vm11 = vcmp.lt.s32.totalorder %v3186_v42, 15 }
 0x140   :  { %2137 = vmatmul.msk.bf16.vlgmr.msra.gmra.mxu0 %vm4926_vm5, %v320_v43  ;;  %2138 = vmatmul.msk.bf16.vlgmr.msra.gmra.mxu1 %vm4927_vm4, %v320_v43  ;;  %vm4934_vm5 = vmmov %vm4932_vm0  ;;  %vm4935_vm4 = vcmp.lt.s32.totalorder %v3183_v41, 15 }
 0x146   :  { %v785_v34 = vpop.permute.xlu1 %784 }
 0x147   :  { %v787_v44 = vadd.f32 %v785_v34, %v779_v27  ;;  %v788_v47 = vadd.f32 %v785_v34, %v780_v29  ;;  %v789_v53 = vadd.f32 %v785_v34, %v781_v32  ;;  %v790_v55 = vadd.f32 %v785_v34, %v782_v33 }
 0x149   :  { %v3525_v56 = vmax.f32 %v787_v44, 0.0  ;;  %v3527_v57 = vmax.f32 %v788_v47, 0.0  ;;  %v3529_v59 = vmax.f32 %v789_v53, 0.0  ;;  %v3531_v43 = vmax.f32 %v790_v55, 0.0 }
 0x14a   :  { %v3057_v47 = vmov 4   ;;  %v3061_v53 = vmov 3  }
 0x14b   :  { %4928 = vst [vmem:[#allocation13_spill] sm:$0xff] %v3531_v43  ;;  %v2541_v4 = vpack.i.bf16 %v3527_v57, %v3531_v43  ;;  %v2566_v5 = vpack.i.bf16 %v3529_v59, %v3525_v56  ;;  %v2581_v8 = vpack.i.bf16 %v3525_v56, %v3531_v43  ;;  %v2576_v9 = vpack.i.bf16 %v3529_v59, %v3527_v57 }
 0x14c   :  { %2683 = vset.pattern.permute.xlu1 %v3057_v47  ;;  %2681 = vset.pattern.permute.xlu2 %v3061_v53 }
 0x14d   :  { %2542 = vrot.lane.b32.xlu1 %v2541_v4, %s3052_s7  ;;  %2557 = vrot.lane.b32.xlu2 %v2566_v5, %s3053_s8 }
 0x14e   :  { %2537 = vrot.lane.b32.xlu0 %v2566_v5, %s3052_s7 }
 0x155   :  { %2552 = vrot.lane.b32.xlu1 %v2541_v4, %s3054_s9  ;;  %2572 = vrot.lane.b32.xlu2 %v2541_v4, %s3055_s10 }
 0x156   :  { %2547 = vrot.lane.b32.xlu0 %v2566_v5, %s3054_s9 }
 0x15d   :  { %2567 = vrot.lane.b32.xlu1 %v2566_v5, %s3055_s10 }
 0x15e   :  { %2562 = vrot.lane.b32.xlu0 %v2541_v4, %s3053_s8 }
 0x165   :  { %2582 = vrot.lane.b32.xlu1 %v2581_v8, %s3056_s11 }
 0x166   :  { %2577 = vrot.lane.b32.xlu0 %v2576_v9, %s3056_s11 }
 0x181   :  { %v458_v6 = vpop.permute.xlu2 %457 }
 0x1a7   :  { %v3597_v55 = vpop.permute.xlu2 %2557 }
 0x1af   :  { %v3606_v8 = vpop.permute.xlu2 %2572 }
 0x1b5   :  { %v429_v61 = vpop.f32.mrf.mxu2 }
 0x1b6   :  { %v454_v2 = vmul.f32 %v450_v26, %v429_v61 }
 0x1b7   :  { %v442_v0 = vpop.f32.mrf.mxu3 }
 0x1b8   :  { %v455_v3 = vmul.f32 %v450_v26, %v442_v0  ;;  %v462_v12 = vadd.f32 %v458_v6, %v454_v2  ;;  %v3062_v0 = vmov 10  }
 0x1ba   :  { %v463_v15 = vadd.f32 %v458_v6, %v455_v3  ;;  %v3551_v22 = vmax.f32 %v462_v12, 0.0 }
 0x1bc   :  { %v3553_v24 = vmax.f32 %v463_v15, 0.0 }
 0x1bd   :  { %v403_v7 = vpop.f32.mrf.mxu0  ;;  %v416_v11 = vpop.f32.mrf.mxu1 }
 0x1be   :  { %v452_v21 = vmul.f32 %v450_v26, %v403_v7  ;;  %v453_v16 = vmul.f32 %v450_v26, %v416_v11  ;;  %v431_v20 = vpop.f32.mrf.mxu2 }
 0x1bf   :  { %v444_v14 = vpop.f32.mrf.mxu3  ;;  %v3601_v4 = vpop.permute.xlu1 %2542 }
 0x1c0   :  { %v460_v51 = vadd.f32 %v458_v6, %v452_v21  ;;  %v461_v18 = vadd.f32 %v458_v6, %v453_v16  ;;  %v3603_v5 = vpop.permute.xlu0 %2537 }
 0x1c1   :  { %v2540_v50 = vunpack.i.h.bf16 %v3603_v5 }
 0x1c2   :  { %v3555_v13 = vmax.f32 %v460_v51, 0.0  ;;  %v3557_v27 = vmax.f32 %v461_v18, 0.0 }
 0x1c4   :  { %v2601_v29 = vpack.i.bf16 %v3557_v27, %v3553_v24  ;;  %v2586_v32 = vpack.i.bf16 %v3551_v22, %v3555_v13  ;;  %v2631_v34 = vpack.i.bf16 %v3555_v13, %v3553_v24  ;;  %v2636_v44 = vpack.i.bf16 %v3551_v22, %v3557_v27 }
 0x1c5   :  { %v405_v33 = vpop.f32.mrf.mxu0  ;;  %v418_v26 = vpop.f32.mrf.mxu1 }
 0x1c6   :  { %2602 = vrot.lane.b32.xlu0 %v2601_v29, %s3040_s2  ;;  %2592 = vrot.lane.b32.xlu1 %v2601_v29, %s3041_s28 }
 0x1c7   :  { %2587 = vrot.lane.b32.xlu2 %v2586_v32, %s3041_s28  ;;  %v3608_v61 = vpop.permute.xlu1 %2552 }
 0x1ce   :  { %2617 = vrot.lane.b32.xlu0 %v2586_v32, %s3039_s0  ;;  %2607 = vrot.lane.b32.xlu1 %v2586_v32, %s3044_s4 }
 0x1cf   :  { %2597 = vrot.lane.b32.xlu2 %v2586_v32, %s3040_s2  ;;  %v3613_v3 = vpop.permute.xlu1 %2567 }
 0x1d6   :  { %2632 = vrot.lane.b32.xlu0 %v2631_v34, %s3042_s29  ;;  %2622 = vrot.lane.b32.xlu1 %v2601_v29, %s3039_s0 }
 0x1d7   :  { %2612 = vrot.lane.b32.xlu2 %v2601_v29, %s3044_s4  ;;  %v3617_v11 = vpop.permute.xlu1 %2582 }
 0x1d8   :  { %4929 = vst [vmem:[#allocation14_spill] sm:$0xff] %v3617_v11 }
 0x1de   :  { %2652 = vrot.lane.b32.xlu0 %v2631_v34, %s3043_s30  ;;  %2637 = vrot.lane.b32.xlu1 %v2636_v44, %s3048_s6 }
 0x1df   :  { %2627 = vrot.lane.b32.xlu2 %v2636_v44, %s3042_s29 }
 0x1e6   :  { %884 = vrot.lane.b32.xlu0 %v3531_v43, %s3058_s12  ;;  %2657 = vrot.lane.b32.xlu1 %v2636_v44, %s3046_s5 }
 0x1e7   :  { %2642 = vrot.lane.b32.xlu2 %v2631_v34, %s3048_s6 }
 0x1ee   :  { %2677 = vrot.lane.b32.xlu0 %v2576_v9, %s3059_s13  ;;  %2672 = vrot.lane.b32.xlu1 %v2576_v9, %s3060_s14 }
 0x1ef   :  { %2647 = vrot.lane.b32.xlu2 %v2636_v44, %s3043_s30 }
 0x1f6   :  { %795 = vrot.lane.b32.xlu0 %v3525_v56, %s3060_s14  ;;  %834 = vrot.lane.b32.xlu1 %v3531_v43, %s3059_s13 }
 0x1f7   :  { %2662 = vrot.lane.b32.xlu2 %v2631_v34, %s3046_s5 }
 0x1fe   :  { %828 = vrot.lane.b32.xlu1 %v3525_v56, %s3059_s13 }
 0x1ff   :  { %2667 = vrot.lane.b32.xlu2 %v2576_v9, %s3058_s12  ;;  %v3610_v9 = vpop.permute.xlu0 %2547 }
 0x200   :  { %v2550_v46 = vunpack.i.h.bf16 %v3610_v9 }
 0x206   :  { %1454 = vperm.xlu1 %2683, %v3101_v1  }
 0x207   :  { %801 = vrot.lane.b32.xlu2 %v3531_v43, %s3060_s14  ;;  %v3615_v6 = vpop.permute.xlu0 %2562 }
 0x20f   :  { %878 = vrot.lane.b32.xlu2 %v3525_v56, %s3058_s12  ;;  %v3619_v12 = vpop.permute.xlu0 %2577 }
 0x210   :  { %4930 = vst [vmem:[#allocation15_spill] sm:$0xff] %v3619_v12 }
 0x217   :  { %1127 = vperm.xlu2 %2681, %v3101_v1  }
 0x21f   :  { %2684 = vset.pattern.permute.xlu2 %v3062_v0 }
 0x220   :  { %1462 = vperm.xlu2 %2684, %v3101_v1   ;;  %v2545_v1 = vunpack.i.h.bf16 %v3601_v4 }
 0x221   :  { %v2588_v2 = vpop.permute.xlu2 %2587 }
 0x222   :  { %v2590_v20 = vunpack.i.h.bf16 %v2588_v2  ;;  %v2589_v14 = vunpack.i.l.bf16 %v2588_v2 }
 0x229   :  { %v2598_v7 = vpop.permute.xlu2 %2597 }
 0x231   :  { %v2613_v15 = vpop.permute.xlu2 %2612 }
 0x238   :  { %v2603_v21 = vpop.permute.xlu0 %2602  ;;  %v2593_v16 = vpop.permute.xlu1 %2592 }
 0x239   :  { %v2595_v51 = vunpack.i.h.bf16 %v2593_v16  ;;  %v2594_v18 = vunpack.i.l.bf16 %v2593_v16  ;;  %v3621_v29 = vpop.permute.xlu2 %2627 }
 0x23a   :  { %v2630_v35 = vunpack.i.h.bf16 %v3621_v29  ;;  %v2629_v52 = vunpack.i.l.bf16 %v3621_v29 }
 0x23b   :  { %v622_v32 = vsel %vm4931_vm13, %v2589_v14, %v2595_v51  ;;  %v621_v33 = vsel %vm4932_vm0, %v2595_v51, %v2590_v20  ;;  %v620_v26 = vsel %vm4933_vm15, %v2590_v20, %v2594_v18  ;;  %v623_v34 = vsel %vm4934_vm5, %v2594_v18, %v2589_v14 }
 0x23c   :  { %v624_v44 = vsel %vm4935_vm4, %v622_v32, 0.0  ;;  %v625_v47 = vsel %vm3200_vm6, %v621_v33, 0.0  ;;  %v626_v53 = vsel %vm4936_vm11, %v620_v26, 0.0  ;;  %v627_v0 = vsel %vm3209_vm8, %v623_v34, 0.0 }
 0x23d   :  { %v686_v2 = vpack.c.bf16 %v624_v44, %v624_v44  ;;  %v687_v16 = vpack.c.bf16 %v625_v47, %v625_v47  ;;  %v688_v51 = vpack.c.bf16 %v626_v53, %v626_v53  ;;  %v689_v43 = vpack.c.bf16 %v627_v0, %v627_v0 }
 0x23e   :  { %vm4821_vm13 = vcmp.lt.s32.totalorder %v3165_v31, 77  ;;  %v2605_v14 = vunpack.i.h.bf16 %v2603_v21  ;;  %v2604_v18 = vunpack.i.l.bf16 %v2603_v21  ;;  %vm4937_vm0 = vcmask 1043456  }
 0x23f   :  { %v694_v32 = vsel %vm4937_vm0, %v686_v2, 0  ;;  %vm4938_vm15 = vmmov %vm4937_vm0  ;;  %v2539_v34 = vunpack.i.l.bf16 %v3603_v5  ;;  %v2600_v44 = vunpack.i.h.bf16 %v2598_v7  ;;  %v2599_v47 = vunpack.i.l.bf16 %v2598_v7 }
 0x240   :  { %v697_v45 = vsel %vm4938_vm15, %v687_v16, 0  ;;  %vm4939_vm6 = vmmov %vm4937_vm0  ;;  %v2618_v53 = vpop.permute.xlu0 %2617  ;;  %v2608_v0 = vpop.permute.xlu1 %2607  ;;  %708 = vmatpush.bf16.msrb.mxu0 %v694_v32  ;;  %v2615_v20 = vunpack.i.h.bf16 %v2613_v15  ;;  %v2614_v21 = vunpack.i.l.bf16 %v2613_v15  ;;  %vm4941_vm8 = vcmp.lt.s32.totalorder %v3165_v31, 113 }
 0x241   :  { %v700_v33 = vsel %vm4939_vm6, %v688_v51, 0  ;;  %vm4940_vm11 = vmmov %vm4937_vm0  ;;  %721 = vmatpush.bf16.msrb.mxu1 %v697_v45  ;;  %v2610_v12 = vunpack.i.h.bf16 %v2608_v0  ;;  %v2609_v2 = vunpack.i.l.bf16 %v2608_v0  ;;  %v3648_v11 = vpop.permute.xlu2 %2642  ;;  %vm4945_vm15 = vcmp.lt.s32.totalorder %v3165_v31, 112 }
 0x242   :  { %v703_v26 = vsel %vm4940_vm11, %v689_v43, 0  ;;  %734 = vmatpush.bf16.msrb.mxu2 %v700_v33  ;;  %v582_v43 = vsel %vm4941_vm8, %v2599_v47, %v2605_v14  ;;  %vm4942_vm5 = vmmov %vm4941_vm8  ;;  %v985_v17 = vsel %vm4821_vm13, %v2539_v34, %v2545_v1  ;;  %v2620_v28 = vunpack.i.h.bf16 %v2618_v53 }
 0x243   :  { %747 = vmatpush.bf16.msrb.mxu3 %v703_v26  ;;  %v581_v5 = vsel %vm4942_vm5, %v2605_v14, %v2600_v44  ;;  %vm4943_vm4 = vmmov %vm4942_vm5  ;;  %v602_v15 = vsel %vm4945_vm15, %v2609_v2, %v2615_v20 }
 0x244   :  { %v580_v7 = vsel %vm4943_vm4, %v2600_v44, %v2604_v18  ;;  %vm4944_vm0 = vmmov %vm4943_vm4  ;;  %v2210_v33 = vpack.c.bf16 %v602_v15, %v582_v43  ;;  %v2559_v44 = vunpack.i.l.bf16 %v3597_v55  ;;  %v2619_v43 = vunpack.i.l.bf16 %v2618_v53 }
 0x245   :  { %v583_v16 = vsel %vm4944_vm0, %v2604_v18, %v2599_v47  ;;  %vm4946_vm6 = vmmov %vm4945_vm15  ;;  %v2575_v18 = vunpack.i.h.bf16 %v3606_v8  ;;  %v4949_v47 = vunpack.i.l.bf16 %v3601_v4  ;;  %vm4829_vm4 = vcmp.lt.s32.totalorder %v3165_v31, 83 }
 0x246   :  { %v601_v51 = vsel %vm4946_vm6, %v2615_v20, %v2610_v12  ;;  %vm4947_vm11 = vmmov %vm4946_vm6  ;;  %2211 = vmatpush.bf16.msk.msrb.mxu0 %vm3255_vm9, %v2210_v33  ;;  %v2555_v20 = vunpack.i.h.bf16 %v3608_v61  ;;  %vm4822_vm9 = vcmp.lt.s32.totalorder %v3183_v41, 13  ;;  %vm4955_vm0 = vcmp.lt.s32.totalorder %v3165_v31, 15 }
 0x247   :  { %v600_v32 = vsel %vm4947_vm11, %v2610_v12, %v2614_v21  ;;  %vm4948_vm8 = vmmov %vm4946_vm6  ;;  %v2222_v14 = vpack.c.bf16 %v601_v51, %v581_v5  ;;  %v2569_v12 = vunpack.i.l.bf16 %v3613_v3  ;;  %vm4830_vm15 = vcmp.lt.s32.totalorder %v3165_v31, 80 }
 0x248   :  { %v603_v45 = vsel %vm4948_vm8, %v2614_v21, %v2609_v2  ;;  %v2234_v26 = vpack.c.bf16 %v600_v32, %v580_v7  ;;  %v3678_v21 = vsel %vm4821_vm13, %v2540_v50, %v4949_v47  ;;  %v3682_v2 = vsel %vm4821_vm13, %v2545_v1, %v2540_v50  ;;  %v2633_v5 = vpop.permute.xlu0 %2632  ;;  %v2623_v7 = vpop.permute.xlu1 %2622 }
 0x249   :  { %v2246_v0 = vpack.c.bf16 %v603_v45, %v583_v16  ;;  %2223 = vmatpush.bf16.msk.msrb.mxu1 %vm3280_vm10, %v2222_v14  ;;  %v2635_v16 = vunpack.i.h.bf16 %v2633_v5  ;;  %v2634_v15 = vunpack.i.l.bf16 %v2633_v5  ;;  %v2625_v51 = vunpack.i.h.bf16 %v2623_v7  ;;  %v3691_v32 = vpop.permute.xlu2 %2647 }
 0x24a   :  { %2235 = vmatpush.bf16.msk.msrb.mxu2 %vm3297_vm1, %v2234_v26  ;;  %v2624_v50 = vunpack.i.l.bf16 %v2623_v7  ;;  %v2645_v45 = vunpack.i.h.bf16 %v3648_v11  ;;  %v2644_v1 = vunpack.i.l.bf16 %v3648_v11  ;;  %vm4950_vm10 = vcmp.lt.s32.totalorder %v3165_v31, 127 }
 0x24b   :  { %2247 = vmatpush.bf16.msk.msrb.mxu3 %vm3309_vm14, %v2246_v0  ;;  %v562_v53 = vsel %vm4950_vm10, %v2619_v43, %v2625_v51  ;;  %vm4951_vm1 = vmmov %vm4950_vm10  ;;  %v4954_v5 = vunpack.i.l.bf16 %v3601_v4  ;;  %vm4956_vm6 = vnez %v4874_v36  ;;  %vm4957_vm11 = vnez %v4876_v60 }
 0x24c   :  { %v561_v33 = vsel %vm4951_vm1, %v2625_v51, %v2620_v28  ;;  %vm4952_vm14 = vmmov %vm4951_vm1  ;;  %v2213_v0 = vpack.c.bf16 %v562_v53, %v3555_v13  ;;  %v2549_v13 = vunpack.i.l.bf16 %v3610_v9  ;;  %vm4828_vm8 = vcmp.lt.s32.totalorder %v3176_v38, 13 }
 0x24d   :  { %v560_v14 = vsel %vm4952_vm14, %v2620_v28, %v2624_v50  ;;  %vm4953_vm5 = vmmov %vm4951_vm1  ;;  %v2225_v29 = vpack.c.bf16 %v561_v33, %v3557_v27  ;;  %v986_v7 = vsel %vm4821_vm13, %v4954_v5, %v2539_v34  ;;  %v519_v28 = vsel %vm4955_vm0, %v2634_v15, %v2635_v16 }
 0x24e   :  { %v563_v26 = vsel %vm4953_vm5, %v2624_v50, %v2619_v43  ;;  %v2237_v47 = vpack.c.bf16 %v560_v14, %v3551_v22  ;;  %v991_v43 = vsel %vm4822_vm9, %v985_v17, 0.0  ;;  %v2565_v22 = vunpack.i.h.bf16 %v3615_v6  ;;  %2214 = vmatpush.bf16.msk.msrb.mxu0 %vm4956_vm6, %v2213_v0 }
 0x24f   :  { %v2249_v11 = vpack.c.bf16 %v563_v26, %v3553_v24  ;;  %2226 = vmatpush.bf16.msk.msrb.mxu1 %vm4957_vm11, %v2225_v29  ;;  %vm4958_vm10 = vnez %v4878_v63  ;;  %vm4959_vm1 = vnez %v4881_v10  ;;  %vm4960_vm14 = vcmp.lt.s32.totalorder %v3165_v31, 1 }
 0x250   :  { %2238 = vmatpush.bf16.msk.msrb.mxu2 %vm4958_vm10, %v2237_v47  ;;  %v539_v24 = vsel %vm4960_vm14, %v2644_v1, %v2645_v45  ;;  %vm4827_vm5 = vcmp.lt.s32.totalorder %v3174_v37, 208  ;;  %vm4824_vm0 = vcmp.lt.s32.totalorder %v3180_v40, 13  ;;  %vm940_vm6 = vcmp.lt.s32.totalorder %v3178_v39, 208  ;;  %v3735_v36 = vpop.permute.xlu0 %2652  ;;  %v2638_v60 = vpop.permute.xlu1 %2637 }
 0x251   :  { %2250 = vmatpush.bf16.msk.msrb.mxu3 %vm4959_vm1, %v2249_v11  ;;  %v2216_v27 = vpack.c.bf16 %v539_v24, %v519_v28  ;;  %vm4961_vm11 = vcmp.lt.s32.totalorder %v3165_v31, 15  ;;  %v1053_v4 = vpack.c.bf16 %v991_v43, %v991_v43  ;;  %v2655_v10 = vunpack.i.h.bf16 %v3735_v36  ;;  %v2663_v50 = vpop.permute.xlu2 %2662 }
 0x252   :  { %v517_v63 = vsel %vm4961_vm11, %v2629_v52, %v2630_v35  ;;  %v2654_v34 = vunpack.i.l.bf16 %v3735_v36  ;;  %v2640_v17 = vunpack.i.h.bf16 %v2638_v60  ;;  %v2639_v51 = vunpack.i.l.bf16 %v2638_v60  ;;  %vm4962_vm1 = vmmov %vm4961_vm11 }
 0x253   :  { %v2665_v53 = vunpack.i.h.bf16 %v2663_v50  ;;  %v2664_v33 = vunpack.i.l.bf16 %v2663_v50  ;;  %2217 = vmatpush.bf16.msk.msrb.mxu0 %vm3472_vm3, %v2216_v27  ;;  %v518_v14 = vsel %vm4962_vm1, %v2635_v16, %v2629_v52  ;;  %vm4963_vm14 = vmmov %vm4962_vm1  ;;  %vm4964_vm11 = vcmp.lt.s32.totalorder %v3165_v31, 17  ;;  %v3808_v27 = vld [vmem:[#allocation6 + $0x4] sm:$0xf] }
 0x254   :  { %v516_v26 = vsel %vm4963_vm14, %v2630_v35, %v2634_v15  ;;  %v479_v0 = vsel %vm4964_vm11, %v2654_v34, %v2655_v10  ;;  %vm4965_vm13 = vcmp.lt.s32.totalorder %v3165_v31, 1  ;;  %vm3760_vm3 = vmand %vm4827_vm5, %vm4828_vm8  ;;  %vm4970_vm1 = vcmp.lt.s32.totalorder %v3165_v31, 16 }
 0x255   :  { %v538_v29 = vsel %vm4965_vm13, %v2645_v45, %v2639_v51  ;;  %vm4966_vm9 = vmmov %vm4965_vm13  ;;  %v499_v16 = vsel %vm4970_vm1, %v2664_v33, %v2665_v53  ;;  %v964_v5 = vsel %vm4830_vm15, %v2559_v44, %v2565_v22  ;;  %v2650_v43 = vunpack.i.h.bf16 %v3691_v32 }
 0x256   :  { %v537_v47 = vsel %vm4966_vm9, %v2639_v51, %v2640_v17  ;;  %vm4967_vm10 = vmmov %vm4966_vm9  ;;  %v2228_v15 = vpack.c.bf16 %v538_v29, %v518_v14  ;;  %vm4825_vm9 = vcmp.lt.s32.totalorder %v3165_v31, 125  ;;  %v2219_v28 = vpack.c.bf16 %v499_v16, %v479_v0 }
 0x257   :  { %v536_v11 = vsel %vm4967_vm10, %v2640_v17, %v2644_v1  ;;  %v2240_v35 = vpack.c.bf16 %v537_v47, %v517_v63  ;;  %vm3770_vm13 = vmand %vm940_vm6, %vm4824_vm0  ;;  %v935_v1 = vsel %vm4829_vm4, %v2549_v13, %v2555_v20  ;;  %v2649_v24 = vunpack.i.l.bf16 %v3691_v32 }
 0x258   :  { %v2252_v52 = vpack.c.bf16 %v536_v11, %v516_v26  ;;  %2229 = vmatpush.bf16.msk.msrb.mxu1 %vm3466_vm12, %v2228_v15  ;;  %vm4973_vm10 = vnez %v4884_v23  ;;  %vm4823_vm14 = vcmp.ge.s32.totalorder %v3183_v41, 3  ;;  %v992_v36 = vsel %vm3760_vm3, %v3682_v2, 0.0  ;;  %2220 = vmatpush.bf16.msk.msrb.mxu0 %vm3500_vm7, %v2219_v28  ;;  %v3828_v26 = vpop.permute.xlu0 %884 }
 0x259   :  { %2241 = vmatpush.bf16.msk.msrb.mxu2 %vm4973_vm10, %v2240_v35  ;;  %v2560_v60 = vunpack.i.h.bf16 %v3597_v55  ;;  %vm4974_vm11 = vnez %v4888_v30  ;;  %vm4975_vm1 = vcmask 1043456   ;;  %vm4976_vm12 = vcmp.lt.s32.totalorder %v3186_v42, 13  ;;  %v3819_v51 = vpop.permute.xlu2 %2667  ;;  %vm3824_vm7 = vmpackc.low %vm4899_vm2, %vm4823_vm14 }
 0x25a   :  { %2253 = vmatpush.bf16.msk.msrb.mxu3 %vm4974_vm11, %v2252_v52  ;;  %v1061_v62 = vsel %vm4975_vm1, %v1053_v4, 0  ;;  %v993_v23 = vsel %vm4976_vm12, %v3678_v21, 0.0  ;;  %v994_v32 = vsel %vm3770_vm13, %v986_v7, 0.0  ;;  %v2554_v2 = vunpack.i.l.bf16 %v3608_v61  ;;  %v2658_v21 = vpop.permute.xlu1 %2657 }
 0x25b   :  { %v914_v30 = vsel %vm4825_vm9, %v2569_v12, %v2575_v18  ;;  %v2564_v63 = vunpack.i.l.bf16 %v3615_v6  ;;  %v2258_v4 = vpack.c.bf16 %v964_v5, %v935_v1  ;;  %v2660_v17 = vunpack.i.h.bf16 %v2658_v21 }
 0x25c   :  { %1075 = vmatpush.bf16.msra.mxu0 %v1061_v62  ;;  %v2659_v7 = vunpack.i.l.bf16 %v2658_v21  ;;  %v1054_v14 = vpack.c.bf16 %v992_v36, %v992_v36  ;;  %vm4979_vm10 = vcmp.lt.s32.totalorder %v3165_v31, 17  ;;  %v1055_v29 = vpack.c.bf16 %v993_v23, %v993_v23 }
 0x25d   :  { %v477_v0 = vsel %vm4979_vm10, %v2649_v24, %v2650_v43  ;;  %v1056_v47 = vpack.c.bf16 %v994_v32, %v994_v32  ;;  %vm4980_vm11 = vcmask 588800   ;;  %vm4826_vm1 = vcmp.ge.s32.totalorder %v3176_v38, 3  ;;  %vm4981_vm12 = vmmov %vm4979_vm10 }
 0x25e   :  { %2141 = vmatmul.msk.bf16.vlgmr.msrb.gmra.mxu0 %vm4980_vm11, %v3808_v27  ;;  %v478_v11 = vsel %vm4981_vm12, %v2655_v10, %v2649_v24  ;;  %vm4982_vm14 = vcmp.lt.s32.totalorder %v3165_v31, 16  ;;  %v476_v5 = vsel %vm4979_vm10, %v2650_v43, %v2654_v34  ;;  %vm4985_vm11 = vcmp.lt.s32.totalorder %v3183_v41, 13 }
 0x25f   :  { %v498_v16 = vsel %vm4982_vm14, %v2665_v53, %v2659_v7  ;;  %vm4983_vm0 = vmmov %vm4982_vm14  ;;  %v4986_v10 = vmov 0  ;;  %v2570_v53 = vunpack.i.h.bf16 %v3613_v3  ;;  %v2574_v28 = vunpack.i.l.bf16 %v3606_v8 }
 0x260   :  { %v497_v15 = vsel %vm4983_vm0, %v2659_v7, %v2660_v17  ;;  %vm4984_vm9 = vmmov %vm4983_vm0  ;;  %2259 = vmatpush.bf16.msk.msra.mxu0 %vm3824_vm7, %v2258_v4  ;;  %v2231_v52 = vpack.c.bf16 %v498_v16, %v478_v11  ;;  %vm4832_vm0 = vcmp.ge.s32.totalorder %v3180_v40, 3  ;;  %v934_v43 = vsel %vm4829_vm4, %v2555_v20, %v2550_v46  ;;  %v2929_v7 = vld [vmem:[#allocation8] sm:$0xff]  ;;  %v5024_v11 = vld [vmem:[#allocation13_spill] sm:$0xff] }
 0x261   :  { %v496_v35 = vsel %vm4984_vm9, %v2660_v17, %v2664_v33  ;;  %v2243_v1 = vpack.c.bf16 %v497_v15, %v477_v0  ;;  %vm3850_vm12 = vmpackc.low %vm4985_vm11, %vm4899_vm2  ;;  %v2261_v33 = vpack.c.bf16 %v914_v30, %v3525_v56  ;;  %v963_v56 = vsel %vm4830_vm15, %v2565_v22, %v2560_v60  ;;  %v3929_v23 = vpop.permute.xlu2 %801 }
 0x262   :  { %v4987_v10 = vsel %vm3850_vm12, 4294967295, %v4986_v10  ;;  %v2255_v24 = vpack.c.bf16 %v496_v35, %v476_v5  ;;  %vm3862_vm9 = vmand %vm4827_vm5, %vm4826_vm1  ;;  %vm4990_vm14 = vnez %v4925_v19  ;;  %vm4991_vm10 = vnez %v4895_v49  ;;  %v3913_v62 = vpop.permute.xlu1 %2672 }
 0x263   :  { %2232 = vmatpush.bf16.msk.msrb.mxu1 %vm4990_vm14, %v2231_v52  ;;  %2244 = vmatpush.bf16.msk.msrb.mxu2 %vm4991_vm10, %v2243_v1  ;;  %vm4992_vm11 = vcmask 1043456   ;;  %vm4831_vm1 = vcmp.ge.s32.totalorder %v3186_v42, 3  ;;  %vm3883_vm5 = vmpackc.low %vm4828_vm8, %vm4899_vm2  ;;  %v4993_v61 = vmov 0  ;;  %v933_v6 = vsel %vm4829_vm4, %v2550_v46, %v2554_v2 }
 0x264   :  { %v1064_v36 = vsel %vm4992_vm11, %v1054_v14, 0  ;;  %v4994_v61 = vsel %vm3883_vm5, 4294967295, %v4993_v61  ;;  %v962_v19 = vsel %vm4830_vm15, %v2560_v60, %v2564_v63  ;;  %vm4995_vm14 = vnez %v4901_v58  ;;  %vm4996_vm10 = vmmov %vm4992_vm11  ;;  %2262 = vmatpush.bf16.msk.msra.mxu0 %vm3850_vm12, %v2261_v33  ;;  %v5020_v14 = vld [vmem:[#allocation15_spill] sm:$0xff] }
 0x265   :  { %2256 = vmatpush.bf16.msk.msrb.mxu3 %vm4995_vm14, %v2255_v24  ;;  %v1067_v49 = vsel %vm4996_vm10, %v1055_v29, 0  ;;  %vm3898_vm11 = vmand %vm940_vm6, %vm4832_vm0  ;;  %v936_v22 = vsel %vm4829_vm4, %v2554_v2, %v2549_v13  ;;  %v965_v58 = vsel %vm4830_vm15, %v2564_v63, %v2559_v44  ;;  %vm5003_vm4 = vcmp.lt.s32.totalorder %v3165_v31, 125 }
 0x266   :  { %vm4999_vm14 = vmmov %vm4996_vm10  ;;  %vm5000_vm10 = vcmp.lt.s32.totalorder %v3174_v37, 208  ;;  %v913_v55 = vsel %vm5003_vm4, %v2575_v18, %v2570_v53  ;;  %v2270_v13 = vpack.c.bf16 %v963_v56, %v934_v43  ;;  %v5006_v32 = vmov 0 }
 0x267   :  { %1088 = vmatpush.bf16.msra.mxu1 %v1064_v36  ;;  %1101 = vmatpush.bf16.msra.mxu2 %v1067_v49  ;;  %v1070_v60 = vsel %vm4999_vm14, %v1056_v47, 0  ;;  %vm3919_vm8 = vmpackc.low %vm5000_vm10, %vm3862_vm9  ;;  %vm5005_vm14 = vcmask 588800   ;;  %v2282_v8 = vpack.c.bf16 %v962_v19, %v933_v6  ;;  %v2670_v18 = vunpack.i.h.bf16 %v3819_v51 }
 0x268   :  { %vm5004_vm15 = vmmov %vm5003_vm4  ;;  %2143 = vmatmul.msk.bf16.vlgmr.msrb.gmra.mxu2 %vm5005_vm14, %v3808_v27  ;;  %v2669_v2 = vunpack.i.l.bf16 %v3819_v51  ;;  %v5009_v30 = vmov 0  ;;  %v2294_v63 = vpack.c.bf16 %v965_v58, %v936_v22  ;;  %v5014_v21 = vmov 0  ;;  %v5019_v51 = vld [vmem:[#allocation14_spill] sm:$0xff] }
 0x269   :  { %v912_v44 = vsel %vm5004_vm15, %v2570_v53, %v2574_v28  ;;  %1114 = vmatpush.bf16.msra.mxu3 %v1070_v60  ;;  %vm3936_vm9 = vmpackc.low %vm4899_vm2, %vm4831_vm1  ;;  %vm5012_vm1 = vcmp.lt.s32.totalorder %v3165_v31, 125  ;;  %v2273_v3 = vpack.c.bf16 %v913_v55, %v3527_v57  ;;  %v5017_v17 = vmov 0  ;;  %v879_v19 = vpop.permute.xlu2 %878 }
 0x26a   :  { %v5007_v32 = vsel %vm3936_vm9, 4294967295, %v5006_v32  ;;  %vm5008_vm4 = vmmov %vm5005_vm14  ;;  %vm4837_vm14 = vcmp.ge.s32.totalorder %v3318_v54, 48  ;;  %v915_v46 = vsel %vm5012_vm1, %v2574_v28, %v2569_v12  ;;  %v2285_v4 = vpack.c.bf16 %v912_v44, %v3529_v59  ;;  %v3971_v12 = vpop.permute.xlu0 %2677  ;;  %v835_v24 = vpop.permute.xlu1 %834 }
 0x26b   :  { %2144 = vmatmul.msk.bf16.vlgmr.msrb.gmra.mxu3 %vm5008_vm4, %v3808_v27  ;;  %vm3948_vm15 = vmpackc.low %vm940_vm6, %vm3898_vm11  ;;  %2271 = vmatpush.bf16.msk.msra.mxu1 %vm3919_vm8, %v2270_v13  ;;  %vm5013_vm6 = vcmp.lt.s32.totalorder %v3186_v42, 13  ;;  %vm5016_vm1 = vcmp.lt.s32.totalorder %v3180_v40, 13  ;;  %v2585_v57 = vunpack.i.h.bf16 %v5019_v51  ;;  %v2584_v59 = vunpack.i.l.bf16 %v5019_v51 }
 0x26c   :  { %v5010_v30 = vsel %vm3948_vm15, 4294967295, %v5009_v30  ;;  %vm5011_vm10 = vmmov %vm5008_vm4  ;;  %vm4836_vm4 = vcmp.lt.s32.totalorder %v3165_v31, 3  ;;  %2283 = vmatpush.bf16.msk.msra.mxu2 %vm3936_vm9, %v2282_v8  ;;  %v2580_v0 = vunpack.i.h.bf16 %v5020_v14  ;;  %v2579_v29 = vunpack.i.l.bf16 %v5020_v14 }
 0x26d   :  { %2142 = vmatmul.msk.bf16.vlgmr.msrb.gmra.mxu1 %vm5011_vm10, %v3808_v27  ;;  %vm3965_vm11 = vmpackc.low %vm5013_vm6, %vm4899_vm2  ;;  %v3063_v27 = vmov 9   ;;  %2295 = vmatpush.bf16.msk.msra.mxu3 %vm3948_vm15, %v2294_v63  ;;  %v2297_v16 = vpack.c.bf16 %v915_v46, %v5024_v11  ;;  %v887_v15 = vsel %vm4836_vm4, %v2670_v18, %v3828_v26  ;;  %v888_v35 = vsel %vm4836_vm4, %v2669_v2, %v2670_v18  ;;  %v1447_v11 = vld [vmem:[#allocation3] sm:$0xff] }
 0x26e   :  { %v5015_v21 = vsel %vm3965_vm11, 4294967295, %v5014_v21  ;;  %2682 = vset.pattern.permute.xlu0 %v3063_v27  ;;  %vm3978_vm10 = vmpackc.low %vm5016_vm1, %vm4899_vm2  ;;  %vm5025_vm12 = vcmp.lt.s32.totalorder %v3180_v40, 13  ;;  %vm5026_vm15 = vcmp.ge.s32.totalorder %v3180_v40, 3  ;;  %v5027_v52 = vmov 0 }
 0x26f   :  { %v5018_v17 = vsel %vm3978_vm10, 4294967295, %v5017_v17  ;;  %1135 = vperm.xlu0 %2682, %v2929_v7   ;;  %vm5021_vm1 = vmmov %vm5013_vm6  ;;  %v2680_v1 = vunpack.i.h.bf16 %v3971_v12  ;;  %v2679_v5 = vunpack.i.l.bf16 %v3971_v12  ;;  %v2675_v53 = vunpack.i.h.bf16 %v3913_v62  ;;  %2274 = vmatpush.bf16.msk.msra.mxu1 %vm3883_vm5, %v2273_v3  ;;  %v1000_v12 = vld [vmem:[#allocation6 + $0x8] sm:$0xf] }
 0x270   :  { %vm3993_vm0 = vmand %vm4837_vm14, %vm5021_vm1  ;;  %v2674_v33 = vunpack.i.l.bf16 %v3913_v62  ;;  %vm5029_vm1 = vcmp.lt.s32.totalorder %v3183_v41, 13  ;;  %vm5030_vm4 = vcmp.ge.s32.totalorder %v3431_v48, 48  ;;  %2286 = vmatpush.bf16.msk.msra.mxu2 %vm3965_vm11, %v2285_v4  ;;  %vm5033_vm6 = vcmp.ge.s32.totalorder %v3186_v42, 3 }
 0x271   :  { %vm4008_vm9 = vmpackc.low %vm5026_vm15, %vm5025_vm12  ;;  %2298 = vmatpush.bf16.msk.msra.mxu3 %vm3978_vm10, %v2297_v16  ;;  %vm5047_vm10 = vcmp.lt.s32.totalorder %v3165_v31, 48  ;;  %v5055_v18 = vmov 0  ;;  %v1128_v14 = vpop.permute.xlu2 %1127  ;;  %v1449_v16 = vld [vmem:[#allocation3 + $0x10] sm:$0xff] }
 0x272   :  { %v5028_v52 = vsel %vm4008_vm9, 4294967295, %v5027_v52  ;;  %vm4022_vm14 = vmand %vm5030_vm4, %vm5029_vm1  ;;  %vm5036_vm4 = vcmp.lt.s32.totalorder %v3165_v31, 45  ;;  %v838_v62 = vsel %vm5047_vm10, %v2679_v5, %v2680_v1  ;;  %v796_v27 = vpop.permute.xlu0 %795  ;;  %v829_v4 = vpop.permute.xlu1 %828 }
 0x273   :  { %vm4034_vm5 = vmpackc.low %vm5033_vm6, %vm3993_vm0  ;;  %v858_v43 = vsel %vm5036_vm4, %v2580_v0, %v2584_v59 }
 0x274   :  { %vm5037_vm1 = vmmov %vm5036_vm4  ;;  %v2300_v49 = vpack.c.bf16 %v887_v15, %v858_v43  ;;  %vm5042_vm4 = vcmp.lt.s32.totalorder %v3165_v31, 3  ;;  %v1450_v15 = vld [vmem:[#allocation3 + $0x18] sm:$0xff] }
 0x275   :  { %v859_v56 = vsel %vm5037_vm1, %v2579_v29, %v2580_v0  ;;  %vm5038_vm15 = vmmov %vm5037_vm1  ;;  %v889_v22 = vsel %vm5042_vm4, %v879_v19, %v2669_v2  ;;  %v5058_v2 = vmov 0 }
 0x276   :  { %v860_v36 = vsel %vm5038_vm15, %v2585_v57, %v2579_v29  ;;  %vm5039_vm12 = vmmov %vm5037_vm1  ;;  %v2288_v20 = vpack.c.bf16 %v888_v35, %v859_v56  ;;  %vm5044_vm15 = vcmp.ge.s32.totalorder %v3183_v41, 3  ;;  %2301 = vmatpush.bf16.msk.msra.mxu3 %vm4008_vm9, %v2300_v49  ;;  %vm5065_vm9 = vcmp.lt.s32.totalorder %v3165_v31, 48 }
 0x277   :  { %v861_v6 = vsel %vm5039_vm12, %v2584_v59, %v2585_v57  ;;  %vm5040_vm0 = vmmov %vm5033_vm6  ;;  %vm5041_vm6 = vcmp.ge.s32.totalorder %v3318_v54, 48  ;;  %v2276_v13 = vpack.c.bf16 %v889_v22, %v860_v36  ;;  %v839_v57 = vsel %vm5065_vm9, %v829_v4, %v2679_v5 }
 0x278   :  { %vm818_vm11 = vmand %vm5041_vm6, %vm5040_vm0  ;;  %vm5048_vm0 = vcmp.lt.s32.totalorder %v3165_v31, 51  ;;  %vm5049_vm6 = vcmp.lt.s32.totalorder %v3176_v38, 13  ;;  %2289 = vmatpush.bf16.msk.msra.mxu2 %vm4034_vm5, %v2288_v20 }
 0x279   :  { %vm5043_vm1 = vmmov %vm5042_vm4  ;;  %v805_v55 = vsel %vm5048_vm0, %v2674_v33, %v2675_v53  ;;  %vm5050_vm4 = vcmp.ge.s32.totalorder %v3176_v38, 3  ;;  %vm5057_vm0 = vcmp.ge.s32.totalorder %v3180_v40, 3 }
 0x27a   :  { %v890_v58 = vsel %vm5043_vm1, %v3828_v26, %v879_v19  ;;  %vm4061_vm12 = vmpackc.low %vm5044_vm15, %vm4022_vm14  ;;  %v2291_v46 = vpack.c.bf16 %v838_v62, %v805_v55  ;;  %v1455_v35 = vpop.permute.xlu1 %1454 }
 0x27b   :  { %v2264_v44 = vpack.c.bf16 %v890_v58, %v861_v6  ;;  %vm4073_vm1 = vmpackc.low %vm5050_vm4, %vm5049_vm6  ;;  %vm5061_vm4 = vcmp.ge.s32.totalorder %v3183_v41, 3  ;;  %v1459_v5 = vmul.f32 %v1455_v35, %v1449_v16  ;;  %v1448_v6 = vld [vmem:[#allocation3 + $0x8] sm:$0xff] }
 0x27c   :  { %vm5053_vm14 = vmmov %vm5047_vm10  ;;  %vm5054_vm10 = vcmp.ge.s32.totalorder %v3318_v54, 48  ;;  %2277 = vmatpush.bf16.msk.msra.mxu1 %vm4073_vm1, %v2276_v13  ;;  %v1458_v49 = vmul.f32 %v1455_v35, %v1448_v6 }
 0x27d   :  { %v837_v8 = vsel %vm5053_vm14, %v2680_v1, %v835_v24  ;;  %vm4083_vm15 = vmpackc.low %vm5054_vm10, %vm818_vm11  ;;  %2265 = vmatpush.bf16.msk.msra.mxu0 %vm4061_vm12, %v2264_v44  ;;  %vm5060_vm11 = vcmp.lt.s32.totalorder %v3165_v31, 51  ;;  %vm5062_vm14 = vcmp.ge.s32.totalorder %v3431_v48, 48  ;;  %v1457_v1 = vmul.f32 %v1455_v35, %v1447_v11 }
 0x27e   :  { %v5056_v18 = vsel %vm4083_vm15, 4294967295, %v5055_v18  ;;  %vm4094_vm6 = vmpackc.low %vm4899_vm2, %vm5057_vm0  ;;  %v804_v63 = vsel %vm5060_vm11, %v2675_v53, %v3929_v23  ;;  %2292 = vmatpush.bf16.msk.msra.mxu2 %vm4083_vm15, %v2291_v46  ;;  %v1460_v53 = vmul.f32 %v1455_v35, %v1450_v15 }
 0x27f   :  { %v5059_v2 = vsel %vm4094_vm6, 4294967295, %v5058_v2  ;;  %vm816_vm10 = vmand %vm5062_vm14, %vm5061_vm4  ;;  %v2303_v3 = vpack.c.bf16 %v837_v8, %v804_v63 }
 0x280   :  { %vm5063_vm0 = vmmov %vm5060_vm11 }
 0x281   :  { %v806_v7 = vsel %vm5063_vm0, %v796_v27, %v2674_v33  ;;  %vm5064_vm11 = vmmov %vm5063_vm0  ;;  %2304 = vmatpush.bf16.msk.msra.mxu3 %vm4094_vm6, %v2303_v3  ;;  %vm5069_vm0 = vcmp.ge.s32.totalorder %v3176_v38, 3  ;;  %v1463_v33 = vpop.permute.xlu2 %1462 }
 0x282   :  { %v807_v51 = vsel %vm5064_vm11, %v3929_v23, %v796_v27  ;;  %vm5066_vm4 = vmmov %vm5065_vm9  ;;  %v2279_v47 = vpack.c.bf16 %v839_v57, %v806_v7  ;;  %vm5072_vm9 = vcmask 588800   ;;  %v1465_v28 = vadd.f32 %v1463_v33, %v1457_v1 }
 0x283   :  { %v840_v59 = vsel %vm5066_vm4, %v835_v24, %v829_v4  ;;  %vm4122_vm15 = vmpackc.low %vm5062_vm14, %vm816_vm10  ;;  %2147 = vmatmul.msk.bf16.vlgmr.msra.gmra.mxu2 %vm5072_vm9, %v1000_v12  ;;  %v1468_v24 = vadd.f32 %v1463_v33, %v1460_v53  ;;  %v1467_v43 = vadd.f32 %v1463_v33, %v1459_v5  ;;  %v1466_v22 = vadd.f32 %v1463_v33, %v1458_v49 }
 0x284   :  { %v2267_v29 = vpack.c.bf16 %v840_v59, %v807_v51  ;;  %vm4129_vm11 = vmpackc.low %vm4899_vm2, %vm5069_vm0  ;;  %v4141_v56 = vmax.f32 %v1465_v28, 0.0 }
 0x285   :  { %vm5073_vm6 = vmmov %vm5072_vm9  ;;  %2280 = vmatpush.bf16.msk.msra.mxu1 %vm4129_vm11, %v2279_v47  ;;  %v4143_v36 = vmax.f32 %v1468_v24, 0.0  ;;  %v4149_v20 = vmax.f32 %v1467_v43, 0.0  ;;  %v4157_v62 = vmax.f32 %v1466_v22, 0.0 }
 0x286   :  { %2148 = vmatmul.msk.bf16.vlgmr.msra.gmra.mxu3 %vm5073_vm6, %v1000_v12  ;;  %2268 = vmatpush.bf16.msk.msra.mxu0 %vm4122_vm15, %v2267_v29  ;;  %vm5074_vm10 = vmmov %vm5073_vm6 }
 0x287   :  { %vm5075_vm4 = vmmov %vm5073_vm6  ;;  %v4147_v19 = vpack.i.bf16 %v4143_v36, %v4141_v56  ;;  %v2705_v58 = vpack.i.bf16 %v4149_v20, %v4141_v56  ;;  %v2710_v55 = vpack.i.bf16 %v4157_v62, %v4143_v36  ;;  %v2700_v44 = vpack.i.bf16 %v4149_v20, %v4157_v62 }
 0x288   :  { %2146 = vmatmul.msk.bf16.vlgmr.msra.gmra.mxu1 %vm5075_vm4, %v1000_v12  ;;  %vm5077_vm6 = vcmp.lt.s32.totalorder %v3165_v31, 77  ;;  %vm5082_vm4 = vcmp.lt.s32.totalorder %v3186_v42, 13 }
 0x289   :  { %2145 = vmatmul.msk.bf16.vlgmr.msra.gmra.mxu0 %vm5074_vm10, %v1000_v12  ;;  %2686 = vrot.lane.b32.xlu1 %v4147_v19, %s3048_s6  ;;  %vm5078_vm14 = vmmov %vm5077_vm6  ;;  %vm5081_vm10 = vcmp.lt.s32.totalorder %v3183_v41, 13 }
 0x28a   :  { %2691 = vrot.lane.b32.xlu0 %v4147_v19, %s3064_s15  ;;  %2701 = vrot.lane.b32.xlu2 %v2700_v44, %s3048_s6  ;;  %vm5079_vm0 = vmmov %vm5077_vm6 }
 0x28b   :  { %vm5080_vm9 = vmmov %vm5079_vm0 }
 0x291   :  { %2696 = vrot.lane.b32.xlu1 %v4147_v19, %s3046_s5 }
 0x292   :  { %2706 = vrot.lane.b32.xlu0 %v2705_v58, %s3040_s2  ;;  %2716 = vrot.lane.b32.xlu2 %v2700_v44, %s3064_s15 }
 0x299   :  { %2711 = vrot.lane.b32.xlu1 %v2710_v55, %s3040_s2 }
 0x2db   :  { %v4169_v13 = vpop.f32.mrf.mxu0 }
 0x2e1   :  { %v1136_v59 = vpop.permute.xlu0 %1135 }
 0x2e3   :  { %v716_v46 = vpop.f32.mrf.mxu0 }
 0x2ea   :  { %v4171_v8 = vpop.f32.mrf.mxu1 }
 0x2eb   :  { %v4173_v63 = vpop.f32.mrf.mxu2 }
 0x2ee   :  { %v4175_v27 = vpop.f32.mrf.mxu3 }
 0x2ef   :  { %5076 = vst [vmem:[#allocation14_spill] sm:$0xff] %v4175_v27 }
 0x2f2   :  { %v729_v3 = vpop.f32.mrf.mxu1 }
 0x2f3   :  { %v742_v4 = vpop.f32.mrf.mxu2 }
 0x2f4   :  { %v2815_v4 = vpack.i.bf16 %v4141_v56, %v4143_v36 }
 0x2f6   :  { %v755_v12 = vpop.f32.mrf.mxu3 }
 0x2f7   :  { %v4223_v12 = vpop.permute.xlu2 %2701 }
 0x305   :  { %v1094_v57 = vpop.f32.mrf.mxu1 }
 0x306   :  { %v1081_v7 = vpop.f32.mrf.mxu0  ;;  %v1131_v29 = vmul.f32 %v1128_v14, %v1094_v57  ;;  %v1107_v47 = vpop.f32.mrf.mxu2 }
 0x307   :  { %v1130_v51 = vmul.f32 %v1128_v14, %v1081_v7  ;;  %v1132_v16 = vmul.f32 %v1128_v14, %v1107_v47  ;;  %v4225_v7 = vpop.permute.xlu2 %2716 }
 0x308   :  { %v1139_v35 = vadd.f32 %v1136_v59, %v1131_v29 }
 0x309   :  { %v1138_v11 = vadd.f32 %v1136_v59, %v1130_v51  ;;  %v1120_v15 = vpop.f32.mrf.mxu3  ;;  %v1140_v53 = vadd.f32 %v1136_v59, %v1132_v16  ;;  %v4227_v51 = vpop.permute.xlu1 %2686 }
 0x30a   :  { %v1133_v1 = vmul.f32 %v1128_v14, %v1120_v15  ;;  %v4179_v33 = vmax.f32 %v1139_v35, 0.0 }
 0x30b   :  { %v4177_v5 = vmax.f32 %v1138_v11, 0.0  ;;  %v4181_v24 = vmax.f32 %v1140_v53, 0.0 }
 0x30c   :  { %v1141_v28 = vadd.f32 %v1136_v59, %v1133_v1  ;;  %v4229_v59 = vpop.permute.xlu0 %2691 }
 0x30d   :  { %v1096_v49 = vpop.f32.mrf.mxu1  ;;  %v2730_v22 = vpack.i.bf16 %v4181_v24, %v4177_v5  ;;  %v2760_v46 = vpack.i.bf16 %v4181_v24, %v4179_v33 }
 0x30e   :  { %v4183_v43 = vmax.f32 %v1141_v28, 0.0  ;;  %v1083_v6 = vpop.f32.mrf.mxu0  ;;  %v1109_v58 = vpop.f32.mrf.mxu2 }
 0x30f   :  { %2731 = vrot.lane.b32.xlu0 %v2730_v22, %s3054_s9  ;;  %2721 = vrot.lane.b32.xlu1 %v2730_v22, %s3052_s7 }
 0x310   :  { %v2725_v55 = vpack.i.bf16 %v4179_v33, %v4183_v43  ;;  %v2775_v3 = vpack.i.bf16 %v4177_v5, %v4183_v43 }
 0x311   :  { %v1122_v14 = vpop.f32.mrf.mxu3  ;;  %v4231_v29 = vpop.permute.xlu1 %2696 }
 0x312   :  { %2726 = vrot.lane.b32.xlu2 %v2725_v55, %s3052_s7 }
 0x314   :  { %v4233_v11 = vpop.permute.xlu0 %2706 }
 0x317   :  { %2746 = vrot.lane.b32.xlu0 %v2725_v55, %s3053_s8  ;;  %2736 = vrot.lane.b32.xlu1 %v2725_v55, %s3054_s9 }
 0x31a   :  { %2741 = vrot.lane.b32.xlu2 %v2730_v22, %s3053_s8 }
 0x31f   :  { %2761 = vrot.lane.b32.xlu0 %v2760_v46, %s3056_s11  ;;  %2751 = vrot.lane.b32.xlu1 %v2730_v22, %s3055_s10 }
 0x322   :  { %2756 = vrot.lane.b32.xlu2 %v2725_v55, %s3055_s10 }
 0x327   :  { %2776 = vrot.lane.b32.xlu0 %v2775_v3, %s3058_s12  ;;  %2766 = vrot.lane.b32.xlu1 %v2775_v3, %s3056_s11 }
 0x32a   :  { %2771 = vrot.lane.b32.xlu2 %v2760_v46, %s3058_s12 }
 0x32f   :  { %2786 = vrot.lane.b32.xlu0 %v2775_v3, %s3060_s14  ;;  %2796 = vrot.lane.b32.xlu1 %v2760_v46, %s3059_s13 }
 0x332   :  { %2781 = vrot.lane.b32.xlu2 %v2760_v46, %s3060_s14 }
 0x337   :  { %2791 = vrot.lane.b32.xlu0 %v2700_v44, %s3046_s5  ;;  %2801 = vrot.lane.b32.xlu1 %v2700_v44, %s3065_s16 }
 0x33a   :  { %2806 = vrot.lane.b32.xlu2 %v2775_v3, %s3059_s13 }
 0x33f   :  { %2816 = vrot.lane.b32.xlu0 %v2815_v4, %s3042_s29  ;;  %2821 = vrot.lane.b32.xlu1 %v2700_v44, %s3039_s0 }
 0x342   :  { %2811 = vrot.lane.b32.xlu2 %v2700_v44, %s3042_s29 }
 0x347   :  { %2831 = vrot.lane.b32.xlu0 %v4147_v19, %s3065_s16  ;;  %2836 = vrot.lane.b32.xlu1 %v4147_v19, %s3039_s0 }
 0x34a   :  { %2826 = vrot.lane.b32.xlu2 %v2700_v44, %s3044_s4  ;;  %v4235_v44 = vpop.permute.xlu1 %2711 }
 0x352   :  { %2841 = vrot.lane.b32.xlu2 %v4147_v19, %s3044_s4 }
 0x36c   :  { %v2727_v57 = vpop.permute.xlu2 %2726 }
 0x36d   :  { %v2729_v35 = vunpack.i.h.bf16 %v2727_v57  ;;  %v2728_v1 = vunpack.i.l.bf16 %v2727_v57 }
 0x374   :  { %v2742_v47 = vpop.permute.xlu2 %2741 }
 0x37c   :  { %v4237_v16 = vpop.permute.xlu2 %2756 }
 0x381   :  { %v2732_v15 = vpop.permute.xlu0 %2731  ;;  %v2722_v19 = vpop.permute.xlu1 %2721 }
 0x382   :  { %v2724_v53 = vunpack.i.h.bf16 %v2722_v19  ;;  %v2723_v28 = vunpack.i.l.bf16 %v2722_v19 }
 0x384   :  { %v1298_v6 = vsel %vm5077_vm6, %v2724_v53, %v2728_v1  ;;  %v1299_v49 = vsel %vm5078_vm14, %v2729_v35, %v2724_v53  ;;  %v1300_v22 = vsel %vm5079_vm0, %v2723_v28, %v2729_v35  ;;  %v1301_v58 = vsel %vm5080_vm9, %v2728_v1, %v2723_v28  ;;  %v4255_v53 = vpop.permute.xlu2 %2771 }
 0x385   :  { %v1302_v55 = vsel %vm5081_vm10, %v1300_v22, 0.0  ;;  %v1303_v14 = vsel %vm3760_vm3, %v1299_v49, 0.0  ;;  %v1304_v46 = vsel %vm5082_vm4, %v1298_v6, 0.0  ;;  %v1305_v19 = vsel %vm3770_vm13, %v1301_v58, 0.0 }
 0x386   :  { %v1364_v3 = vpack.c.bf16 %v1302_v55, %v1302_v55  ;;  %v1365_v4 = vpack.c.bf16 %v1303_v14, %v1303_v14  ;;  %v1366_v57 = vpack.c.bf16 %v1304_v46, %v1304_v46  ;;  %v1367_v35 = vpack.c.bf16 %v1305_v19, %v1305_v19 }
 0x387   :  { %vm5083_vm6 = vcmask 1043456   ;;  %v2744_v49 = vunpack.i.h.bf16 %v2742_v47  ;;  %v2743_v55 = vunpack.i.l.bf16 %v2742_v47  ;;  %v2734_v58 = vunpack.i.h.bf16 %v2732_v15 }
 0x388   :  { %v1372_v1 = vsel %vm5083_vm6, %v1364_v3, 0  ;;  %vm5084_vm14 = vmmov %vm5083_vm6  ;;  %v2733_v19 = vunpack.i.l.bf16 %v2732_v15  ;;  %vm5087_vm13 = vcmp.lt.s32.totalorder %v3165_v31, 80 }
 0x389   :  { %v1375_v28 = vsel %vm5084_vm14, %v1365_v4, 0  ;;  %vm5085_vm0 = vmmov %vm5083_vm6  ;;  %v2747_v25 = vpop.permute.xlu0 %2746  ;;  %1386 = vmatpush.bf16.msrb.mxu0 %v1372_v1  ;;  %v2737_v45 = vpop.permute.xlu1 %2736  ;;  %vm5091_vm6 = vcmp.lt.s32.totalorder %v3165_v31, 83 }
 0x38a   :  { %v1378_v22 = vsel %vm5085_vm0, %v1366_v57, 0  ;;  %1399 = vmatpush.bf16.msrb.mxu1 %v1375_v28  ;;  %vm5086_vm3 = vmmov %vm5085_vm0  ;;  %v2749_v14 = vunpack.i.h.bf16 %v2747_v25  ;;  %v2748_v46 = vunpack.i.l.bf16 %v2747_v25  ;;  %v2739_v27 = vunpack.i.h.bf16 %v2737_v45 }
 0x38b   :  { %v1381_v6 = vsel %vm5086_vm3, %v1367_v35, 0  ;;  %1412 = vmatpush.bf16.msrb.mxu2 %v1378_v22  ;;  %v2738_v3 = vunpack.i.l.bf16 %v2737_v45  ;;  %vm5088_vm9 = vmmov %vm5087_vm13 }
 0x38c   :  { %1425 = vmatpush.bf16.msrb.mxu3 %v1381_v6  ;;  %v1279_v4 = vsel %vm5087_vm13, %v2749_v14, %v2744_v49  ;;  %v1280_v57 = vsel %vm5088_vm9, %v2743_v55, %v2749_v14  ;;  %vm5089_vm10 = vmmov %vm5088_vm9  ;;  %v1259_v1 = vsel %vm5091_vm6, %v2739_v27, %v2734_v58  ;;  %vm5095_vm13 = vnez %v5007_v32 }
 0x38d   :  { %v1278_v35 = vsel %vm5089_vm10, %v2744_v49, %v2748_v46  ;;  %vm5090_vm4 = vmmov %vm5088_vm9  ;;  %v2318_v25 = vpack.c.bf16 %v1279_v4, %v1259_v1  ;;  %v4281_v49 = vpop.permute.xlu2 %2781  ;;  %vm5096_vm9 = vnez %v5010_v30  ;;  %v2704_v32 = vunpack.i.h.bf16 %v4223_v12 }
 0x38e   :  { %v1281_v47 = vsel %vm5090_vm4, %v2748_v46, %v2743_v55  ;;  %vm5092_vm14 = vmmov %vm5091_vm6  ;;  %v2689_v55 = vunpack.i.h.bf16 %v4227_v51  ;;  %v2759_v46 = vunpack.i.h.bf16 %v4237_v16  ;;  %v2774_v30 = vunpack.i.h.bf16 %v4255_v53 }
 0x38f   :  { %v1260_v15 = vsel %vm5092_vm14, %v2733_v19, %v2739_v27  ;;  %vm5093_vm0 = vmmov %vm5091_vm6  ;;  %2319 = vmatpush.bf16.msk.msrb.mxu1 %vm3919_vm8, %v2318_v25  ;;  %vm4844_vm8 = vcmp.lt.s32.totalorder %v3183_v41, 1  ;;  %vm5101_vm14 = vcmp.lt.s32.totalorder %v3165_v31, 45 }
 0x390   :  { %v1258_v28 = vsel %vm5093_vm0, %v2734_v58, %v2738_v3  ;;  %v2306_v22 = vpack.c.bf16 %v1280_v57, %v1260_v15  ;;  %vm5094_vm3 = vmmov %vm5093_vm0  ;;  %v2758_v58 = vunpack.i.l.bf16 %v4237_v16  ;;  %v2688_v57 = vunpack.i.l.bf16 %v4227_v51 }
 0x391   :  { %v1261_v6 = vsel %vm5094_vm3, %v2738_v3, %v2733_v19  ;;  %v2330_v14 = vpack.c.bf16 %v1278_v35, %v1258_v28  ;;  %v2762_v27 = vpop.permute.xlu0 %2761  ;;  %v2752_v50 = vpop.permute.xlu1 %2751  ;;  %v2703_v35 = vunpack.i.l.bf16 %v4223_v12  ;;  %vm4846_vm0 = vcmp.lt.s32.totalorder %v3431_v48, 16 }
 0x392   :  { %v2342_v45 = vpack.c.bf16 %v1281_v47, %v1261_v6  ;;  %2307 = vmatpush.bf16.msk.msrb.mxu0 %vm3824_vm7, %v2306_v22  ;;  %v2764_v19 = vunpack.i.h.bf16 %v2762_v27  ;;  %v2763_v3 = vunpack.i.l.bf16 %v2762_v27  ;;  %v2754_v9 = vunpack.i.h.bf16 %v2752_v50 }
 0x393   :  { %2331 = vmatpush.bf16.msk.msrb.mxu2 %vm5095_vm13, %v2330_v14  ;;  %v2753_v4 = vunpack.i.l.bf16 %v2752_v50  ;;  %v2773_v47 = vunpack.i.l.bf16 %v4255_v53  ;;  %vm5097_vm7 = vcmp.lt.s32.totalorder %v3165_v31, 125  ;;  %vm5102_vm3 = vnez %v4994_v61 }
 0x394   :  { %2343 = vmatpush.bf16.msk.msrb.mxu3 %vm5096_vm9, %v2342_v45  ;;  %v1238_v16 = vsel %vm5097_vm7, %v2754_v9, %v2758_v58  ;;  %vm5098_vm10 = vmmov %vm5097_vm7  ;;  %v1195_v22 = vsel %vm5101_vm14, %v2763_v3, %v2764_v19  ;;  %vm5103_vm13 = vnez %v5015_v21  ;;  %vm4845_vm9 = vcmp.lt.s32.totalorder %v3186_v42, 1 }
 0x395   :  { %v1239_v1 = vsel %vm5098_vm10, %v2759_v46, %v2754_v9  ;;  %v2333_v51 = vpack.c.bf16 %v1238_v16, %v4181_v24  ;;  %vm5099_vm4 = vmmov %vm5097_vm7  ;;  %vm1613_vm7 = vcmp.lt.s32.totalorder %v3318_v54, 16  ;;  %vm5104_vm10 = vcmp.lt.s32.totalorder %v3165_v31, 1 }
 0x396   :  { %v2321_v15 = vpack.c.bf16 %v1239_v1, %v4179_v33  ;;  %v1240_v28 = vsel %vm5099_vm4, %v2753_v4, %v2759_v46  ;;  %vm5100_vm6 = vmmov %vm5099_vm4  ;;  %v1658_v33 = vsel %vm5104_vm10, %v2689_v55, %v2688_v57  ;;  %v2709_v24 = vunpack.i.h.bf16 %v4233_v11  ;;  %v2807_v55 = vpop.permute.xlu2 %2806 }
 0x397   :  { %v1241_v12 = vsel %vm5100_vm6, %v2758_v58, %v2753_v4  ;;  %v2309_v53 = vpack.c.bf16 %v1240_v28, %v4177_v5  ;;  %2334 = vmatpush.bf16.msk.msrb.mxu2 %vm5103_vm13, %v2333_v51  ;;  %vm5105_vm4 = vcmp.lt.s32.totalorder %v3165_v31, 3  ;;  %vm5106_vm6 = vnez %v4987_v10  ;;  %vm4332_vm13 = vmand %vm4846_vm0, %vm4844_vm8 }
 0x398   :  { %v2345_v25 = vpack.c.bf16 %v1241_v12, %v4183_v43  ;;  %2322 = vmatpush.bf16.msk.msrb.mxu1 %vm5102_vm3, %v2321_v15  ;;  %v1215_v5 = vsel %vm5105_vm4, %v2773_v47, %v2774_v30  ;;  %vm5107_vm14 = vnez %v5018_v17  ;;  %vm5108_vm3 = vmmov %vm5104_vm10  ;;  %v2708_v10 = vunpack.i.l.bf16 %v4233_v11 }
 0x399   :  { %2310 = vmatpush.bf16.msk.msrb.mxu0 %vm5106_vm6, %v2309_v53  ;;  %v2777_v61 = vpop.permute.xlu0 %2776  ;;  %v1656_v21 = vsel %vm5108_vm3, %v2703_v35, %v2704_v32  ;;  %v2336_v43 = vpack.c.bf16 %v1215_v5, %v1195_v22  ;;  %v2767_v45 = vpop.permute.xlu1 %2766  ;;  %v2714_v17 = vunpack.i.h.bf16 %v4235_v44  ;;  %vm4342_vm10 = vmand %vm1613_vm7, %vm4845_vm9  ;;  %v2713_v9 = vunpack.i.l.bf16 %v4235_v44 }
 0x39a   :  { %2346 = vmatpush.bf16.msk.msrb.mxu3 %vm5107_vm14, %v2345_v25  ;;  %v2779_v6 = vunpack.i.h.bf16 %v2777_v61  ;;  %v2778_v14 = vunpack.i.l.bf16 %v2777_v61  ;;  %v2769_v46 = vunpack.i.h.bf16 %v2767_v45  ;;  %v2768_v58 = vunpack.i.l.bf16 %v2767_v45  ;;  %vm5113_vm6 = vmmov %vm5105_vm4 }
 0x39b   :  { %vm5114_vm14 = vmmov %vm5105_vm4  ;;  %2337 = vmatpush.bf16.msk.msrb.mxu2 %vm4034_vm5, %v2336_v43  ;;  %vm5115_vm3 = vcmp.lt.s32.totalorder %v3165_v31, 45  ;;  %v1665_v34 = vsel %vm4342_vm10, %v1658_v33, 0.0  ;;  %v2694_v28 = vunpack.i.h.bf16 %v4229_v59  ;;  %v2783_v12 = vunpack.i.l.bf16 %v4281_v49 }
 0x39c   :  { %v1216_v4 = vsel %vm5105_vm4, %v2779_v6, %v2773_v47  ;;  %v1214_v57 = vsel %vm5113_vm6, %v2774_v30, %v2778_v14  ;;  %v1217_v32 = vsel %vm5114_vm14, %v2778_v14, %v2779_v6  ;;  %v1196_v35 = vsel %vm5115_vm3, %v2769_v46, %v2763_v3  ;;  %vm5116_vm8 = vmmov %vm5115_vm3 }
 0x39d   :  { %v1194_v16 = vsel %vm5116_vm8, %v2764_v19, %v2768_v58  ;;  %vm5117_vm9 = vmmov %vm5115_vm3  ;;  %v1663_v47 = vsel %vm4332_vm13, %v1656_v21, 0.0  ;;  %vm4848_vm4 = vcmp.lt.s32.totalorder %v3165_v31, 31  ;;  %v2324_v30 = vpack.c.bf16 %v1216_v4, %v1196_v35 }
 0x39e   :  { %v1197_v1 = vsel %vm5117_vm9, %v2768_v58, %v2769_v46  ;;  %v2348_v51 = vpack.c.bf16 %v1214_v57, %v1194_v16  ;;  %v2693_v3 = vunpack.i.l.bf16 %v4229_v59  ;;  %v2784_v19 = vunpack.i.h.bf16 %v4281_v49  ;;  %v4403_v58 = vpop.permute.xlu2 %2811 }
 0x39f   :  { %v2312_v15 = vpack.c.bf16 %v1217_v32, %v1197_v1  ;;  %v2699_v22 = vunpack.i.h.bf16 %v4231_v29  ;;  %v2698_v53 = vunpack.i.l.bf16 %v4231_v29  ;;  %v2809_v25 = vunpack.i.h.bf16 %v2807_v55  ;;  %2325 = vmatpush.bf16.msk.msrb.mxu1 %vm4073_vm1, %v2324_v30 }
 0x3a0   :  { %v2808_v5 = vunpack.i.l.bf16 %v2807_v55  ;;  %vm5118_vm5 = vcmp.lt.s32.totalorder %v3165_v31, 113  ;;  %vm5120_vm9 = vnez %v5028_v52  ;;  %v1725_v26 = vpack.c.bf16 %v1663_v47, %v1663_v47 }
 0x3a1   :  { %2313 = vmatpush.bf16.msk.msrb.mxu0 %vm4061_vm12, %v2312_v15  ;;  %v1587_v59 = vsel %vm5118_vm5, %v2714_v17, %v2709_v24  ;;  %vm5119_vm8 = vmmov %vm5118_vm5  ;;  %2349 = vmatpush.bf16.msk.msrb.mxu3 %vm5120_vm9, %v2348_v51  ;;  %v2787_v60 = vpop.permute.xlu0 %2786  ;;  %v1727_v49 = vpack.c.bf16 %v1665_v34, %v1665_v34  ;;  %v2797_v21 = vpop.permute.xlu1 %2796  ;;  %vm4847_vm12 = vcmp.lt.s32.totalorder %v3176_v38, 1  ;;  %vm1541_vm1 = vcmp.lt.s32.totalorder %v3180_v40, 1 }
 0x3a2   :  { %v1589_v29 = vsel %vm5119_vm8, %v2713_v9, %v2708_v10  ;;  %v2789_v33 = vunpack.i.h.bf16 %v2787_v60  ;;  %v2788_v61 = vunpack.i.l.bf16 %v2787_v60  ;;  %vm5121_vm6 = vcmp.lt.s32.totalorder %v3165_v31, 51 }
 0x3a3   :  { %v1155_v43 = vsel %vm5121_vm6, %v2783_v12, %v2784_v19  ;;  %v2799_v6 = vunpack.i.h.bf16 %v2797_v21  ;;  %v2798_v14 = vunpack.i.l.bf16 %v2797_v21  ;;  %vm1491_vm14 = vcmp.ge.s32.totalorder %v3186_v42, 15  ;;  %vm5123_vm5 = vmmov %vm5121_vm6 }
 0x3a4   :  { %vm5122_vm3 = vcmp.lt.s32.totalorder %v3165_v31, 48  ;;  %v1156_v45 = vsel %vm5123_vm5, %v2789_v33, %v2783_v12  ;;  %vm5124_vm8 = vmmov %vm5123_vm5  ;;  %v1610_v30 = vsel %vm4848_vm4, %v2694_v28, %v2693_v3  ;;  %v2363_v12 = vpack.c.bf16 %v1587_v59, %v4157_v62  ;;  %v1311_v62 = vld [vmem:[#allocation6 + $0xc] sm:$0xf] }
 0x3a5   :  { %v1177_v52 = vsel %vm5122_vm3, %v2808_v5, %v2809_v25  ;;  %v1154_v55 = vsel %vm5124_vm8, %v2784_v19, %v2788_v61  ;;  %vm5125_vm9 = vmmov %vm5123_vm5  ;;  %v3066_v19 = vmov 5   ;;  %v2719_v28 = vunpack.i.h.bf16 %v4225_v7 }
 0x3a6   :  { %v1157_v46 = vsel %vm5125_vm9, %v2788_v61, %v2789_v33  ;;  %vm5126_vm6 = vmmov %vm5122_vm3  ;;  %vm5131_vm9 = vcmp.lt.s32.totalorder %v3165_v31, 16  ;;  %2845 = vset.pattern.permute.xlu0 %v3066_v19  ;;  %v2718_v3 = vunpack.i.l.bf16 %v4225_v7  ;;  %v5156_v11 = vmov 0 }
 0x3a7   :  { %v2315_v4 = vpack.c.bf16 %v1177_v52, %v1157_v46  ;;  %v1174_v57 = vsel %vm5126_vm6, %v2799_v6, %v2808_v5  ;;  %vm5127_vm0 = vmmov %vm5122_vm3  ;;  %vm4849_vm3 = vcmp.ge.s32.totalorder %v3183_v41, 15  ;;  %v1638_v15 = vsel %vm5131_vm9, %v2699_v22, %v2698_v53  ;;  %v4462_v5 = vld [vmem:[#allocation8] sm:$0xff] }
 0x3a8   :  { %v1175_v32 = vsel %vm5127_vm0, %v2798_v14, %v2799_v6  ;;  %v2351_v35 = vpack.c.bf16 %v1174_v57, %v1154_v55  ;;  %vm5128_vm5 = vmmov %vm5127_vm0  ;;  %vm5134_vm6 = vnez %v5056_v18  ;;  %v2381_v53 = vpack.c.bf16 %v1589_v29, %v4143_v36  ;;  %1799 = vperm.xlu0 %2845, %v4462_v5  }
 0x3a9   :  { %v1176_v16 = vsel %vm5128_vm5, %v2809_v25, %v2798_v14  ;;  %v2339_v1 = vpack.c.bf16 %v1175_v32, %v1155_v43  ;;  %vm4415_vm8 = vmpackc.low %vm4847_vm12, %vm4899_vm2  ;;  %2316 = vmatpush.bf16.msk.msrb.mxu0 %vm4122_vm15, %v2315_v4  ;;  %vm5135_vm15 = vnez %v5059_v2  ;;  %vm5136_vm5 = vcmask 1043456   ;;  %v2792_v2 = vpop.permute.xlu0 %2791  ;;  %v2802_v23 = vpop.permute.xlu1 %2801 }
 0x3aa   :  { %v2327_v51 = vpack.c.bf16 %v1176_v16, %v1156_v45  ;;  %vm4428_vm0 = vmpackc.low %vm1541_vm1, %vm4899_vm2  ;;  %2352 = vmatpush.bf16.msk.msrb.mxu3 %vm5135_vm15, %v2351_v35  ;;  %v1733_v0 = vsel %vm5136_vm5, %v1725_v26, 0  ;;  %vm5140_vm15 = vcmp.lt.s32.totalorder %v3431_v48, 16  ;;  %v2794_v36 = vunpack.i.h.bf16 %v2792_v2  ;;  %v2827_v43 = vpop.permute.xlu2 %2826 }
 0x3ab   :  { %2340 = vmatpush.bf16.msk.msrb.mxu2 %vm5134_vm6, %v2339_v1  ;;  %vm4444_vm9 = vmand %vm1613_vm7, %vm1491_vm14  ;;  %v2793_v25 = vunpack.i.l.bf16 %v2792_v2  ;;  %v2372_v59 = vpack.c.bf16 %v1638_v15, %v1610_v30  ;;  %v1608_v26 = vsel %vm4848_vm4, %v2718_v3, %v2719_v28  ;;  %v3068_v4 = vmov 0.0  }
 0x3ac   :  { %2328 = vmatpush.bf16.msk.msrb.mxu1 %vm4129_vm11, %v2327_v51  ;;  %vm5139_vm6 = vmmov %vm5136_vm5  ;;  %vm5143_vm11 = vcmp.lt.s32.totalorder %v3165_v31, 113  ;;  %v2829_v32 = vunpack.i.h.bf16 %v2827_v43  ;;  %v5167_v1 = vmov 0  ;;  %v5179_v3 = vmov 0 }
 0x3ad   :  { %1747 = vmatpush.bf16.msra.mxu0 %v1733_v0  ;;  %v1739_v18 = vsel %vm5139_vm6, %v1727_v49, 0  ;;  %vm4456_vm5 = vmand %vm5140_vm15, %vm4849_vm3  ;;  %v1586_v29 = vsel %vm5143_vm11, %v2709_v24, %v2713_v9  ;;  %vm5146_vm15 = vcmask 588800   ;;  %v2814_v49 = vunpack.i.h.bf16 %v4403_v58 }
 0x3ae   :  { %2382 = vmatpush.bf16.msk.msra.mxu3 %vm4428_vm0, %v2381_v53  ;;  %vm4476_vm6 = vmpackc.low %vm1613_vm7, %vm4444_vm9  ;;  %2149 = vmatmul.msk.bf16.vlgmr.msrb.gmra.mxu0 %vm5146_vm15, %v1311_v62  ;;  %v2813_v24 = vunpack.i.l.bf16 %v4403_v58  ;;  %vm5147_vm11 = vcmp.lt.s32.totalorder %v3165_v31, 16  ;;  %vm5149_vm7 = vcmp.lt.s32.totalorder %v3431_v48, 16  ;;  %v3067_v48 = vmov 11  }
 0x3af   :  { %1773 = vmatpush.bf16.msra.mxu2 %v1739_v18  ;;  %v1636_v9 = vsel %vm5147_vm11, %v2793_v25, %v2794_v36  ;;  %vm5148_vm12 = vmmov %vm5146_vm15  ;;  %2846 = vset.pattern.permute.xlu1 %v3067_v48  ;;  %v2375_v21 = vpack.c.bf16 %v1586_v29, %v4149_v20  ;;  %v2803_v20 = vunpack.i.l.bf16 %v2802_v23  ;;  %v3069_v7 = vmov 0.0|0.0  }
 0x3b0   :  { %2364 = vmatpush.bf16.msk.msra.mxu1 %vm4415_vm8, %v2363_v12  ;;  %vm4492_vm9 = vmpackc.low %vm5149_vm7, %vm4456_vm5  ;;  %v2354_v33 = vpack.c.bf16 %v1636_v9, %v1608_v26  ;;  %vm4850_vm5 = vcmp.ge.s32.totalorder %v3178_v39, 240  ;;  %1807 = vperm.xlu1 %2846, %v4462_v5   ;;  %vm5158_vm7 = vcmp.lt.s32.totalorder %v3165_v31, 15 }
 0x3b1   :  { %2150 = vmatmul.msk.bf16.vlgmr.msrb.gmra.mxu1 %vm5148_vm12, %v1311_v62  ;;  %vm5152_vm15 = vmmov %vm5148_vm12  ;;  %v1563_v44 = vsel %vm5158_vm7, %v2813_v24, %v2814_v49  ;;  %v2817_v14 = vpop.permute.xlu0 %2816  ;;  %v2822_v46 = vpop.permute.xlu1 %2821  ;;  %2928 = vset.pattern.permute.xlu0 %v3067_v48 }
 0x3b2   :  { %2151 = vmatmul.msk.bf16.vlgmr.msrb.gmra.mxu2 %vm5152_vm15, %v1311_v62  ;;  %vm5153_vm4 = vmmov %vm5148_vm12  ;;  %vm5154_vm12 = vcmp.lt.s32.totalorder %v3165_v31, 113  ;;  %2355 = vmatpush.bf16.msk.msra.mxu0 %vm4492_vm9, %v2354_v33  ;;  %vm5159_vm15 = vcmp.lt.s32.totalorder %v3183_v41, 1  ;;  %v2819_v45 = vunpack.i.h.bf16 %v2817_v14  ;;  %v2818_v55 = vunpack.i.l.bf16 %v2817_v14  ;;  %v2842_v0 = vpop.permute.xlu2 %2841 }
 0x3b3   :  { %2152 = vmatmul.msk.bf16.vlgmr.msrb.gmra.mxu3 %vm5153_vm4, %v1311_v62  ;;  %v1588_v61 = vsel %vm5154_vm12, %v2708_v10, %v2714_v17  ;;  %2373 = vmatpush.bf16.msk.msra.mxu2 %vm4476_vm6, %v2372_v59  ;;  %vm5155_vm4 = vcmp.lt.s32.totalorder %v3186_v42, 1  ;;  %v2804_v10 = vunpack.i.h.bf16 %v2802_v23  ;;  %vm4526_vm12 = vmpackc.low %vm5159_vm15, %vm4899_vm2  ;;  %v5160_v17 = vmov 0  ;;  %v1672_v23 = vld [vmem:[#allocation6 + $0x10] sm:$0xf] }
 0x3b4   :  { %vm4514_vm11 = vmpackc.low %vm5155_vm4, %vm4899_vm2  ;;  %v5161_v17 = vsel %vm4526_vm12, 4294967295, %v5160_v17  ;;  %v2357_v6 = vpack.c.bf16 %v1588_v61, %v4141_v56  ;;  %vm4853_vm4 = vcmp.lt.s32.totalorder %v3165_v31, 97  ;;  %v5164_v56 = vmov 0 }
 0x3b5   :  { %v5157_v11 = vsel %vm4514_vm11, 4294967295, %v5156_v11  ;;  %vm4537_vm7 = vmand %vm4850_vm5, %vm1541_vm1  ;;  %v2378_v57 = vpack.c.bf16 %v1563_v44, %v3068_v4  ;;  %v2824_v35 = vunpack.i.h.bf16 %v2822_v46  ;;  %v2823_v16 = vunpack.i.l.bf16 %v2822_v46 }
 0x3b6   :  { %vm4546_vm15 = vmpackc.low %vm1491_vm14, %vm4899_vm2  ;;  %2358 = vmatpush.bf16.msk.msra.mxu0 %vm4526_vm12, %v2357_v6  ;;  %vm5166_vm1 = vcmp.ge.s32.totalorder %v3183_v41, 15  ;;  %v2828_v42 = vunpack.i.l.bf16 %v2827_v43  ;;  %v1535_v30 = vsel %vm4853_vm4, %v2803_v20, %v2804_v10  ;;  %vm5169_vm14 = vcmp.lt.s32.totalorder %v3165_v31, 15 }
 0x3b7   :  { %2376 = vmatpush.bf16.msk.msra.mxu2 %vm4514_vm11, %v2375_v21  ;;  %v5165_v56 = vsel %vm4546_vm15, 4294967295, %v5164_v56  ;;  %vm4556_vm5 = vmpackc.low %vm5166_vm1, %vm4899_vm2  ;;  %v1562_v15 = vsel %vm5169_vm14, %v2814_v49, %v2818_v55  ;;  %vm5171_vm11 = vcmp.ge.s32.totalorder %v3180_v40, 15  ;;  %vm5175_vm1 = vcmp.ge.s32.totalorder %v3178_v39, 240 }
 0x3b8   :  { %v5168_v1 = vsel %vm4556_vm5, 4294967295, %v5167_v1  ;;  %vm5170_vm3 = vmmov %vm5169_vm14  ;;  %v2384_v12 = vpack.c.bf16 %v1562_v15, %v1535_v30  ;;  %vm5176_vm14 = vcmp.lt.s32.totalorder %v3165_v31, 127  ;;  %v2844_v59 = vunpack.i.h.bf16 %v2842_v0 }
 0x3b9   :  { %v1565_v51 = vsel %vm5170_vm3, %v2818_v55, %v2819_v45  ;;  %vm4570_vm12 = vmpackc.low %vm5171_vm11, %vm4537_vm7  ;;  %v1482_v28 = vsel %vm5176_vm14, %v2823_v16, %v2824_v35  ;;  %vm1486_vm3 = vcmp.ge.s32.totalorder %v3174_v37, 240  ;;  %v2832_v62 = vpop.permute.xlu0 %2831  ;;  %vm5181_vm14 = vcmp.lt.s32.totalorder %v3176_v38, 1  ;;  %v2837_v39 = vpop.permute.xlu1 %2836 }
 0x3ba   :  { %v2360_v19 = vpack.c.bf16 %v1565_v51, %v3068_v4  ;;  %vm5174_vm2 = vmmov %vm5171_vm11  ;;  %2385 = vmatpush.bf16.msk.msra.mxu3 %vm4570_vm12, %v2384_v12  ;;  %vm5177_vm11 = vcmp.lt.s32.totalorder %v3165_v31, 112  ;;  %v2834_v18 = vunpack.i.h.bf16 %v2832_v62  ;;  %v2833_v2 = vunpack.i.l.bf16 %v2832_v62 }
 0x3bb   :  { %vm1496_vm4 = vmand %vm5175_vm1, %vm5174_vm2  ;;  %2379 = vmatpush.bf16.msk.msra.mxu2 %vm4546_vm15, %v2378_v57  ;;  %v1514_v40 = vsel %vm5177_vm11, %v2828_v42, %v2829_v32  ;;  %v2839_v36 = vunpack.i.h.bf16 %v2837_v39  ;;  %v2838_v25 = vunpack.i.l.bf16 %v2837_v39  ;;  %v2843_v29 = vunpack.i.l.bf16 %v2842_v0 }
 0x3bc   :  { %2361 = vmatpush.bf16.msk.msra.mxu0 %vm4556_vm5, %v2360_v19  ;;  %vm5178_vm7 = vmmov %vm5175_vm1  ;;  %v2387_v22 = vpack.c.bf16 %v1514_v40, %v1482_v28  ;;  %vm1490_vm1 = vcmp.ge.s32.totalorder %v3176_v38, 15  ;;  %vm5185_vm11 = vcmp.lt.s32.totalorder %v3165_v31, 97  ;;  %v3070_v62 = vmov 12  }
 0x3bd   :  { %vm4592_vm2 = vmpackc.low %vm5178_vm7, %vm1496_vm4  ;;  %vm5184_vm4 = vcmp.lt.s32.totalorder %v3165_v31, 15  ;;  %v1537_v49 = vsel %vm5185_vm11, %v2834_v18, %v2833_v2  ;;  %2927 = vset.pattern.permute.xlu1 %v3070_v62 }
 0x3be   :  { %v5180_v3 = vsel %vm4592_vm2, 4294967295, %v5179_v3  ;;  %vm4601_vm15 = vmand %vm1486_vm3, %vm5181_vm14  ;;  %2388 = vmatpush.bf16.msk.msra.mxu3 %vm4592_vm2, %v2387_v22  ;;  %v1564_v26 = vsel %vm5184_vm4, %v2819_v45, %v2813_v24  ;;  %vm5188_vm14 = vcmask 588800   ;;  %vm5189_vm4 = vcmp.lt.s32.totalorder %v3165_v31, 127 }
 0x3bf   :  { %1777 = vmatpush.bf16.msra.mxu2 %v3069_v7  ;;  %vm4619_vm7 = vmpackc.low %vm1490_vm1, %vm4601_vm15  ;;  %v2366_v33 = vpack.c.bf16 %v1564_v26, %v1537_v49  ;;  %v1484_v58 = vsel %vm5189_vm4, %v2839_v36, %v2838_v25  ;;  %vm5192_vm15 = vcmp.lt.s32.totalorder %v3165_v31, 112 }
 0x3c0   :  { %1751 = vmatpush.bf16.msra.mxu0 %v3069_v7  ;;  %vm1494_vm2 = vmand %vm1486_vm3, %vm1490_vm1  ;;  %v1516_v24 = vsel %vm5192_vm15, %v2844_v59, %v2843_v29  ;;  %vm5205_vm15 = vcmp.lt.s32.totalorder %v3165_v31, 15 }
 0x3c1   :  { %vm5190_vm11 = vmmov %vm5188_vm14  ;;  %2367 = vmatpush.bf16.msk.msra.mxu1 %vm4619_vm7, %v2366_v33  ;;  %v2369_v61 = vpack.c.bf16 %v1516_v24, %v1484_v58 }
 0x3c2   :  { %2155 = vmatmul.msk.bf16.vlgmr.msra.gmra.mxu2 %vm5188_vm14, %v1672_v23  ;;  %vm5191_vm5 = vmmov %vm5190_vm11 }
 0x3c3   :  { %2153 = vmatmul.msk.bf16.vlgmr.msra.gmra.mxu0 %vm5190_vm11, %v1672_v23  ;;  %2156 = vmatmul.msk.bf16.vlgmr.msra.gmra.mxu3 %vm5191_vm5, %v1672_v23  ;;  %vm4638_vm14 = vmpackc.low %vm1486_vm3, %vm1494_vm2  ;;  %vm5198_vm2 = vcmp.lt.s32.totalorder %v3165_v31, 1 }
 0x3c4   :  { %vm5195_vm1 = vmmov %vm5191_vm5  ;;  %vm5196_vm5 = vcmp.lt.s32.totalorder %v3165_v31, 113 }
 0x3c5   :  { %2370 = vmatpush.bf16.msk.msra.mxu1 %vm4638_vm14, %v2369_v61  ;;  %vm5197_vm3 = vmmov %vm5196_vm5 }
 0x3c6   :  { %vm5199_vm4 = vmmov %vm5198_vm2 }
 0x3c7   :  { %vm5200_vm11 = vmmov %vm5197_vm3 }
 0x3c8   :  { %2154 = vmatmul.msk.bf16.vlgmr.msra.gmra.mxu1 %vm5195_vm1, %v1672_v23  ;;  %vm5206_vm1 = vmmov %vm5205_vm15 }
 0x41a   :  { %v1800_v52 = vpop.permute.xlu0 %1799 }
 0x422   :  { %v1808_v55 = vpop.permute.xlu1 %1807 }
 0x42b   :  { %v4645_v48 = vpop.f32.mrf.mxu0 }
 0x42e   :  { %v4647_v21 = vpop.f32.mrf.mxu1 }
 0x433   :  { %v1394_v44 = vpop.f32.mrf.mxu0 }
 0x435   :  { %v4649_v43 = vpop.f32.mrf.mxu2 }
 0x436   :  { %v4651_v10 = vpop.f32.mrf.mxu3  ;;  %v1407_v37 = vpop.f32.mrf.mxu1 }
 0x43d   :  { %v1420_v20 = vpop.f32.mrf.mxu2 }
 0x43e   :  { %v1433_v6 = vpop.f32.mrf.mxu3 }
 0x440   :  { %v1753_v14 = vpop.f32.mrf.mxu0 }
 0x441   :  { %v1802_v45 = vmul.f32 %v1800_v52, %v1753_v14 }
 0x443   :  { %v4653_v32 = vadd.f32 %v1808_v55, %v1802_v45 }
 0x445   :  { %v1779_v46 = vpop.f32.mrf.mxu2  ;;  %v1766_v35 = vpop.f32.mrf.mxu1  ;;  %v1814_v15 = vmax.f32 %v4653_v32, 0.0 }
 0x446   :  { %v1792_v57 = vpop.f32.mrf.mxu3  ;;  %v1803_v42 = vmul.f32 %v1800_v52, %v1766_v35  ;;  %v1804_v0 = vmul.f32 %v1800_v52, %v1779_v46 }
 0x447   :  { %v1805_v22 = vmul.f32 %v1800_v52, %v1792_v57 }
 0x448   :  { %v1755_v16 = vpop.f32.mrf.mxu0  ;;  %v1811_v30 = vadd.f32 %v1808_v55, %v1803_v42  ;;  %v4661_v53 = vadd.f32 %v1808_v55, %v1804_v0 }
 0x449   :  { %v1813_v18 = vadd.f32 %v1808_v55, %v1805_v22 }
 0x44a   :  { %v1815_v51 = vmax.f32 %v1811_v30, 0.0  ;;  %v1816_v2 = vmax.f32 %v4661_v53, 0.0 }
 0x44b   :  { %v1817_v39 = vmax.f32 %v1813_v18, 0.0 }
 0x44c   :  { %v2862_v28 = vpack.i.bf16 %v1815_v51, %v1814_v15 }
 0x44d   :  { %v1781_v19 = vpop.f32.mrf.mxu2  ;;  %v1768_v40 = vpop.f32.mrf.mxu1  ;;  %v2887_v36 = vpack.i.bf16 %v1817_v39, %v1816_v2 }
 0x44e   :  { %v1794_v12 = vpop.f32.mrf.mxu3  ;;  %2863 = vrot.lane.b32.xlu0 %v2862_v28, %s3046_s5  ;;  %2858 = vrot.lane.b32.xlu1 %v2862_v28, %s3064_s15 }
 0x44f   :  { %2848 = vrot.lane.b32.xlu2 %v2862_v28, %s3048_s6 }
 0x456   :  { %2878 = vrot.lane.b32.xlu0 %v2862_v28, %s3039_s0  ;;  %2873 = vrot.lane.b32.xlu1 %v2862_v28, %s3042_s29 }
 0x457   :  { %2853 = vrot.lane.b32.xlu2 %v2862_v28, %s3040_s2 }
 0x45e   :  { %2888 = vrot.lane.b32.xlu0 %v2887_v36, %s3040_s2  ;;  %2883 = vrot.lane.b32.xlu1 %v2887_v36, %s3048_s6 }
 0x45f   :  { %2868 = vrot.lane.b32.xlu2 %v2862_v28, %s3065_s16 }
 0x466   :  { %2903 = vrot.lane.b32.xlu0 %v2887_v36, %s3065_s16  ;;  %2898 = vrot.lane.b32.xlu1 %v2887_v36, %s3046_s5 }
 0x467   :  { %2893 = vrot.lane.b32.xlu2 %v2887_v36, %s3064_s15 }
 0x46e   :  { %2923 = vrot.lane.b32.xlu0 %v2887_v36, %s3044_s4  ;;  %2913 = vrot.lane.b32.xlu1 %v2887_v36, %s3039_s0 }
 0x46f   :  { %2908 = vrot.lane.b32.xlu2 %v2887_v36, %s3042_s29 }
 0x476   :  { %79 = vperm.xlu1 %2927, %v4462_v5  }
 0x477   :  { %2918 = vrot.lane.b32.xlu2 %v2862_v28, %s3044_s4 }
 0x4a9   :  { %v2849_v25 = vpop.permute.xlu2 %2848 }
 0x4aa   :  { %v2851_v24 = vunpack.i.h.bf16 %v2849_v25  ;;  %v2850_v45 = vunpack.i.l.bf16 %v2849_v25 }
 0x4b1   :  { %v2854_v23 = vpop.permute.xlu2 %2853 }
 0x4b2   :  { %v2856_v61 = vunpack.i.h.bf16 %v2854_v23  ;;  %v2855_v44 = vunpack.i.l.bf16 %v2854_v23 }
 0x4b4   :  { %v1912_v23 = vsel %vm5200_vm11, %v2855_v44, %v2856_v61 }
 0x4b9   :  { %v2869_v59 = vpop.permute.xlu2 %2868 }
 0x4ba   :  { %v2871_v27 = vunpack.i.h.bf16 %v2869_v59 }
 0x4c0   :  { %v2864_v29 = vpop.permute.xlu0 %2863  ;;  %v2859_v26 = vpop.permute.xlu1 %2858 }
 0x4c1   :  { %v2894_v58 = vpop.permute.xlu2 %2893  ;;  %v2861_v55 = vunpack.i.h.bf16 %v2859_v26  ;;  %v2860_v46 = vunpack.i.l.bf16 %v2859_v26  ;;  %v2870_v26 = vunpack.i.l.bf16 %v2869_v59  ;;  %v2865_v50 = vunpack.i.l.bf16 %v2864_v29 }
 0x4c2   :  { %v2896_v57 = vunpack.i.h.bf16 %v2894_v58  ;;  %v2895_v19 = vunpack.i.l.bf16 %v2894_v58 }
 0x4c8   :  { %v4680_v49 = vpop.permute.xlu0 %2878  ;;  %v4682_v33 = vpop.permute.xlu1 %2873 }
 0x4c9   :  { %v4684_v35 = vpop.permute.xlu2 %2908  ;;  %v2876_v0 = vunpack.i.h.bf16 %v4682_v33  ;;  %v2875_v22 = vunpack.i.l.bf16 %v4682_v33  ;;  %v2866_v33 = vunpack.i.h.bf16 %v2864_v29 }
 0x4ca   :  { %v2911_v36 = vunpack.i.h.bf16 %v4684_v35  ;;  %v2910_v25 = vunpack.i.l.bf16 %v4684_v35 }
 0x4cb   :  { %v1888_v29 = vsel %vm5205_vm15, %v2875_v22, %v2876_v0  ;;  %vm5219_vm15 = vnez %v5168_v1  ;;  %v75_v1 = vld [vmem:[#allocation3 + $0x18] sm:$0xff] }
 0x4d0   :  { %v2889_v37 = vpop.permute.xlu0 %2888  ;;  %v2884_v20 = vpop.permute.xlu1 %2883 }
 0x4d1   :  { %v2891_v6 = vunpack.i.h.bf16 %v2889_v37  ;;  %v2890_v14 = vunpack.i.l.bf16 %v2889_v37  ;;  %v2886_v5 = vunpack.i.h.bf16 %v2884_v20  ;;  %v2885_v52 = vunpack.i.l.bf16 %v2884_v20 }
 0x4d3   :  { %v1911_v16 = vsel %vm5196_vm5, %v2856_v61, %v2890_v14  ;;  %v1913_v42 = vsel %vm5197_vm3, %v2891_v6, %v2855_v44  ;;  %v1971_v30 = vsel %vm5198_vm2, %v2851_v24, %v2885_v52  ;;  %v1973_v40 = vsel %vm5199_vm4, %v2886_v5, %v2850_v45 }
 0x4d4   :  { %v2399_v12 = vpack.c.bf16 %v1911_v16, %v1815_v51  ;;  %v2417_v28 = vpack.c.bf16 %v1913_v42, %v1817_v39  ;;  %v1974_v62 = vsel %vm4332_vm13, %v1971_v30, 0.0  ;;  %v1976_v18 = vsel %vm4342_vm10, %v1973_v40, 0.0 }
 0x4d5   :  { %v2036_v51 = vpack.c.bf16 %v1974_v62, %v1974_v62  ;;  %v2038_v39 = vpack.c.bf16 %v1976_v18, %v1976_v18  ;;  %vm5201_vm13 = vcmask 1043456   ;;  %v1886_v61 = vsel %vm5206_vm1, %v2910_v25, %v2911_v36 }
 0x4d6   :  { %2400 = vmatpush.bf16.msk.msrb.mxu3 %vm4415_vm8, %v2399_v12  ;;  %2418 = vmatpush.bf16.msk.msrb.mxu2 %vm4428_vm0, %v2417_v28  ;;  %vm5202_vm10 = vmmov %vm5201_vm13  ;;  %vm5203_vm8 = vcmp.lt.s32.totalorder %v3165_v31, 31  ;;  %vm5207_vm5 = vcmp.lt.s32.totalorder %v3165_v31, 97  ;;  %vm5209_vm2 = vcmp.lt.s32.totalorder %v3165_v31, 16  ;;  %v2919_v12 = vpop.permute.xlu2 %2918  ;;  %v2393_v28 = vpack.c.bf16 %v1912_v23, %v1814_v15  ;;  %v1983_v23 = vld [vmem:[#allocation6 + $0x14] sm:$0xf] }
 0x4d7   :  { %v2044_v37 = vsel %vm5201_vm13, %v2036_v51, 0  ;;  %v2050_v20 = vsel %vm5202_vm10, %v2038_v39, 0  ;;  %v1933_v45 = vsel %vm5203_vm8, %v2896_v57, %v2860_v46  ;;  %vm5204_vm0 = vmmov %vm5203_vm8  ;;  %v2881_v40 = vunpack.i.h.bf16 %v4680_v49 }
 0x4d8   :  { %v2904_v58 = vpop.permute.xlu0 %2903  ;;  %v2899_v24 = vpop.permute.xlu1 %2898  ;;  %2058 = vmatpush.bf16.msrb.mxu1 %v2044_v37  ;;  %2084 = vmatpush.bf16.msrb.mxu0 %v2050_v20  ;;  %v1931_v59 = vsel %vm5204_vm0, %v2861_v55, %v2895_v19  ;;  %vm5208_vm3 = vmmov %vm5207_vm5  ;;  %v1910_v19 = vsel %vm5200_vm11, %v2890_v14, %v2891_v6  ;;  %v2880_v62 = vunpack.i.l.bf16 %v4680_v49  ;;  %v2921_v6 = vunpack.i.h.bf16 %v2919_v12 }
 0x4d9   :  { %v2906_v47 = vunpack.i.h.bf16 %v2904_v58  ;;  %v2905_v5 = vunpack.i.l.bf16 %v2904_v58  ;;  %v2901_v52 = vunpack.i.h.bf16 %v2899_v24  ;;  %v2900_v34 = vunpack.i.l.bf16 %v2899_v24  ;;  %vm5210_vm4 = vmmov %vm5209_vm2 }
 0x4da   :  { %vm5211_vm13 = vmmov %vm5206_vm1  ;;  %v2411_v9 = vpack.c.bf16 %v1910_v19, %v1816_v2  ;;  %v2920_v14 = vunpack.i.l.bf16 %v2919_v12  ;;  %vm5216_vm10 = vcmp.lt.s32.totalorder %v3165_v31, 127  ;;  %vm5218_vm0 = vnez %v5157_v11  ;;  %v72_v11 = vld [vmem:[#allocation3] sm:$0xff] }
 0x4db   :  { %v1867_v44 = vsel %vm5207_vm5, %v2871_v27, %v2905_v5  ;;  %v1869_v35 = vsel %vm5208_vm3, %v2906_v47, %v2870_v26  ;;  %v1953_v16 = vsel %vm5209_vm2, %v2901_v52, %v2865_v50  ;;  %v1951_v46 = vsel %vm5210_vm4, %v2866_v33, %v2900_v34  ;;  %vm5217_vm8 = vmmov %vm5216_vm10 }
 0x4dc   :  { %v2402_v57 = vpack.c.bf16 %v1888_v29, %v1869_v35  ;;  %v2420_v55 = vpack.c.bf16 %v1886_v61, %v1867_v44  ;;  %v2390_v42 = vpack.c.bf16 %v1951_v46, %v1931_v59  ;;  %v2408_v30 = vpack.c.bf16 %v1953_v16, %v1933_v45 }
 0x4dd   :  { %v1889_v54 = vsel %vm5211_vm13, %v2911_v36, %v2875_v22  ;;  %vm5221_vm5 = vnez %v5180_v3  ;;  %vm5222_vm3 = vcmask 588800  }
 0x4de   :  { %2391 = vmatpush.bf16.msk.msrb.mxu1 %vm4492_vm9, %v2390_v42  ;;  %2403 = vmatpush.bf16.msk.msrb.mxu3 %vm4619_vm7, %v2402_v57  ;;  %vm5212_vm9 = vmmov %vm5206_vm1  ;;  %vm5220_vm1 = vnez %v5165_v56  ;;  %v73_v56 = vld [vmem:[#allocation3 + $0x8] sm:$0xff] }
 0x4df   :  { %2409 = vmatpush.bf16.msk.msrb.mxu0 %vm4476_vm6, %v2408_v30  ;;  %2421 = vmatpush.bf16.msk.msrb.mxu2 %vm4570_vm12, %v2420_v55  ;;  %v1887_v60 = vsel %vm5212_vm9, %v2876_v0, %v2910_v25  ;;  %vm5213_vm6 = vnez %v5161_v17  ;;  %vm5214_vm12 = vcmp.lt.s32.totalorder %v3165_v31, 112  ;;  %v2396_v0 = vpack.c.bf16 %v1889_v54, %v3068_v4  ;;  %vm5223_vm2 = vmmov %vm5222_vm3 }
 0x4e0   :  { %v2924_v32 = vpop.permute.xlu0 %2923  ;;  %v2914_v15 = vpop.permute.xlu1 %2913  ;;  %vm5215_vm7 = vmmov %vm5214_vm12  ;;  %v2414_v25 = vpack.c.bf16 %v1887_v60, %v3068_v4  ;;  %v74_v4 = vld [vmem:[#allocation3 + $0x10] sm:$0xff] }
 0x4e1   :  { %v2926_v18 = vunpack.i.h.bf16 %v2924_v32  ;;  %v2925_v51 = vunpack.i.l.bf16 %v2924_v32  ;;  %v2916_v39 = vunpack.i.h.bf16 %v2914_v15  ;;  %v2915_v49 = vunpack.i.l.bf16 %v2914_v15  ;;  %vm5224_vm4 = vmmov %vm5223_vm2 }
 0x4e2   :  { %2394 = vmatpush.bf16.msk.msrb.mxu1 %vm5213_vm6, %v2393_v28  ;;  %vm5225_vm11 = vmmov %vm5223_vm2 }
 0x4e3   :  { %v1847_v41 = vsel %vm5214_vm12, %v2921_v6, %v2925_v51  ;;  %v1849_v53 = vsel %vm5215_vm7, %v2926_v18, %v2920_v14  ;;  %v1829_v2 = vsel %vm5216_vm10, %v2916_v39, %v2880_v62  ;;  %v1827_v22 = vsel %vm5217_vm8, %v2881_v40, %v2915_v49  ;;  %2412 = vmatpush.bf16.msk.msrb.mxu0 %vm5218_vm0, %v2411_v9 }
 0x4e4   :  { %v2405_v36 = vpack.c.bf16 %v1849_v53, %v1829_v2  ;;  %v2423_v17 = vpack.c.bf16 %v1847_v41, %v1827_v22 }
 0x4e6   :  { %2397 = vmatpush.bf16.msk.msrb.mxu1 %vm5219_vm15, %v2396_v0  ;;  %2406 = vmatpush.bf16.msk.msrb.mxu3 %vm4638_vm14, %v2405_v36 }
 0x4e7   :  { %2415 = vmatpush.bf16.msk.msrb.mxu0 %vm5220_vm1, %v2414_v25  ;;  %2424 = vmatpush.bf16.msk.msrb.mxu2 %vm5221_vm5, %v2423_v17 }
 0x4e8   :  { %v80_v31 = vpop.permute.xlu1 %79 }
 0x4e9   :  { %2158 = vmatmul.msk.bf16.vlgmr.msrb.gmra.mxu3 %vm5222_vm3, %v1983_v23  ;;  %v82_v38 = vadd.f32 %v80_v31, %v72_v11  ;;  %v84_v3 = vadd.f32 %v80_v31, %v74_v4  ;;  %v83_v27 = vadd.f32 %v80_v31, %v73_v56  ;;  %v85_v26 = vadd.f32 %v80_v31, %v75_v1 }
 0x4ea   :  { %2160 = vmatmul.msk.bf16.vlgmr.msrb.gmra.mxu2 %vm5223_vm2, %v1983_v23  ;;  %2062 = vmatpush.bf16.msrb.mxu1 %v3069_v7 }
 0x4eb   :  { %2088 = vmatpush.bf16.msrb.mxu0 %v3069_v7  ;;  %v761_v33 = vadd.f32 %v4169_v13, %v82_v38  ;;  %v763_v50 = vadd.f32 %v4173_v63, %v84_v3  ;;  %v762_v58 = vadd.f32 %v4171_v8, %v83_v27  ;;  %v5226_v7 = vld [vmem:[#allocation14_spill] sm:$0xff] }
 0x4ec   :  { %v764_v24 = vadd.f32 %v5226_v7, %v85_v26 }
 0x4ed   :  { %2157 = vmatmul.msk.bf16.vlgmr.msrb.gmra.mxu1 %vm5224_vm4, %v1983_v23  ;;  %v1439_v37 = vadd.f32 %v4645_v48, %v761_v33  ;;  %v1441_v47 = vadd.f32 %v4649_v43, %v763_v50  ;;  %v1440_v34 = vadd.f32 %v4647_v21, %v762_v58 }
 0x4ee   :  { %2159 = vmatmul.msk.bf16.vlgmr.msrb.gmra.mxu0 %vm5225_vm11, %v1983_v23  ;;  %v1442_v8 = vadd.f32 %v4651_v10, %v764_v24 }
 0x56a   :  { %v2064_v20 = vpop.f32.mrf.mxu1 }
 0x56b   :  { %v2111_v5 = vadd.f32 %v2064_v20, %v1439_v37  ;;  %v2090_v52 = vpop.f32.mrf.mxu0 }
 0x56c   :  { %v2113_v13 = vadd.f32 %v2090_v52, %v1441_v47  ;;  %v2077_v63 = vpop.f32.mrf.mxu3 }
 0x56d   :  { %2115 = vst [vmem:[#allocation9] sm:$0xff] %v2111_v5  ;;  %v2112_v45 = vadd.f32 %v2077_v63, %v1440_v34  ;;  %v2103_v48 = vpop.f32.mrf.mxu2 }
 0x56e   :  { %2117 = vst [vmem:[#allocation9 + $0x10] sm:$0xff] %v2113_v13  ;;  %v2114_v59 = vadd.f32 %v2103_v48, %v1442_v8 }
 0x56f   :  { %2116 = vst [vmem:[#allocation9 + $0x8] sm:$0xff] %v2112_v45 }
 0x570   :  { %2118 = vst [vmem:[#allocation9 + $0x18] sm:$0xff] %v2114_v59 }
 0x571   :  { %2129 = dma.vmem_to_hbm [thread:$0]  %s2125_s18, 512, %s2127_s21, [#allocation5]  }
 0x572   :  { %v2066_v21 = vpop.f32.mrf.mxu1 }
 0x573   :  { %v2092_v43 = vpop.f32.mrf.mxu0 }
 0x574   :  { %v2079_v29 = vpop.f32.mrf.mxu3 }
 0x575   :  { %v2105_v61 = vpop.f32.mrf.mxu2 }
 0x576   :  { %3030 = dma.done.wait [#allocation5], 512  }
 0x577   :  { %3031 = vsyncadd [#allocation5], 4294966784 }
 0x578   :  { %2134 = vsyncpa [#allocation4], 1 }
 0x579   :  { %2135 = vsyncpa [#allocation7], 1 }
 0x57a   :  { %2136 = vsyncpa [#allocation5], 1 }

</bundles_post_ra>
